<compile_context>
chip_gen: v7x
topology: tpu7x:2x2x1
jax: 0.10.0
libtpu: 0.0.40
codegen_flags: <defaults>
</compile_context>

<pallas_src>
import functools

import jax
import jax.numpy as jnp
from jax.experimental import pallas as pl
from jax.experimental.pallas import tpu as pltpu


# ---------------------------------------------------------------------------
# Generation-aware VMEM limit (v7x: 64 MiB physical -> ~48 MiB; v5e/v6e: 96).
# ---------------------------------------------------------------------------
@functools.lru_cache(maxsize=None)
def _vmem_limit_bytes():
    try:
        cap = int(pltpu.get_tpu_info().vmem_capacity_bytes)
    except Exception:
        cap = 64 * 1024 * 1024
    return max(32 * 1024 * 1024, min(cap - 16 * 1024 * 1024, 96 * 1024 * 1024))


# ---------------------------------------------------------------------------
# Tiling helpers (pad UP to a multiple of the tile; never shrink the tile)
# ---------------------------------------------------------------------------
def _round_up(x, m):
    return (x + m - 1) // m * m


def _row_tile(M, cap=256):
    """Row (sublane) tiling: single full block when small, else cap-row tiles
    with the dim padded up to a multiple of cap."""
    Mp = _round_up(max(M, 1), 8)
    if Mp <= cap:
        return Mp, Mp
    return _round_up(M, cap), cap


def _col_tile(D, cap=1024):
    """Lane tiling: full-dim block when it fits; otherwise the largest
    128-multiple tile <= cap that divides D (no weight padding); else pad."""
    if D <= cap:
        return D, D
    for t in range(cap, 127, -128):
        if D % t == 0:
            return D, t
    return _round_up(D, cap), cap


def _seq_pad(T, cap=128):
    """Sequence padding, done ONCE per tower."""
    Tp = _round_up(max(T, 1), 8)
    if Tp <= cap:
        return Tp, Tp
    return _round_up(T, cap), cap


def _bh_tile(BH, cap=16):
    """Largest divisor of batch*heads that is <= cap (parallel grid axis)."""
    for t in range(min(cap, BH), 0, -1):
        if BH % t == 0:
            return t
    return 1


# ---------------------------------------------------------------------------
# Tiled bf16 matmul / linear with fused bias + QuickGELU + residual
# ---------------------------------------------------------------------------
def _linear_kernel(x_ref, w_ref, b_ref, *rest, activation, has_residual):
    if has_residual:
        res_ref, o_ref, acc_ref = rest
    else:
        o_ref, acc_ref = rest
    k = pl.program_id(2)

    @pl.when(k == 0)
    def _init():
        acc_ref[...] = jnp.zeros_like(acc_ref)

    acc_ref[...] += jnp.dot(x_ref[...], w_ref[...],
                            preferred_element_type=jnp.float32)

    @pl.when(k == pl.num_programs(2) - 1)
    def _flush():
        y = acc_ref[...] + b_ref[...]
        if activation == "quick_gelu":            # CLIP QuickGELU
            y = y * jax.nn.sigmoid(1.702 * y)
        if has_residual:
            y = y + res_ref[...].astype(jnp.float32)
        o_ref[...] = y.astype(o_ref.dtype)


def linear(x, w, b=None, residual=None, activation=None,
           out_dtype=jnp.bfloat16):
    M, K = x.shape
    Kw, N = w.shape
    assert K == Kw, (K, Kw)
    Mp, tm = _row_tile(M, 256)
    Np, tn = _col_tile(N, 1024)
    Kp, tk = _col_tile(K, 1024)

    xp = x if x.dtype == jnp.bfloat16 else x.astype(jnp.bfloat16)
    if (Mp, Kp) != (M, K):
        xp = jnp.pad(xp, ((0, Mp - M), (0, Kp - K)))
    wp = w if w.dtype == jnp.bfloat16 else w.astype(jnp.bfloat16)
    if (Kp, Np) != (K, N):
        wp = jnp.pad(wp, ((0, Kp - K), (0, Np - N)))
    if b is None:
        bp = jnp.zeros((1, Np), jnp.float32)
    else:
        bp = b.astype(jnp.float32).reshape(1, N)
        if Np != N:
            bp = jnp.pad(bp, ((0, 0), (0, Np - N)))

    in_specs = [
        pl.BlockSpec((tm, tk), lambda i, j, k: (i, k)),
        pl.BlockSpec((tk, tn), lambda i, j, k: (k, j)),
        pl.BlockSpec((1, tn), lambda i, j, k: (0, j)),
    ]
    operands = [xp, wp, bp]
    has_residual = residual is not None
    if has_residual:
        rp = residual if residual.dtype == jnp.bfloat16 \
            else residual.astype(jnp.bfloat16)
        if (Mp, Np) != tuple(residual.shape):
            rp = jnp.pad(rp, ((0, Mp - M), (0, Np - N)))
        in_specs.append(pl.BlockSpec((tm, tn), lambda i, j, k: (i, j)))
        operands.append(rp)

    out = pl.pallas_call(
        functools.partial(_linear_kernel, activation=activation,
                          has_residual=has_residual),
        out_shape=jax.ShapeDtypeStruct((Mp, Np), out_dtype),
        grid=(Mp // tm, Np // tn, Kp // tk),
        in_specs=in_specs,
        out_specs=pl.BlockSpec((tm, tn), lambda i, j, k: (i, j)),
        scratch_shapes=[pltpu.VMEM((tm, tn), jnp.float32)],
        compiler_params=pltpu.CompilerParams(
            dimension_semantics=("parallel", "parallel", "arbitrary"),
            vmem_limit_bytes=_vmem_limit_bytes()),
    )(*operands)
    if (Mp, Np) != (M, N):
        out = out[:M, :N]
    return out


# ---------------------------------------------------------------------------
# Row-tiled LayerNorm (f32 math, bf16 in/out), large row tiles
# ---------------------------------------------------------------------------
def _layernorm_kernel(x_ref, g_ref, b_ref, o_ref):
    x = x_ref[...].astype(jnp.float32)
    mu = jnp.mean(x, axis=-1, keepdims=True)
    var = jnp.mean(jnp.square(x - mu), axis=-1, keepdims=True)
    y = (x - mu) * jax.lax.rsqrt(var + 1e-5)
    o_ref[...] = (y * g_ref[...] + b_ref[...]).astype(o_ref.dtype)


def layernorm(x, g, b, out_dtype=jnp.bfloat16):
    M, D = x.shape
    Mp, tm = _row_tile(M, 1024)
    xp = x if Mp == M else jnp.pad(x, ((0, Mp - M), (0, 0)))
    out = pl.pallas_call(
        _layernorm_kernel,
        out_shape=jax.ShapeDtypeStruct((Mp, D), out_dtype),
        grid=(Mp // tm,),
        in_specs=[pl.BlockSpec((tm, D), lambda i: (i, 0)),
                  pl.BlockSpec((1, D), lambda i: (0, 0)),
                  pl.BlockSpec((1, D), lambda i: (0, 0))],
        out_specs=pl.BlockSpec((tm, D), lambda i: (i, 0)),
        compiler_params=pltpu.CompilerParams(
            dimension_semantics=("parallel",),
            vmem_limit_bytes=_vmem_limit_bytes()),
    )(xp, g.astype(jnp.float32).reshape(1, D),
      b.astype(jnp.float32).reshape(1, D))
    return out if Mp == M else out[:M]


# ---------------------------------------------------------------------------
# Flash-style attention: grid (bh-chunks, q-tiles, kv-tiles), online softmax,
# in-kernel causal / padding mask, causal tile skipping.
# ---------------------------------------------------------------------------
def _flash_attn_kernel(q_ref, k_ref, v_ref, o_ref, m_sc, l_sc, acc_sc, *,
                       scale, causal, seq_len, block_q, block_kv, needs_pad):
    qi = pl.program_id(1)
    ki = pl.program_id(2)

    @pl.when(ki == 0)
    def _init():
        m_sc[...] = jnp.full_like(m_sc, -1e30)     # finite sentinel (no -inf)
        l_sc[...] = jnp.zeros_like(l_sc)
        acc_sc[...] = jnp.zeros_like(acc_sc)

    def _compute():
        q = q_ref[...] * scale                     # fold 1/sqrt(Dh) into q tile
        s = jnp.einsum("bqd,bkd->bqk", q, k_ref[...],
                       preferred_element_type=jnp.float32)
        if causal or needs_pad:                    # mask built in-kernel
            kv_pos = ki * block_kv + jax.lax.broadcasted_iota(
                jnp.int32, s.shape, 2)
            mask = kv_pos < seq_len
            if causal:
                q_pos = qi * block_q + jax.lax.broadcasted_iota(
                    jnp.int32, s.shape, 1)
                mask = jnp.logical_and(mask, kv_pos <= q_pos)
            s = jnp.where(mask, s, -1e30)
        m_prev = m_sc[...]
        m_new = jnp.maximum(m_prev, jnp.max(s, axis=-1, keepdims=True))
        alpha = jnp.exp(m_prev - m_new)
        p = jnp.exp(s - m_new)
        l_sc[...] = alpha * l_sc[...] + jnp.sum(p, axis=-1, keepdims=True)
        acc_sc[...] = alpha * acc_sc[...] + jnp.einsum(
            "bqk,bkd->bqd", p.astype(v_ref.dtype), v_ref[...],
            preferred_element_type=jnp.float32)
        m_sc[...] = m_new

    if causal:
        pl.when(ki <= qi)(_compute)    # skip kv tiles entirely above diagonal
    else:
        _compute()

    @pl.when(ki == pl.num_programs(2) - 1)
    def _flush():
        o_ref[...] = (acc_sc[...] *
                      pl.reciprocal(l_sc[...], approx=True)).astype(o_ref.dtype)


def attention(q, k, v, *, seq_len, causal):
    """q, k, v: (B*H, Tp, Dh) bf16, sequence already padded to Tp."""
    BH, Tp, Dh = q.shape
    scale = 1.0 / float(Dh) ** 0.5
    tt = Tp if Tp <= 128 else 128
    assert Tp % tt == 0
    bh_t = _bh_tile(BH, 16)
    n_q = Tp // tt
    n_kv = (seq_len + tt - 1) // tt        # never visit fully-padded kv tiles
    needs_pad = (n_kv * tt) != seq_len

    kernel = functools.partial(
        _flash_attn_kernel, scale=scale, causal=causal, seq_len=seq_len,
        block_q=tt, block_kv=tt, needs_pad=needs_pad)

    return pl.pallas_call(
        kernel,
        out_shape=jax.ShapeDtypeStruct((BH, Tp, Dh), jnp.bfloat16),
        grid=(BH // bh_t, n_q, n_kv),
        in_specs=[pl.BlockSpec((bh_t, tt, Dh), lambda b, qi, ki: (b, qi, 0)),
                  pl.BlockSpec((bh_t, tt, Dh), lambda b, qi, ki: (b, ki, 0)),
                  pl.BlockSpec((bh_t, tt, Dh), lambda b, qi, ki: (b, ki, 0))],
        out_specs=pl.BlockSpec((bh_t, tt, Dh), lambda b, qi, ki: (b, qi, 0)),
        scratch_shapes=[pltpu.VMEM((bh_t, tt, 1), jnp.float32),
                        pltpu.VMEM((bh_t, tt, 1), jnp.float32),
                        pltpu.VMEM((bh_t, tt, Dh), jnp.float32)],
        compiler_params=pltpu.CompilerParams(
            dimension_semantics=("parallel", "parallel", "arbitrary"),
            vmem_limit_bytes=_vmem_limit_bytes()),
    )(q, k, v)


# ---------------------------------------------------------------------------
# L2 normalisation (eps-guarded rsqrt, f32) and final logits kernel
# ---------------------------------------------------------------------------
def _l2norm_kernel(x_ref, o_ref):
    x = x_ref[...].astype(jnp.float32)
    n2 = jnp.sum(x * x, axis=-1, keepdims=True)
    o_ref[...] = x * jax.lax.rsqrt(n2 + 1e-12)


def l2norm(x):
    # tiny (rows = batch / n_classes): whole-array VMEM block is fine.
    return pl.pallas_call(
        _l2norm_kernel,
        out_shape=jax.ShapeDtypeStruct(x.shape, jnp.float32),
        in_specs=[pl.BlockSpec(memory_space=pltpu.MemorySpace.VMEM)],
        out_specs=pl.BlockSpec(memory_space=pltpu.MemorySpace.VMEM),
    )(x)


def _logits_kernel(s_ref, img_ref, txt_t_ref, o_ref):
    o_ref[...] = s_ref[0] * jnp.dot(img_ref[...], txt_t_ref[...],
                                    preferred_element_type=jnp.float32)


def clip_logits(image_feats, text_feats, logit_scale):
    # exp() hoisted out of the kernel; text features pre-transposed in glue.
    scale = jnp.exp(jnp.asarray(logit_scale, jnp.float32)).reshape(1)
    return pl.pallas_call(
        _logits_kernel,
        out_shape=jax.ShapeDtypeStruct(
            (image_feats.shape[0], text_feats.shape[0]), jnp.float32),
        in_specs=[pl.BlockSpec(memory_space=pltpu.MemorySpace.SMEM),
                  pl.BlockSpec(memory_space=pltpu.MemorySpace.VMEM),
                  pl.BlockSpec(memory_space=pltpu.MemorySpace.VMEM)],
        out_specs=pl.BlockSpec(memory_space=pltpu.MemorySpace.VMEM),
    )(scale, image_feats, text_feats.T)


# ---------------------------------------------------------------------------
# Transformer glue (heavy math runs in the Pallas kernels above)
# ---------------------------------------------------------------------------
def multi_head_attention(x, p, n_heads, causal, seq_len, residual):
    B, Tp, D = x.shape
    Dh = D // n_heads
    qkv = linear(x.reshape(B * Tp, D), p['w_qkv'], p['b_qkv'])    # (B*Tp, 3D)
    qkv = qkv.reshape(B, Tp, 3, n_heads, Dh)
    q = qkv[:, :, 0].transpose(0, 2, 1, 3).reshape(B * n_heads, Tp, Dh)
    k = qkv[:, :, 1].transpose(0, 2, 1, 3).reshape(B * n_heads, Tp, Dh)
    v = qkv[:, :, 2].transpose(0, 2, 1, 3).reshape(B * n_heads, Tp, Dh)
    o = attention(q, k, v, seq_len=seq_len, causal=causal)
    o = o.reshape(B, n_heads, Tp, Dh).transpose(0, 2, 1, 3).reshape(B * Tp, D)
    # residual add fused into the out-projection flush
    o = linear(o, p['w_out'], p['b_out'], residual=residual.reshape(B * Tp, D))
    return o.reshape(B, Tp, D)


def resblock(x, p, n_heads, causal, seq_len):
    B, Tp, D = x.shape
    y = layernorm(x.reshape(B * Tp, D), p['ln1_g'], p['ln1_b']).reshape(B, Tp, D)
    x = multi_head_attention(y, p, n_heads, causal, seq_len, residual=x)
    y = layernorm(x.reshape(B * Tp, D), p['ln2_g'], p['ln2_b'])
    h = linear(y, p['w_fc'], p['b_fc'], activation="quick_gelu")
    x = linear(h, p['w_proj'], p['b_proj'],
               residual=x.reshape(B * Tp, D)).reshape(B, Tp, D)
    return x


def encode_image(x, p, cfg):
    B, C, H, W = x.shape
    P, Dv = cfg['patch'], cfg['v_width']
    gh, gw = H // P, W // P
    patches = x.reshape(B, C, gh, P, gw, P).transpose(0, 2, 4, 1, 3, 5)
    patches = patches.reshape(B * gh * gw, C * P * P)
    tok = linear(patches, p['patch_w']).reshape(B, gh * gw, Dv)   # conv==matmul
    cls = jnp.broadcast_to(p['cls'], (B, 1, Dv))
    h = jnp.concatenate([cls, tok], axis=1) + p['v_pos'][None]
    T = h.shape[1]
    Tp, _ = _seq_pad(T)
    if Tp != T:                                   # pad the sequence ONCE
        h = jnp.pad(h, ((0, 0), (0, Tp - T), (0, 0)))
    h = layernorm(h.reshape(B * Tp, Dv),
                  p['ln_pre_g'], p['ln_pre_b']).reshape(B, Tp, Dv)
    for blk in p['v_blocks']:
        h = resblock(h, blk, cfg['v_heads'], causal=False, seq_len=T)
    cls_out = layernorm(h[:, 0, :], p['ln_post_g'], p['ln_post_b'])
    return linear(cls_out, p['v_proj'], out_dtype=jnp.float32)


def encode_text(tokens, p, cfg):
    N, T = tokens.shape
    Dt = cfg['t_width']
    # token embedding via gather (no dense one-hot matmul)
    h = jnp.take(p['tok_emb'], tokens, axis=0)
    h = h + p['t_pos'][:T][None]
    Tp, _ = _seq_pad(T)
    if Tp != T:                                   # pad the sequence ONCE
        h = jnp.pad(h, ((0, 0), (0, Tp - T), (0, 0)))
    for blk in p['t_blocks']:
        h = resblock(h, blk, cfg['t_heads'], causal=True, seq_len=T)
    h = layernorm(h.reshape(N * Tp, Dt),
                  p['ln_final_g'], p['ln_final_b']).reshape(N, Tp, Dt)
    # TODO(synk): EOT = argmax(token id) matches CLIP's BPE tokenizer only.
    eot = jnp.argmax(tokens, axis=-1)
    feats = h[jnp.arange(N), eot]
    return linear(feats, p['t_proj'], out_dtype=jnp.float32)


def clip_forward(x, tokenized_text, params, cfg):
    """Mirrors CLIP.forward(x, tokenized_text) -> logits_per_image."""
    image_feats = l2norm(encode_image(x, params, cfg))
    n_classes, n_prompts, T = tokenized_text.shape
    text_feats = l2norm(encode_text(tokenized_text.reshape(-1, T), params, cfg))
    text_feats = text_feats.reshape(n_classes, n_prompts, -1).mean(axis=1)
    text_feats = l2norm(text_feats)
    return clip_logits(image_feats, text_feats, params['logit_scale'])


# ---------------------------------------------------------------------------
# Deterministic synthetic parameter init (weights pre-cast bf16, LN/bias f32)
# ---------------------------------------------------------------------------
def init_params(key, cfg):
    keys = iter(jax.random.split(key, 64))

    def nrm(shape, std=0.02):
        return (std * jax.random.normal(next(keys), shape,
                                        jnp.float32)).astype(jnp.bfloat16)

    def init_block(width):
        return dict(
            ln1_g=jnp.ones((width,), jnp.float32),
            ln1_b=jnp.zeros((width,), jnp.float32),
            w_qkv=nrm((width, 3 * width)),
            b_qkv=jnp.zeros((3 * width,), jnp.float32),
            w_out=nrm((width, width)),
            b_out=jnp.zeros((width,), jnp.float32),
            ln2_g=jnp.ones((width,), jnp.float32),
            ln2_b=jnp.zeros((width,), jnp.float32),
            w_fc=nrm((width, 4 * width)),
            b_fc=jnp.zeros((4 * width,), jnp.float32),
            w_proj=nrm((4 * width, width)),
            b_proj=jnp.zeros((width,), jnp.float32),
        )

    P, C, S = cfg['patch'], 3, cfg['image_size']
    n_vis_tok = (S // P) * (S // P) + 1
    Dv, Dt, E = cfg['v_width'], cfg['t_width'], cfg['embed_dim']
    return dict(
        patch_w=nrm((C * P * P, Dv)),
        cls=nrm((Dv,)),
        v_pos=nrm((n_vis_tok, Dv)),
        ln_pre_g=jnp.ones((Dv,), jnp.float32),
        ln_pre_b=jnp.zeros((Dv,), jnp.float32),
        v_blocks=[init_block(Dv) for _ in range(cfg['v_layers'])],
        ln_post_g=jnp.ones((Dv,), jnp.float32),
        ln_post_b=jnp.zeros((Dv,), jnp.float32),
        v_proj=nrm((Dv, E)),
        tok_emb=nrm((cfg['vocab'], Dt)),
        t_pos=nrm((cfg['n_ctx'], Dt)),
        t_blocks=[init_block(Dt) for _ in range(cfg['t_layers'])],
        ln_final_g=jnp.ones((Dt,), jnp.float32),
        ln_final_b=jnp.zeros((Dt,), jnp.float32),
        t_proj=nrm((Dt, E)),
        logit_scale=float(jnp.log(1.0 / 0.07)),   # exp() hoisted into glue
    )


# ---------------------------------------------------------------------------
if __name__ == "__main__":
    cfg = dict(image_size=16, patch=8,
               v_width=32, v_heads=4, v_layers=2,
               t_width=32, t_heads=4, t_layers=2,
               vocab=32, n_ctx=8, embed_dim=32)

    key = jax.random.PRNGKey(0)
    k_img, k_tok, k_par = jax.random.split(key, 3)

    # image batch (NCHW, like the PyTorch module)
    B = 2
    x = jax.random.normal(k_img, (B, 3, cfg['image_size'], cfg['image_size']),
                          jnp.float32)

    # synthetic "tokenized_text": (n_classes, n_prompts, n_token);
    # templates[:1] in the module -> n_prompts = 1
    n_classes, n_prompts, T = 3, 1, cfg['n_ctx']
    body = jax.random.randint(k_tok, (n_classes, n_prompts, T - 3),
                              2, cfg['vocab'] - 2, dtype=jnp.int32)
    sot = jnp.full((n_classes, n_prompts, 1), 1, jnp.int32)
    eot = jnp.full((n_classes, n_prompts, 1), cfg['vocab'] - 1, jnp.int32)
    pad = jnp.zeros((n_classes, n_prompts, 1), jnp.int32)
    tokenized_text = jnp.concatenate([sot, body, eot, pad], axis=-1)

    # TODO(synk): real CLIP loads ViT-B/16 checkpoint weights, a BPE tokenizer,
    # optional LoRA adapters and gradient checkpointing; here parameters are
    # synthetic and only the forward math is reproduced.
    params = init_params(k_par, cfg)

    fwd = jax.jit(functools.partial(clip_forward, cfg=cfg))
    logits = fwd(x, tokenized_text, params)
    logits = jax.block_until_ready(logits)

    assert logits.shape == (B, n_classes), logits.shape
    assert bool(jnp.all(jnp.isfinite(logits)))
    print("KERNEL_OK")
</pallas_src>

<mosaic_0001>
module attributes {stable_mosaic.version = 11 : i64} {
  func.func @_linear_kernel(%arg0: i32, %arg1: i32, %arg2: i32, %arg3: memref<8x192xbf16, #tpu.memory_space<vmem>>, %arg4: memref<192x32xbf16, #tpu.memory_space<vmem>>, %arg5: memref<1x32xf32, #tpu.memory_space<vmem>>, %arg6: memref<8x32xbf16, #tpu.memory_space<vmem>>, %arg7: memref<8x32xf32, #tpu.memory_space<vmem>>) attributes {dimension_semantics = [#tpu.dimension_semantics<parallel>, #tpu.dimension_semantics<parallel>, #tpu.dimension_semantics<arbitrary>], iteration_bounds = array<i64: 1, 1, 1>, scalar_prefetch = 0 : i64, scratch_operands = 1 : i64, tpu.core_type = #tpu.core_type<tc>, window_params = [{transform_indices = @transform_0, window_bounds = array<i64: 8, 192>}, {transform_indices = @transform_1, window_bounds = array<i64: 192, 32>}, {transform_indices = @transform_2, window_bounds = array<i64: 1, 32>}, {transform_indices = @transform_3, window_bounds = array<i64: 8, 32>}]} {
    %c0_i32 = arith.constant 0 : i32
    %0 = arith.cmpi eq, %arg2, %c0_i32 : i32
    %1 = arith.extui %0 : i1 to i32
    %c0_i32_0 = arith.constant 0 : i32
    %2 = arith.cmpi ne, %1, %c0_i32_0 : i32
    scf.if %2 {
      %cst_10 = arith.constant 0.000000e+00 : f32
      %12 = vector.broadcast %cst_10 : f32 to vector<8x32xf32>
      %c0_11 = arith.constant 0 : index
      %c0_12 = arith.constant 0 : index
      %13 = vector.load %arg7[%c0_11, %c0_12] : memref<8x32xf32, #tpu.memory_space<vmem>>, vector<8x32xf32>
      tpu.vector_store %arg7[%c0_11, %c0_12], %12 {strides = array<i32>} : memref<8x32xf32, #tpu.memory_space<vmem>>, vector<8x32xf32>,
    } else {
    }
    %c0 = arith.constant 0 : index
    %c0_1 = arith.constant 0 : index
    %3 = vector.load %arg7[%c0, %c0_1] : memref<8x32xf32, #tpu.memory_space<vmem>>, vector<8x32xf32>
    %c0_2 = arith.constant 0 : index
    %c0_3 = arith.constant 0 : index
    %4 = vector.load %arg3[%c0_2, %c0_3] : memref<8x192xbf16, #tpu.memory_space<vmem>>, vector<8x192xbf16>
    %c0_4 = arith.constant 0 : index
    %c0_5 = arith.constant 0 : index
    %5 = vector.load %arg4[%c0_4, %c0_5] : memref<192x32xbf16, #tpu.memory_space<vmem>>, vector<192x32xbf16>
    %cst = arith.constant dense<0.000000e+00> : vector<8x32xf32>
    %6 = tpu.matmul %4, %5, %cst {dimension_numbers = #tpu.dot_dimension_numbers<[1], [0], [0], [1], [0, 0, 1, 1], [], []>} : vector<8x192xbf16>, vector<192x32xbf16>, vector<8x32xf32> -> vector<8x32xf32>
    %7 = arith.addf %3, %6 : vector<8x32xf32>
    %c0_6 = arith.constant 0 : index
    %c0_7 = arith.constant 0 : index
    %8 = vector.load %arg7[%c0_6, %c0_7] : memref<8x32xf32, #tpu.memory_space<vmem>>, vector<8x32xf32>
    tpu.vector_store %arg7[%c0_6, %c0_7], %7 {strides = array<i32>} : memref<8x32xf32, #tpu.memory_space<vmem>>, vector<8x32xf32>,
    %c0_i32_8 = arith.constant 0 : i32
    %9 = arith.cmpi eq, %arg2, %c0_i32_8 : i32
    %10 = arith.extui %9 : i1 to i32
    %c0_i32_9 = arith.constant 0 : i32
    %11 = arith.cmpi ne, %10, %c0_i32_9 : i32
    scf.if %11 {
      %c0_10 = arith.constant 0 : index
      %c0_11 = arith.constant 0 : index
      %12 = vector.load %arg7[%c0_10, %c0_11] : memref<8x32xf32, #tpu.memory_space<vmem>>, vector<8x32xf32>
      %c0_12 = arith.constant 0 : index
      %c0_13 = arith.constant 0 : index
      %13 = vector.load %arg5[%c0_12, %c0_13] : memref<1x32xf32, #tpu.memory_space<vmem>>, vector<1x32xf32>
      %14 = vector.broadcast %13 : vector<1x32xf32> to vector<8x32xf32>
      %15 = arith.addf %12, %14 : vector<8x32xf32>
      %16 = arith.truncf %15 : vector<8x32xf32> to vector<8x32xbf16>
      %c0_14 = arith.constant 0 : index
      %c0_15 = arith.constant 0 : index
      %17 = vector.load %arg6[%c0_14, %c0_15] : memref<8x32xbf16, #tpu.memory_space<vmem>>, vector<8x32xbf16>
      tpu.vector_store %arg6[%c0_14, %c0_15], %16 {strides = array<i32>} : memref<8x32xbf16, #tpu.memory_space<vmem>>, vector<8x32xbf16>,
    } else {
    }
    return
  }
  func.func @transform_0(%arg0: i32, %arg1: i32, %arg2: i32) -> (i32, i32) {
    %c0_i32 = arith.constant 0 : i32
    return %arg0, %arg2 : i32, i32
  }
  func.func @transform_1(%arg0: i32, %arg1: i32, %arg2: i32) -> (i32, i32) {
    %c0_i32 = arith.constant 0 : i32
    return %arg2, %arg1 : i32, i32
  }
  func.func @transform_2(%arg0: i32, %arg1: i32, %arg2: i32) -> (i32, i32) {
    %c0_i32 = arith.constant 0 : i32
    %c0_i32_0 = arith.constant 0 : i32
    return %c0_i32, %arg1 : i32, i32
  }
  func.func @transform_3(%arg0: i32, %arg1: i32, %arg2: i32) -> (i32, i32) {
    %c0_i32 = arith.constant 0 : i32
    return %arg0, %arg1 : i32, i32
  }
}

module attributes {stable_mosaic.version = 11 : i64} {
  func.func @_layernorm_kernel(%arg0: i32, %arg1: memref<16x32xbf16, #tpu.memory_space<vmem>>, %arg2: memref<1x32xf32, #tpu.memory_space<vmem>>, %arg3: memref<1x32xf32, #tpu.memory_space<vmem>>, %arg4: memref<16x32xbf16, #tpu.memory_space<vmem>>) attributes {dimension_semantics = [#tpu.dimension_semantics<parallel>], iteration_bounds = array<i64: 1>, scalar_prefetch = 0 : i64, scratch_operands = 0 : i64, tpu.core_type = #tpu.core_type<tc>, window_params = [{transform_indices = @transform_0, window_bounds = array<i64: 16, 32>}, {pipeline_mode = #tpu.pipeline_mode<synchronous>, transform_indices = @transform_1, window_bounds = array<i64: 1, 32>}, {pipeline_mode = #tpu.pipeline_mode<synchronous>, transform_indices = @transform_2, window_bounds = array<i64: 1, 32>}, {transform_indices = @transform_3, window_bounds = array<i64: 16, 32>}]} {
    %c0 = arith.constant 0 : index
    %c0_0 = arith.constant 0 : index
    %0 = vector.load %arg1[%c0, %c0_0] : memref<16x32xbf16, #tpu.memory_space<vmem>>, vector<16x32xbf16>
    %1 = arith.extf %0 : vector<16x32xbf16> to vector<16x32xf32>
    %cst = arith.constant dense<0.000000e+00> : vector<16xf32>
    %2 = vector.multi_reduction <add>, %1, %cst [1] : vector<16x32xf32> to vector<16xf32>
    %3 = vector.shape_cast %2 : vector<16xf32> to vector<16x1xf32>
    %cst_1 = arith.constant 3.200000e+01 : f32
    %4 = vector.broadcast %cst_1 : f32 to vector<16x1xf32>
    %5 = arith.divf %3, %4 : vector<16x1xf32>
    %6 = vector.broadcast %5 : vector<16x1xf32> to vector<16x32xf32>
    %7 = arith.subf %1, %6 : vector<16x32xf32>
    %8 = arith.mulf %7, %7 : vector<16x32xf32>
    %cst_2 = arith.constant dense<0.000000e+00> : vector<16xf32>
    %9 = vector.multi_reduction <add>, %8, %cst_2 [1] : vector<16x32xf32> to vector<16xf32>
    %10 = vector.shape_cast %9 : vector<16xf32> to vector<16x1xf32>
    %cst_3 = arith.constant 3.200000e+01 : f32
    %11 = vector.broadcast %cst_3 : f32 to vector<16x1xf32>
    %12 = arith.divf %10, %11 : vector<16x1xf32>
    %13 = vector.broadcast %5 : vector<16x1xf32> to vector<16x32xf32>
    %14 = arith.subf %1, %13 : vector<16x32xf32>
    %cst_4 = arith.constant 9.99999974E-6 : f32
    %15 = vector.broadcast %cst_4 : f32 to vector<16x1xf32>
    %16 = arith.addf %12, %15 : vector<16x1xf32>
    %17 = math.rsqrt %16 : vector<16x1xf32>
    %18 = vector.broadcast %17 : vector<16x1xf32> to vector<16x32xf32>
    %19 = arith.mulf %14, %18 : vector<16x32xf32>
    %c0_5 = arith.constant 0 : index
    %c0_6 = arith.constant 0 : index
    %20 = vector.load %arg2[%c0_5, %c0_6] : memref<1x32xf32, #tpu.memory_space<vmem>>, vector<1x32xf32>
    %21 = vector.broadcast %20 : vector<1x32xf32> to vector<16x32xf32>
    %22 = arith.mulf %19, %21 : vector<16x32xf32>
    %c0_7 = arith.constant 0 : index
    %c0_8 = arith.constant 0 : index
    %23 = vector.load %arg3[%c0_7, %c0_8] : memref<1x32xf32, #tpu.memory_space<vmem>>, vector<1x32xf32>
    %24 = vector.broadcast %23 : vector<1x32xf32> to vector<16x32xf32>
    %25 = arith.addf %22, %24 : vector<16x32xf32>
    %26 = arith.truncf %25 : vector<16x32xf32> to vector<16x32xbf16>
    %c0_9 = arith.constant 0 : index
    %c0_10 = arith.constant 0 : index
    %27 = vector.load %arg4[%c0_9, %c0_10] : memref<16x32xbf16, #tpu.memory_space<vmem>>, vector<16x32xbf16>
    tpu.vector_store %arg4[%c0_9, %c0_10], %26 {strides = array<i32>} : memref<16x32xbf16, #tpu.memory_space<vmem>>, vector<16x32xbf16>,
    return
  }
  func.func @transform_0(%arg0: i32) -> (i32, i32) {
    %c0_i32 = arith.constant 0 : i32
    %c0_i32_0 = arith.constant 0 : i32
    return %arg0, %c0_i32 : i32, i32
  }
  func.func @transform_1(%arg0: i32) -> (i32, i32) {
    %c0_i32 = arith.constant 0 : i32
    %c0_i32_0 = arith.constant 0 : i32
    %c0_i32_1 = arith.constant 0 : i32
    return %c0_i32, %c0_i32_0 : i32, i32
  }
  func.func @transform_2(%arg0: i32) -> (i32, i32) {
    %c0_i32 = arith.constant 0 : i32
    %c0_i32_0 = arith.constant 0 : i32
    %c0_i32_1 = arith.constant 0 : i32
    return %c0_i32, %c0_i32_0 : i32, i32
  }
  func.func @transform_3(%arg0: i32) -> (i32, i32) {
    %c0_i32 = arith.constant 0 : i32
    %c0_i32_0 = arith.constant 0 : i32
    return %arg0, %c0_i32 : i32, i32
  }
}

module attributes {stable_mosaic.version = 11 : i64} {
  func.func @_linear_kernel(%arg0: i32, %arg1: i32, %arg2: i32, %arg3: memref<16x32xbf16, #tpu.memory_space<vmem>>, %arg4: memref<32x96xbf16, #tpu.memory_space<vmem>>, %arg5: memref<1x96xf32, #tpu.memory_space<vmem>>, %arg6: memref<16x96xbf16, #tpu.memory_space<vmem>>, %arg7: memref<16x96xf32, #tpu.memory_space<vmem>>) attributes {dimension_semantics = [#tpu.dimension_semantics<parallel>, #tpu.dimension_semantics<parallel>, #tpu.dimension_semantics<arbitrary>], iteration_bounds = array<i64: 1, 1, 1>, scalar_prefetch = 0 : i64, scratch_operands = 1 : i64, tpu.core_type = #tpu.core_type<tc>, window_params = [{transform_indices = @transform_0, window_bounds = array<i64: 16, 32>}, {transform_indices = @transform_1, window_bounds = array<i64: 32, 96>}, {transform_indices = @transform_2, window_bounds = array<i64: 1, 96>}, {transform_indices = @transform_3, window_bounds = array<i64: 16, 96>}]} {
    %c0_i32 = arith.constant 0 : i32
    %0 = arith.cmpi eq, %arg2, %c0_i32 : i32
    %1 = arith.extui %0 : i1 to i32
    %c0_i32_0 = arith.constant 0 : i32
    %2 = arith.cmpi ne, %1, %c0_i32_0 : i32
    scf.if %2 {
      %cst_10 = arith.constant 0.000000e+00 : f32
      %12 = vector.broadcast %cst_10 : f32 to vector<16x96xf32>
      %c0_11 = arith.constant 0 : index
      %c0_12 = arith.constant 0 : index
      %13 = vector.load %arg7[%c0_11, %c0_12] : memref<16x96xf32, #tpu.memory_space<vmem>>, vector<16x96xf32>
      tpu.vector_store %arg7[%c0_11, %c0_12], %12 {strides = array<i32>} : memref<16x96xf32, #tpu.memory_space<vmem>>, vector<16x96xf32>,
    } else {
    }
    %c0 = arith.constant 0 : index
    %c0_1 = arith.constant 0 : index
    %3 = vector.load %arg7[%c0, %c0_1] : memref<16x96xf32, #tpu.memory_space<vmem>>, vector<16x96xf32>
    %c0_2 = arith.constant 0 : index
    %c0_3 = arith.constant 0 : index
    %4 = vector.load %arg3[%c0_2, %c0_3] : memref<16x32xbf16, #tpu.memory_space<vmem>>, vector<16x32xbf16>
    %c0_4 = arith.constant 0 : index
    %c0_5 = arith.constant 0 : index
    %5 = vector.load %arg4[%c0_4, %c0_5] : memref<32x96xbf16, #tpu.memory_space<vmem>>, vector<32x96xbf16>
    %cst = arith.constant dense<0.000000e+00> : vector<16x96xf32>
    %6 = tpu.matmul %4, %5, %cst {dimension_numbers = #tpu.dot_dimension_numbers<[1], [0], [0], [1], [0, 0, 1, 1], [], []>} : vector<16x32xbf16>, vector<32x96xbf16>, vector<16x96xf32> -> vector<16x96xf32>
    %7 = arith.addf %3, %6 : vector<16x96xf32>
    %c0_6 = arith.constant 0 : index
    %c0_7 = arith.constant 0 : index
    %8 = vector.load %arg7[%c0_6, %c0_7] : memref<16x96xf32, #tpu.memory_space<vmem>>, vector<16x96xf32>
    tpu.vector_store %arg7[%c0_6, %c0_7], %7 {strides = array<i32>} : memref<16x96xf32, #tpu.memory_space<vmem>>, vector<16x96xf32>,
    %c0_i32_8 = arith.constant 0 : i32
    %9 = arith.cmpi eq, %arg2, %c0_i32_8 : i32
    %10 = arith.extui %9 : i1 to i32
    %c0_i32_9 = arith.constant 0 : i32
    %11 = arith.cmpi ne, %10, %c0_i32_9 : i32
    scf.if %11 {
      %c0_10 = arith.constant 0 : index
      %c0_11 = arith.constant 0 : index
      %12 = vector.load %arg7[%c0_10, %c0_11] : memref<16x96xf32, #tpu.memory_space<vmem>>, vector<16x96xf32>
      %c0_12 = arith.constant 0 : index
      %c0_13 = arith.constant 0 : index
      %13 = vector.load %arg5[%c0_12, %c0_13] : memref<1x96xf32, #tpu.memory_space<vmem>>, vector<1x96xf32>
      %14 = vector.broadcast %13 : vector<1x96xf32> to vector<16x96xf32>
      %15 = arith.addf %12, %14 : vector<16x96xf32>
      %16 = arith.truncf %15 : vector<16x96xf32> to vector<16x96xbf16>
      %c0_14 = arith.constant 0 : index
      %c0_15 = arith.constant 0 : index
      %17 = vector.load %arg6[%c0_14, %c0_15] : memref<16x96xbf16, #tpu.memory_space<vmem>>, vector<16x96xbf16>
      tpu.vector_store %arg6[%c0_14, %c0_15], %16 {strides = array<i32>} : memref<16x96xbf16, #tpu.memory_space<vmem>>, vector<16x96xbf16>,
    } else {
    }
    return
  }
  func.func @transform_0(%arg0: i32, %arg1: i32, %arg2: i32) -> (i32, i32) {
    %c0_i32 = arith.constant 0 : i32
    return %arg0, %arg2 : i32, i32
  }
  func.func @transform_1(%arg0: i32, %arg1: i32, %arg2: i32) -> (i32, i32) {
    %c0_i32 = arith.constant 0 : i32
    return %arg2, %arg1 : i32, i32
  }
  func.func @transform_2(%arg0: i32, %arg1: i32, %arg2: i32) -> (i32, i32) {
    %c0_i32 = arith.constant 0 : i32
    %c0_i32_0 = arith.constant 0 : i32
    return %c0_i32, %arg1 : i32, i32
  }
  func.func @transform_3(%arg0: i32, %arg1: i32, %arg2: i32) -> (i32, i32) {
    %c0_i32 = arith.constant 0 : i32
    return %arg0, %arg1 : i32, i32
  }
}

module attributes {stable_mosaic.version = 11 : i64} {
  func.func @_flash_attn_kernel(%arg0: i32, %arg1: i32, %arg2: i32, %arg3: memref<8x8x8xbf16, #tpu.memory_space<vmem>>, %arg4: memref<8x8x8xbf16, #tpu.memory_space<vmem>>, %arg5: memref<8x8x8xbf16, #tpu.memory_space<vmem>>, %arg6: memref<8x8x8xbf16, #tpu.memory_space<vmem>>, %arg7: memref<8x8x1xf32, #tpu.memory_space<vmem>>, %arg8: memref<8x8x1xf32, #tpu.memory_space<vmem>>, %arg9: memref<8x8x8xf32, #tpu.memory_space<vmem>>) attributes {dimension_semantics = [#tpu.dimension_semantics<parallel>, #tpu.dimension_semantics<parallel>, #tpu.dimension_semantics<arbitrary>], iteration_bounds = array<i64: 1, 1, 1>, scalar_prefetch = 0 : i64, scratch_operands = 3 : i64, tpu.core_type = #tpu.core_type<tc>, window_params = [{transform_indices = @transform_0, window_bounds = array<i64: 8, 8, 8>}, {transform_indices = @transform_1, window_bounds = array<i64: 8, 8, 8>}, {transform_indices = @transform_2, window_bounds = array<i64: 8, 8, 8>}, {transform_indices = @transform_3, window_bounds = array<i64: 8, 8, 8>}]} {
    %c0_i32 = arith.constant 0 : i32
    %0 = arith.cmpi eq, %arg2, %c0_i32 : i32
    %1 = arith.extui %0 : i1 to i32
    %c0_i32_0 = arith.constant 0 : i32
    %2 = arith.cmpi ne, %1, %c0_i32_0 : i32
    scf.if %2 {
      %cst_34 = arith.constant -1.000000e+30 : f32
      %43 = vector.broadcast %cst_34 : f32 to vector<8x8x1xf32>
      %c0_35 = arith.constant 0 : index
      %c0_36 = arith.constant 0 : index
      %c0_37 = arith.constant 0 : index
      %44 = vector.load %arg7[%c0_35, %c0_36, %c0_37] : memref<8x8x1xf32, #tpu.memory_space<vmem>>, vector<8x8x1xf32>
      tpu.vector_store %arg7[%c0_35, %c0_36, %c0_37], %43 {strides = array<i32>} : memref<8x8x1xf32, #tpu.memory_space<vmem>>, vector<8x8x1xf32>,
      %cst_38 = arith.constant 0.000000e+00 : f32
      %45 = vector.broadcast %cst_38 : f32 to vector<8x8x1xf32>
      %c0_39 = arith.constant 0 : index
      %c0_40 = arith.constant 0 : index
      %c0_41 = arith.constant 0 : index
      %46 = vector.load %arg8[%c0_39, %c0_40, %c0_41] : memref<8x8x1xf32, #tpu.memory_space<vmem>>, vector<8x8x1xf32>
      tpu.vector_store %arg8[%c0_39, %c0_40, %c0_41], %45 {strides = array<i32>} : memref<8x8x1xf32, #tpu.memory_space<vmem>>, vector<8x8x1xf32>,
      %cst_42 = arith.constant 0.000000e+00 : f32
      %47 = vector.broadcast %cst_42 : f32 to vector<8x8x8xf32>
      %c0_43 = arith.constant 0 : index
      %c0_44 = arith.constant 0 : index
      %c0_45 = arith.constant 0 : index
      %48 = vector.load %arg9[%c0_43, %c0_44, %c0_45] : memref<8x8x8xf32, #tpu.memory_space<vmem>>, vector<8x8x8xf32>
      tpu.vector_store %arg9[%c0_43, %c0_44, %c0_45], %47 {strides = array<i32>} : memref<8x8x8xf32, #tpu.memory_space<vmem>>, vector<8x8x8xf32>,
    } else {
    }
    %c0 = arith.constant 0 : index
    %c0_1 = arith.constant 0 : index
    %c0_2 = arith.constant 0 : index
    %3 = vector.load %arg3[%c0, %c0_1, %c0_2] : memref<8x8x8xbf16, #tpu.memory_space<vmem>>, vector<8x8x8xbf16>
    %cst = arith.constant 3.535160e-01 : bf16
    %4 = vector.broadcast %cst : bf16 to vector<8x8x8xbf16>
    %5 = arith.mulf %3, %4 : vector<8x8x8xbf16>
    %c0_3 = arith.constant 0 : index
    %c0_4 = arith.constant 0 : index
    %c0_5 = arith.constant 0 : index
    %6 = vector.load %arg4[%c0_3, %c0_4, %c0_5] : memref<8x8x8xbf16, #tpu.memory_space<vmem>>, vector<8x8x8xbf16>
    "tpu.trace_start"() <{level = 10 : i32, message = "bqd,bkd->bqk"}> : () -> ()
    %cst_6 = arith.constant dense<0.000000e+00> : vector<8x8x8xf32>
    %7 = tpu.matmul %5, %6, %cst_6 {dimension_numbers = #tpu.dot_dimension_numbers<[2], [2], [1], [1], [0, 0, 0, 1, 1, 1], [0], [0]>} : vector<8x8x8xbf16>, vector<8x8x8xbf16>, vector<8x8x8xf32> -> vector<8x8x8xf32>
    "tpu.trace_stop"() : () -> ()
    %c8_i32 = arith.constant 8 : i32
    %8 = arith.muli %arg2, %c8_i32 : i32
    %9 = tpu.iota {dimensions = array<i32: 2>} : vector<8x8x8xi32>
    %10 = vector.broadcast %8 : i32 to vector<8x8x8xi32>
    %11 = arith.addi %10, %9 : vector<8x8x8xi32>
    %c5_i32 = arith.constant 5 : i32
    %12 = vector.broadcast %c5_i32 : i32 to vector<8x8x8xi32>
    %13 = arith.cmpi slt, %11, %12 : vector<8x8x8xi32>
    %cst_7 = arith.constant -1.000000e+30 : f32
    %14 = vector.broadcast %cst_7 : f32 to vector<8x8x8xf32>
    %15 = arith.select %13, %7, %14 : vector<8x8x8xi1>, vector<8x8x8xf32>
    %c0_8 = arith.constant 0 : index
    %c0_9 = arith.constant 0 : index
    %c0_10 = arith.constant 0 : index
    %16 = vector.load %arg7[%c0_8, %c0_9, %c0_10] : memref<8x8x1xf32, #tpu.memory_space<vmem>>, vector<8x8x1xf32>
    %cst_11 = arith.constant dense<0xFF800000> : vector<8x8xf32>
    %17 = vector.multi_reduction <maximumf>, %15, %cst_11 [2] : vector<8x8x8xf32> to vector<8x8xf32>
    %18 = vector.shape_cast %17 : vector<8x8xf32> to vector<8x8x1xf32>
    %19 = arith.maximumf %16, %18 : vector<8x8x1xf32>
    %20 = arith.subf %16, %19 : vector<8x8x1xf32>
    %21 = math.exp %20 : vector<8x8x1xf32>
    %22 = vector.broadcast %19 : vector<8x8x1xf32> to vector<8x8x8xf32>
    %23 = arith.subf %15, %22 : vector<8x8x8xf32>
    %24 = math.exp %23 : vector<8x8x8xf32>
    %c0_12 = arith.constant 0 : index
    %c0_13 = arith.constant 0 : index
    %c0_14 = arith.constant 0 : index
    %25 = vector.load %arg8[%c0_12, %c0_13, %c0_14] : memref<8x8x1xf32, #tpu.memory_space<vmem>>, vector<8x8x1xf32>
    %26 = arith.mulf %21, %25 : vector<8x8x1xf32>
    %cst_15 = arith.constant dense<0.000000e+00> : vector<8x8xf32>
    %27 = vector.multi_reduction <add>, %24, %cst_15 [2] : vector<8x8x8xf32> to vector<8x8xf32>
    %28 = vector.shape_cast %27 : vector<8x8xf32> to vector<8x8x1xf32>
    %29 = arith.addf %26, %28 : vector<8x8x1xf32>
    %c0_16 = arith.constant 0 : index
    %c0_17 = arith.constant 0 : index
    %c0_18 = arith.constant 0 : index
    %30 = vector.load %arg8[%c0_16, %c0_17, %c0_18] : memref<8x8x1xf32, #tpu.memory_space<vmem>>, vector<8x8x1xf32>
    tpu.vector_store %arg8[%c0_16, %c0_17, %c0_18], %29 {strides = array<i32>} : memref<8x8x1xf32, #tpu.memory_space<vmem>>, vector<8x8x1xf32>,
    %c0_19 = arith.constant 0 : index
    %c0_20 = arith.constant 0 : index
    %c0_21 = arith.constant 0 : index
    %31 = vector.load %arg9[%c0_19, %c0_20, %c0_21] : memref<8x8x8xf32, #tpu.memory_space<vmem>>, vector<8x8x8xf32>
    %32 = vector.broadcast %21 : vector<8x8x1xf32> to vector<8x8x8xf32>
    %33 = arith.mulf %32, %31 : vector<8x8x8xf32>
    %34 = arith.truncf %24 : vector<8x8x8xf32> to vector<8x8x8xbf16>
    %c0_22 = arith.constant 0 : index
    %c0_23 = arith.constant 0 : index
    %c0_24 = arith.constant 0 : index
    %35 = vector.load %arg5[%c0_22, %c0_23, %c0_24] : memref<8x8x8xbf16, #tpu.memory_space<vmem>>, vector<8x8x8xbf16>
    "tpu.trace_start"() <{level = 10 : i32, message = "bqk,bkd->bqd"}> : () -> ()
    %cst_25 = arith.constant dense<0.000000e+00> : vector<8x8x8xf32>
    %36 = tpu.matmul %34, %35, %cst_25 {dimension_numbers = #tpu.dot_dimension_numbers<[2], [1], [1], [2], [0, 0, 0, 1, 1, 2], [0], [0]>} : vector<8x8x8xbf16>, vector<8x8x8xbf16>, vector<8x8x8xf32> -> vector<8x8x8xf32>
    "tpu.trace_stop"() : () -> ()
    %37 = arith.addf %33, %36 : vector<8x8x8xf32>
    %c0_26 = arith.constant 0 : index
    %c0_27 = arith.constant 0 : index
    %c0_28 = arith.constant 0 : index
    %38 = vector.load %arg9[%c0_26, %c0_27, %c0_28] : memref<8x8x8xf32, #tpu.memory_space<vmem>>, vector<8x8x8xf32>
    tpu.vector_store %arg9[%c0_26, %c0_27, %c0_28], %37 {strides = array<i32>} : memref<8x8x8xf32, #tpu.memory_space<vmem>>, vector<8x8x8xf32>,
    %c0_29 = arith.constant 0 : index
    %c0_30 = arith.constant 0 : index
    %c0_31 = arith.constant 0 : index
    %39 = vector.load %arg7[%c0_29, %c0_30, %c0_31] : memref<8x8x1xf32, #tpu.memory_space<vmem>>, vector<8x8x1xf32>
    tpu.vector_store %arg7[%c0_29, %c0_30, %c0_31], %19 {strides = array<i32>} : memref<8x8x1xf32, #tpu.memory_space<vmem>>, vector<8x8x1xf32>,
    %c0_i32_32 = arith.constant 0 : i32
    %40 = arith.cmpi eq, %arg2, %c0_i32_32 : i32
    %41 = arith.extui %40 : i1 to i32
    %c0_i32_33 = arith.constant 0 : i32
    %42 = arith.cmpi ne, %41, %c0_i32_33 : i32
    scf.if %42 {
      %c0_34 = arith.constant 0 : index
      %c0_35 = arith.constant 0 : index
      %c0_36 = arith.constant 0 : index
      %43 = vector.load %arg9[%c0_34, %c0_35, %c0_36] : memref<8x8x8xf32, #tpu.memory_space<vmem>>, vector<8x8x8xf32>
      %c0_37 = arith.constant 0 : index
      %c0_38 = arith.constant 0 : index
      %c0_39 = arith.constant 0 : index
      %44 = vector.load %arg8[%c0_37, %c0_38, %c0_39] : memref<8x8x1xf32, #tpu.memory_space<vmem>>, vector<8x8x1xf32>
      %45 = tpu.reciprocal %44 {approx = true} : vector<8x8x1xf32> -> vector<8x8x1xf32>
      %46 = vector.broadcast %45 : vector<8x8x1xf32> to vector<8x8x8xf32>
      %47 = arith.mulf %43, %46 : vector<8x8x8xf32>
      %48 = arith.truncf %47 : vector<8x8x8xf32> to vector<8x8x8xbf16>
      %c0_40 = arith.constant 0 : index
      %c0_41 = arith.constant 0 : index
      %c0_42 = arith.constant 0 : index
      %49 = vector.load %arg6[%c0_40, %c0_41, %c0_42] : memref<8x8x8xbf16, #tpu.memory_space<vmem>>, vector<8x8x8xbf16>
      tpu.vector_store %arg6[%c0_40, %c0_41, %c0_42], %48 {strides = array<i32>} : memref<8x8x8xbf16, #tpu.memory_space<vmem>>, vector<8x8x8xbf16>,
    } else {
    }
    return
  }
  func.func @transform_0(%arg0: i32, %arg1: i32, %arg2: i32) -> (i32, i32, i32) {
    %c0_i32 = arith.constant 0 : i32
    %c0_i32_0 = arith.constant 0 : i32
    return %arg0, %arg1, %c0_i32 : i32, i32, i32
  }
  func.func @transform_1(%arg0: i32, %arg1: i32, %arg2: i32) -> (i32, i32, i32) {
    %c0_i32 = arith.constant 0 : i32
    %c0_i32_0 = arith.constant 0 : i32
    return %arg0, %arg2, %c0_i32 : i32, i32, i32
  }
  func.func @transform_2(%arg0: i32, %arg1: i32, %arg2: i32) -> (i32, i32, i32) {
    %c0_i32 = arith.constant 0 : i32
    %c0_i32_0 = arith.constant 0 : i32
    return %arg0, %arg2, %c0_i32 : i32, i32, i32
  }
  func.func @transform_3(%arg0: i32, %arg1: i32, %arg2: i32) -> (i32, i32, i32) {
    %c0_i32 = arith.constant 0 : i32
    %c0_i32_0 = arith.constant 0 : i32
    return %arg0, %arg1, %c0_i32 : i32, i32, i32
  }
}

module attributes {stable_mosaic.version = 11 : i64} {
  func.func @_linear_kernel(%arg0: i32, %arg1: i32, %arg2: i32, %arg3: memref<16x32xbf16, #tpu.memory_space<vmem>>, %arg4: memref<32x32xbf16, #tpu.memory_space<vmem>>, %arg5: memref<1x32xf32, #tpu.memory_space<vmem>>, %arg6: memref<16x32xbf16, #tpu.memory_space<vmem>>, %arg7: memref<16x32xbf16, #tpu.memory_space<vmem>>, %arg8: memref<16x32xf32, #tpu.memory_space<vmem>>) attributes {dimension_semantics = [#tpu.dimension_semantics<parallel>, #tpu.dimension_semantics<parallel>, #tpu.dimension_semantics<arbitrary>], iteration_bounds = array<i64: 1, 1, 1>, scalar_prefetch = 0 : i64, scratch_operands = 1 : i64, tpu.core_type = #tpu.core_type<tc>, window_params = [{transform_indices = @transform_0, window_bounds = array<i64: 16, 32>}, {transform_indices = @transform_1, window_bounds = array<i64: 32, 32>}, {transform_indices = @transform_2, window_bounds = array<i64: 1, 32>}, {transform_indices = @transform_3, window_bounds = array<i64: 16, 32>}, {transform_indices = @transform_4, window_bounds = array<i64: 16, 32>}]} {
    %c0_i32 = arith.constant 0 : i32
    %0 = arith.cmpi eq, %arg2, %c0_i32 : i32
    %1 = arith.extui %0 : i1 to i32
    %c0_i32_0 = arith.constant 0 : i32
    %2 = arith.cmpi ne, %1, %c0_i32_0 : i32
    scf.if %2 {
      %cst_10 = arith.constant 0.000000e+00 : f32
      %12 = vector.broadcast %cst_10 : f32 to vector<16x32xf32>
      %c0_11 = arith.constant 0 : index
      %c0_12 = arith.constant 0 : index
      %13 = vector.load %arg8[%c0_11, %c0_12] : memref<16x32xf32, #tpu.memory_space<vmem>>, vector<16x32xf32>
      tpu.vector_store %arg8[%c0_11, %c0_12], %12 {strides = array<i32>} : memref<16x32xf32, #tpu.memory_space<vmem>>, vector<16x32xf32>,
    } else {
    }
    %c0 = arith.constant 0 : index
    %c0_1 = arith.constant 0 : index
    %3 = vector.load %arg8[%c0, %c0_1] : memref<16x32xf32, #tpu.memory_space<vmem>>, vector<16x32xf32>
    %c0_2 = arith.constant 0 : index
    %c0_3 = arith.constant 0 : index
    %4 = vector.load %arg3[%c0_2, %c0_3] : memref<16x32xbf16, #tpu.memory_space<vmem>>, vector<16x32xbf16>
    %c0_4 = arith.constant 0 : index
    %c0_5 = arith.constant 0 : index
    %5 = vector.load %arg4[%c0_4, %c0_5] : memref<32x32xbf16, #tpu.memory_space<vmem>>, vector<32x32xbf16>
    %cst = arith.constant dense<0.000000e+00> : vector<16x32xf32>
    %6 = tpu.matmul %4, %5, %cst {dimension_numbers = #tpu.dot_dimension_numbers<[1], [0], [0], [1], [0, 0, 1, 1], [], []>} : vector<16x32xbf16>, vector<32x32xbf16>, vector<16x32xf32> -> vector<16x32xf32>
    %7 = arith.addf %3, %6 : vector<16x32xf32>
    %c0_6 = arith.constant 0 : index
    %c0_7 = arith.constant 0 : index
    %8 = vector.load %arg8[%c0_6, %c0_7] : memref<16x32xf32, #tpu.memory_space<vmem>>, vector<16x32xf32>
    tpu.vector_store %arg8[%c0_6, %c0_7], %7 {strides = array<i32>} : memref<16x32xf32, #tpu.memory_space<vmem>>, vector<16x32xf32>,
    %c0_i32_8 = arith.constant 0 : i32
    %9 = arith.cmpi eq, %arg2, %c0_i32_8 : i32
    %10 = arith.extui %9 : i1 to i32
    %c0_i32_9 = arith.constant 0 : i32
    %11 = arith.cmpi ne, %10, %c0_i32_9 : i32
    scf.if %11 {
      %c0_10 = arith.constant 0 : index
      %c0_11 = arith.constant 0 : index
      %12 = vector.load %arg8[%c0_10, %c0_11] : memref<16x32xf32, #tpu.memory_space<vmem>>, vector<16x32xf32>
      %c0_12 = arith.constant 0 : index
      %c0_13 = arith.constant 0 : index
      %13 = vector.load %arg5[%c0_12, %c0_13] : memref<1x32xf32, #tpu.memory_space<vmem>>, vector<1x32xf32>
      %14 = vector.broadcast %13 : vector<1x32xf32> to vector<16x32xf32>
      %15 = arith.addf %12, %14 : vector<16x32xf32>
      %c0_14 = arith.constant 0 : index
      %c0_15 = arith.constant 0 : index
      %16 = vector.load %arg6[%c0_14, %c0_15] : memref<16x32xbf16, #tpu.memory_space<vmem>>, vector<16x32xbf16>
      %17 = arith.extf %16 : vector<16x32xbf16> to vector<16x32xf32>
      %18 = arith.addf %15, %17 : vector<16x32xf32>
      %19 = arith.truncf %18 : vector<16x32xf32> to vector<16x32xbf16>
      %c0_16 = arith.constant 0 : index
      %c0_17 = arith.constant 0 : index
      %20 = vector.load %arg7[%c0_16, %c0_17] : memref<16x32xbf16, #tpu.memory_space<vmem>>, vector<16x32xbf16>
      tpu.vector_store %arg7[%c0_16, %c0_17], %19 {strides = array<i32>} : memref<16x32xbf16, #tpu.memory_space<vmem>>, vector<16x32xbf16>,
    } else {
    }
    return
  }
  func.func @transform_0(%arg0: i32, %arg1: i32, %arg2: i32) -> (i32, i32) {
    %c0_i32 = arith.constant 0 : i32
    return %arg0, %arg2 : i32, i32
  }
  func.func @transform_1(%arg0: i32, %arg1: i32, %arg2: i32) -> (i32, i32) {
    %c0_i32 = arith.constant 0 : i32
    return %arg2, %arg1 : i32, i32
  }
  func.func @transform_2(%arg0: i32, %arg1: i32, %arg2: i32) -> (i32, i32) {
    %c0_i32 = arith.constant 0 : i32
    %c0_i32_0 = arith.constant 0 : i32
    return %c0_i32, %arg1 : i32, i32
  }
  func.func @transform_3(%arg0: i32, %arg1: i32, %arg2: i32) -> (i32, i32) {
    %c0_i32 = arith.constant 0 : i32
    return %arg0, %arg1 : i32, i32
  }
  func.func @transform_4(%arg0: i32, %arg1: i32, %arg2: i32) -> (i32, i32) {
    %c0_i32 = arith.constant 0 : i32
    return %arg0, %arg1 : i32, i32
  }
}

module attributes {stable_mosaic.version = 11 : i64} {
  func.func @_linear_kernel(%arg0: i32, %arg1: i32, %arg2: i32, %arg3: memref<16x128xbf16, #tpu.memory_space<vmem>>, %arg4: memref<128x32xbf16, #tpu.memory_space<vmem>>, %arg5: memref<1x32xf32, #tpu.memory_space<vmem>>, %arg6: memref<16x32xbf16, #tpu.memory_space<vmem>>, %arg7: memref<16x32xbf16, #tpu.memory_space<vmem>>, %arg8: memref<16x32xf32, #tpu.memory_space<vmem>>) attributes {dimension_semantics = [#tpu.dimension_semantics<parallel>, #tpu.dimension_semantics<parallel>, #tpu.dimension_semantics<arbitrary>], iteration_bounds = array<i64: 1, 1, 1>, scalar_prefetch = 0 : i64, scratch_operands = 1 : i64, tpu.core_type = #tpu.core_type<tc>, window_params = [{transform_indices = @transform_0, window_bounds = array<i64: 16, 128>}, {transform_indices = @transform_1, window_bounds = array<i64: 128, 32>}, {transform_indices = @transform_2, window_bounds = array<i64: 1, 32>}, {transform_indices = @transform_3, window_bounds = array<i64: 16, 32>}, {transform_indices = @transform_4, window_bounds = array<i64: 16, 32>}]} {
    %c0_i32 = arith.constant 0 : i32
    %0 = arith.cmpi eq, %arg2, %c0_i32 : i32
    %1 = arith.extui %0 : i1 to i32
    %c0_i32_0 = arith.constant 0 : i32
    %2 = arith.cmpi ne, %1, %c0_i32_0 : i32
    scf.if %2 {
      %cst_10 = arith.constant 0.000000e+00 : f32
      %12 = vector.broadcast %cst_10 : f32 to vector<16x32xf32>
      %c0_11 = arith.constant 0 : index
      %c0_12 = arith.constant 0 : index
      %13 = vector.load %arg8[%c0_11, %c0_12] : memref<16x32xf32, #tpu.memory_space<vmem>>, vector<16x32xf32>
      tpu.vector_store %arg8[%c0_11, %c0_12], %12 {strides = array<i32>} : memref<16x32xf32, #tpu.memory_space<vmem>>, vector<16x32xf32>,
    } else {
    }
    %c0 = arith.constant 0 : index
    %c0_1 = arith.constant 0 : index
    %3 = vector.load %arg8[%c0, %c0_1] : memref<16x32xf32, #tpu.memory_space<vmem>>, vector<16x32xf32>
    %c0_2 = arith.constant 0 : index
    %c0_3 = arith.constant 0 : index
    %4 = vector.load %arg3[%c0_2, %c0_3] : memref<16x128xbf16, #tpu.memory_space<vmem>>, vector<16x128xbf16>
    %c0_4 = arith.constant 0 : index
    %c0_5 = arith.constant 0 : index
    %5 = vector.load %arg4[%c0_4, %c0_5] : memref<128x32xbf16, #tpu.memory_space<vmem>>, vector<128x32xbf16>
    %cst = arith.constant dense<0.000000e+00> : vector<16x32xf32>
    %6 = tpu.matmul %4, %5, %cst {dimension_numbers = #tpu.dot_dimension_numbers<[1], [0], [0], [1], [0, 0, 1, 1], [], []>} : vector<16x128xbf16>, vector<128x32xbf16>, vector<16x32xf32> -> vector<16x32xf32>
    %7 = arith.addf %3, %6 : vector<16x32xf32>
    %c0_6 = arith.constant 0 : index
    %c0_7 = arith.constant 0 : index
    %8 = vector.load %arg8[%c0_6, %c0_7] : memref<16x32xf32, #tpu.memory_space<vmem>>, vector<16x32xf32>
    tpu.vector_store %arg8[%c0_6, %c0_7], %7 {strides = array<i32>} : memref<16x32xf32, #tpu.memory_space<vmem>>, vector<16x32xf32>,
    %c0_i32_8 = arith.constant 0 : i32
    %9 = arith.cmpi eq, %arg2, %c0_i32_8 : i32
    %10 = arith.extui %9 : i1 to i32
    %c0_i32_9 = arith.constant 0 : i32
    %11 = arith.cmpi ne, %10, %c0_i32_9 : i32
    scf.if %11 {
      %c0_10 = arith.constant 0 : index
      %c0_11 = arith.constant 0 : index
      %12 = vector.load %arg8[%c0_10, %c0_11] : memref<16x32xf32, #tpu.memory_space<vmem>>, vector<16x32xf32>
      %c0_12 = arith.constant 0 : index
      %c0_13 = arith.constant 0 : index
      %13 = vector.load %arg5[%c0_12, %c0_13] : memref<1x32xf32, #tpu.memory_space<vmem>>, vector<1x32xf32>
      %14 = vector.broadcast %13 : vector<1x32xf32> to vector<16x32xf32>
      %15 = arith.addf %12, %14 : vector<16x32xf32>
      %c0_14 = arith.constant 0 : index
      %c0_15 = arith.constant 0 : index
      %16 = vector.load %arg6[%c0_14, %c0_15] : memref<16x32xbf16, #tpu.memory_space<vmem>>, vector<16x32xbf16>
      %17 = arith.extf %16 : vector<16x32xbf16> to vector<16x32xf32>
      %18 = arith.addf %15, %17 : vector<16x32xf32>
      %19 = arith.truncf %18 : vector<16x32xf32> to vector<16x32xbf16>
      %c0_16 = arith.constant 0 : index
      %c0_17 = arith.constant 0 : index
      %20 = vector.load %arg7[%c0_16, %c0_17] : memref<16x32xbf16, #tpu.memory_space<vmem>>, vector<16x32xbf16>
      tpu.vector_store %arg7[%c0_16, %c0_17], %19 {strides = array<i32>} : memref<16x32xbf16, #tpu.memory_space<vmem>>, vector<16x32xbf16>,
    } else {
    }
    return
  }
  func.func @transform_0(%arg0: i32, %arg1: i32, %arg2: i32) -> (i32, i32) {
    %c0_i32 = arith.constant 0 : i32
    return %arg0, %arg2 : i32, i32
  }
  func.func @transform_1(%arg0: i32, %arg1: i32, %arg2: i32) -> (i32, i32) {
    %c0_i32 = arith.constant 0 : i32
    return %arg2, %arg1 : i32, i32
  }
  func.func @transform_2(%arg0: i32, %arg1: i32, %arg2: i32) -> (i32, i32) {
    %c0_i32 = arith.constant 0 : i32
    %c0_i32_0 = arith.constant 0 : i32
    return %c0_i32, %arg1 : i32, i32
  }
  func.func @transform_3(%arg0: i32, %arg1: i32, %arg2: i32) -> (i32, i32) {
    %c0_i32 = arith.constant 0 : i32
    return %arg0, %arg1 : i32, i32
  }
  func.func @transform_4(%arg0: i32, %arg1: i32, %arg2: i32) -> (i32, i32) {
    %c0_i32 = arith.constant 0 : i32
    return %arg0, %arg1 : i32, i32
  }
}

module attributes {stable_mosaic.version = 11 : i64} {
  func.func @_linear_kernel(%arg0: i32, %arg1: i32, %arg2: i32, %arg3: memref<16x32xbf16, #tpu.memory_space<vmem>>, %arg4: memref<32x128xbf16, #tpu.memory_space<vmem>>, %arg5: memref<1x128xf32, #tpu.memory_space<vmem>>, %arg6: memref<16x128xbf16, #tpu.memory_space<vmem>>, %arg7: memref<16x128xf32, #tpu.memory_space<vmem>>) attributes {dimension_semantics = [#tpu.dimension_semantics<parallel>, #tpu.dimension_semantics<parallel>, #tpu.dimension_semantics<arbitrary>], iteration_bounds = array<i64: 1, 1, 1>, scalar_prefetch = 0 : i64, scratch_operands = 1 : i64, tpu.core_type = #tpu.core_type<tc>, window_params = [{transform_indices = @transform_0, window_bounds = array<i64: 16, 32>}, {transform_indices = @transform_1, window_bounds = array<i64: 32, 128>}, {transform_indices = @transform_2, window_bounds = array<i64: 1, 128>}, {transform_indices = @transform_3, window_bounds = array<i64: 16, 128>}]} {
    %c0_i32 = arith.constant 0 : i32
    %0 = arith.cmpi eq, %arg2, %c0_i32 : i32
    %1 = arith.extui %0 : i1 to i32
    %c0_i32_0 = arith.constant 0 : i32
    %2 = arith.cmpi ne, %1, %c0_i32_0 : i32
    scf.if %2 {
      %cst_10 = arith.constant 0.000000e+00 : f32
      %12 = vector.broadcast %cst_10 : f32 to vector<16x128xf32>
      %c0_11 = arith.constant 0 : index
      %c0_12 = arith.constant 0 : index
      %13 = vector.load %arg7[%c0_11, %c0_12] : memref<16x128xf32, #tpu.memory_space<vmem>>, vector<16x128xf32>
      tpu.vector_store %arg7[%c0_11, %c0_12], %12 {strides = array<i32>} : memref<16x128xf32, #tpu.memory_space<vmem>>, vector<16x128xf32>,
    } else {
    }
    %c0 = arith.constant 0 : index
    %c0_1 = arith.constant 0 : index
    %3 = vector.load %arg7[%c0, %c0_1] : memref<16x128xf32, #tpu.memory_space<vmem>>, vector<16x128xf32>
    %c0_2 = arith.constant 0 : index
    %c0_3 = arith.constant 0 : index
    %4 = vector.load %arg3[%c0_2, %c0_3] : memref<16x32xbf16, #tpu.memory_space<vmem>>, vector<16x32xbf16>
    %c0_4 = arith.constant 0 : index
    %c0_5 = arith.constant 0 : index
    %5 = vector.load %arg4[%c0_4, %c0_5] : memref<32x128xbf16, #tpu.memory_space<vmem>>, vector<32x128xbf16>
    %cst = arith.constant dense<0.000000e+00> : vector<16x128xf32>
    %6 = tpu.matmul %4, %5, %cst {dimension_numbers = #tpu.dot_dimension_numbers<[1], [0], [0], [1], [0, 0, 1, 1], [], []>} : vector<16x32xbf16>, vector<32x128xbf16>, vector<16x128xf32> -> vector<16x128xf32>
    %7 = arith.addf %3, %6 : vector<16x128xf32>
    %c0_6 = arith.constant 0 : index
    %c0_7 = arith.constant 0 : index
    %8 = vector.load %arg7[%c0_6, %c0_7] : memref<16x128xf32, #tpu.memory_space<vmem>>, vector<16x128xf32>
    tpu.vector_store %arg7[%c0_6, %c0_7], %7 {strides = array<i32>} : memref<16x128xf32, #tpu.memory_space<vmem>>, vector<16x128xf32>,
    %c0_i32_8 = arith.constant 0 : i32
    %9 = arith.cmpi eq, %arg2, %c0_i32_8 : i32
    %10 = arith.extui %9 : i1 to i32
    %c0_i32_9 = arith.constant 0 : i32
    %11 = arith.cmpi ne, %10, %c0_i32_9 : i32
    scf.if %11 {
      %c0_10 = arith.constant 0 : index
      %c0_11 = arith.constant 0 : index
      %12 = vector.load %arg7[%c0_10, %c0_11] : memref<16x128xf32, #tpu.memory_space<vmem>>, vector<16x128xf32>
      %c0_12 = arith.constant 0 : index
      %c0_13 = arith.constant 0 : index
      %13 = vector.load %arg5[%c0_12, %c0_13] : memref<1x128xf32, #tpu.memory_space<vmem>>, vector<1x128xf32>
      %14 = vector.broadcast %13 : vector<1x128xf32> to vector<16x128xf32>
      %15 = arith.addf %12, %14 : vector<16x128xf32>
      %cst_14 = arith.constant 1.702000e+00 : f32
      %16 = vector.broadcast %cst_14 : f32 to vector<16x128xf32>
      %17 = arith.mulf %16, %15 : vector<16x128xf32>
      %18 = arith.negf %17 : vector<16x128xf32>
      %19 = math.exp %18 : vector<16x128xf32>
      %cst_15 = arith.constant 1.000000e+00 : f32
      %20 = vector.broadcast %cst_15 : f32 to vector<16x128xf32>
      %21 = arith.addf %20, %19 : vector<16x128xf32>
      %22 = arith.divf %20, %21 : vector<16x128xf32>
      %23 = arith.mulf %15, %22 : vector<16x128xf32>
      %24 = arith.truncf %23 : vector<16x128xf32> to vector<16x128xbf16>
      %c0_16 = arith.constant 0 : index
      %c0_17 = arith.constant 0 : index
      %25 = vector.load %arg6[%c0_16, %c0_17] : memref<16x128xbf16, #tpu.memory_space<vmem>>, vector<16x128xbf16>
      tpu.vector_store %arg6[%c0_16, %c0_17], %24 {strides = array<i32>} : memref<16x128xbf16, #tpu.memory_space<vmem>>, vector<16x128xbf16>,
    } else {
    }
    return
  }
  func.func @transform_0(%arg0: i32, %arg1: i32, %arg2: i32) -> (i32, i32) {
    %c0_i32 = arith.constant 0 : i32
    return %arg0, %arg2 : i32, i32
  }
  func.func @transform_1(%arg0: i32, %arg1: i32, %arg2: i32) -> (i32, i32) {
    %c0_i32 = arith.constant 0 : i32
    return %arg2, %arg1 : i32, i32
  }
  func.func @transform_2(%arg0: i32, %arg1: i32, %arg2: i32) -> (i32, i32) {
    %c0_i32 = arith.constant 0 : i32
    %c0_i32_0 = arith.constant 0 : i32
    return %c0_i32, %arg1 : i32, i32
  }
  func.func @transform_3(%arg0: i32, %arg1: i32, %arg2: i32) -> (i32, i32) {
    %c0_i32 = arith.constant 0 : i32
    return %arg0, %arg1 : i32, i32
  }
}

module attributes {stable_mosaic.version = 11 : i64} {
  func.func @_layernorm_kernel(%arg0: i32, %arg1: memref<8x32xbf16, #tpu.memory_space<vmem>>, %arg2: memref<1x32xf32, #tpu.memory_space<vmem>>, %arg3: memref<1x32xf32, #tpu.memory_space<vmem>>, %arg4: memref<8x32xbf16, #tpu.memory_space<vmem>>) attributes {dimension_semantics = [#tpu.dimension_semantics<parallel>], iteration_bounds = array<i64: 1>, scalar_prefetch = 0 : i64, scratch_operands = 0 : i64, tpu.core_type = #tpu.core_type<tc>, window_params = [{transform_indices = @transform_0, window_bounds = array<i64: 8, 32>}, {pipeline_mode = #tpu.pipeline_mode<synchronous>, transform_indices = @transform_1, window_bounds = array<i64: 1, 32>}, {pipeline_mode = #tpu.pipeline_mode<synchronous>, transform_indices = @transform_2, window_bounds = array<i64: 1, 32>}, {transform_indices = @transform_3, window_bounds = array<i64: 8, 32>}]} {
    %c0 = arith.constant 0 : index
    %c0_0 = arith.constant 0 : index
    %0 = vector.load %arg1[%c0, %c0_0] : memref<8x32xbf16, #tpu.memory_space<vmem>>, vector<8x32xbf16>
    %1 = arith.extf %0 : vector<8x32xbf16> to vector<8x32xf32>
    %cst = arith.constant dense<0.000000e+00> : vector<8xf32>
    %2 = vector.multi_reduction <add>, %1, %cst [1] : vector<8x32xf32> to vector<8xf32>
    %3 = vector.shape_cast %2 : vector<8xf32> to vector<8x1xf32>
    %cst_1 = arith.constant 3.200000e+01 : f32
    %4 = vector.broadcast %cst_1 : f32 to vector<8x1xf32>
    %5 = arith.divf %3, %4 : vector<8x1xf32>
    %6 = vector.broadcast %5 : vector<8x1xf32> to vector<8x32xf32>
    %7 = arith.subf %1, %6 : vector<8x32xf32>
    %8 = arith.mulf %7, %7 : vector<8x32xf32>
    %cst_2 = arith.constant dense<0.000000e+00> : vector<8xf32>
    %9 = vector.multi_reduction <add>, %8, %cst_2 [1] : vector<8x32xf32> to vector<8xf32>
    %10 = vector.shape_cast %9 : vector<8xf32> to vector<8x1xf32>
    %cst_3 = arith.constant 3.200000e+01 : f32
    %11 = vector.broadcast %cst_3 : f32 to vector<8x1xf32>
    %12 = arith.divf %10, %11 : vector<8x1xf32>
    %13 = vector.broadcast %5 : vector<8x1xf32> to vector<8x32xf32>
    %14 = arith.subf %1, %13 : vector<8x32xf32>
    %cst_4 = arith.constant 9.99999974E-6 : f32
    %15 = vector.broadcast %cst_4 : f32 to vector<8x1xf32>
    %16 = arith.addf %12, %15 : vector<8x1xf32>
    %17 = math.rsqrt %16 : vector<8x1xf32>
    %18 = vector.broadcast %17 : vector<8x1xf32> to vector<8x32xf32>
    %19 = arith.mulf %14, %18 : vector<8x32xf32>
    %c0_5 = arith.constant 0 : index
    %c0_6 = arith.constant 0 : index
    %20 = vector.load %arg2[%c0_5, %c0_6] : memref<1x32xf32, #tpu.memory_space<vmem>>, vector<1x32xf32>
    %21 = vector.broadcast %20 : vector<1x32xf32> to vector<8x32xf32>
    %22 = arith.mulf %19, %21 : vector<8x32xf32>
    %c0_7 = arith.constant 0 : index
    %c0_8 = arith.constant 0 : index
    %23 = vector.load %arg3[%c0_7, %c0_8] : memref<1x32xf32, #tpu.memory_space<vmem>>, vector<1x32xf32>
    %24 = vector.broadcast %23 : vector<1x32xf32> to vector<8x32xf32>
    %25 = arith.addf %22, %24 : vector<8x32xf32>
    %26 = arith.truncf %25 : vector<8x32xf32> to vector<8x32xbf16>
    %c0_9 = arith.constant 0 : index
    %c0_10 = arith.constant 0 : index
    %27 = vector.load %arg4[%c0_9, %c0_10] : memref<8x32xbf16, #tpu.memory_space<vmem>>, vector<8x32xbf16>
    tpu.vector_store %arg4[%c0_9, %c0_10], %26 {strides = array<i32>} : memref<8x32xbf16, #tpu.memory_space<vmem>>, vector<8x32xbf16>,
    return
  }
  func.func @transform_0(%arg0: i32) -> (i32, i32) {
    %c0_i32 = arith.constant 0 : i32
    %c0_i32_0 = arith.constant 0 : i32
    return %arg0, %c0_i32 : i32, i32
  }
  func.func @transform_1(%arg0: i32) -> (i32, i32) {
    %c0_i32 = arith.constant 0 : i32
    %c0_i32_0 = arith.constant 0 : i32
    %c0_i32_1 = arith.constant 0 : i32
    return %c0_i32, %c0_i32_0 : i32, i32
  }
  func.func @transform_2(%arg0: i32) -> (i32, i32) {
    %c0_i32 = arith.constant 0 : i32
    %c0_i32_0 = arith.constant 0 : i32
    %c0_i32_1 = arith.constant 0 : i32
    return %c0_i32, %c0_i32_0 : i32, i32
  }
  func.func @transform_3(%arg0: i32) -> (i32, i32) {
    %c0_i32 = arith.constant 0 : i32
    %c0_i32_0 = arith.constant 0 : i32
    return %arg0, %c0_i32 : i32, i32
  }
}

module attributes {stable_mosaic.version = 11 : i64} {
  func.func @_linear_kernel(%arg0: i32, %arg1: i32, %arg2: i32, %arg3: memref<8x32xbf16, #tpu.memory_space<vmem>>, %arg4: memref<32x32xbf16, #tpu.memory_space<vmem>>, %arg5: memref<1x32xf32, #tpu.memory_space<vmem>>, %arg6: memref<8x32xf32, #tpu.memory_space<vmem>>, %arg7: memref<8x32xf32, #tpu.memory_space<vmem>>) attributes {dimension_semantics = [#tpu.dimension_semantics<parallel>, #tpu.dimension_semantics<parallel>, #tpu.dimension_semantics<arbitrary>], iteration_bounds = array<i64: 1, 1, 1>, scalar_prefetch = 0 : i64, scratch_operands = 1 : i64, tpu.core_type = #tpu.core_type<tc>, window_params = [{transform_indices = @transform_0, window_bounds = array<i64: 8, 32>}, {transform_indices = @transform_1, window_bounds = array<i64: 32, 32>}, {transform_indices = @transform_2, window_bounds = array<i64: 1, 32>}, {transform_indices = @transform_3, window_bounds = array<i64: 8, 32>}]} {
    %c0_i32 = arith.constant 0 : i32
    %0 = arith.cmpi eq, %arg2, %c0_i32 : i32
    %1 = arith.extui %0 : i1 to i32
    %c0_i32_0 = arith.constant 0 : i32
    %2 = arith.cmpi ne, %1, %c0_i32_0 : i32
    scf.if %2 {
      %cst_10 = arith.constant 0.000000e+00 : f32
      %12 = vector.broadcast %cst_10 : f32 to vector<8x32xf32>
      %c0_11 = arith.constant 0 : index
      %c0_12 = arith.constant 0 : index
      %13 = vector.load %arg7[%c0_11, %c0_12] : memref<8x32xf32, #tpu.memory_space<vmem>>, vector<8x32xf32>
      tpu.vector_store %arg7[%c0_11, %c0_12], %12 {strides = array<i32>} : memref<8x32xf32, #tpu.memory_space<vmem>>, vector<8x32xf32>,
    } else {
    }
    %c0 = arith.constant 0 : index
    %c0_1 = arith.constant 0 : index
    %3 = vector.load %arg7[%c0, %c0_1] : memref<8x32xf32, #tpu.memory_space<vmem>>, vector<8x32xf32>
    %c0_2 = arith.constant 0 : index
    %c0_3 = arith.constant 0 : index
    %4 = vector.load %arg3[%c0_2, %c0_3] : memref<8x32xbf16, #tpu.memory_space<vmem>>, vector<8x32xbf16>
    %c0_4 = arith.constant 0 : index
    %c0_5 = arith.constant 0 : index
    %5 = vector.load %arg4[%c0_4, %c0_5] : memref<32x32xbf16, #tpu.memory_space<vmem>>, vector<32x32xbf16>
    %cst = arith.constant dense<0.000000e+00> : vector<8x32xf32>
    %6 = tpu.matmul %4, %5, %cst {dimension_numbers = #tpu.dot_dimension_numbers<[1], [0], [0], [1], [0, 0, 1, 1], [], []>} : vector<8x32xbf16>, vector<32x32xbf16>, vector<8x32xf32> -> vector<8x32xf32>
    %7 = arith.addf %3, %6 : vector<8x32xf32>
    %c0_6 = arith.constant 0 : index
    %c0_7 = arith.constant 0 : index
    %8 = vector.load %arg7[%c0_6, %c0_7] : memref<8x32xf32, #tpu.memory_space<vmem>>, vector<8x32xf32>
    tpu.vector_store %arg7[%c0_6, %c0_7], %7 {strides = array<i32>} : memref<8x32xf32, #tpu.memory_space<vmem>>, vector<8x32xf32>,
    %c0_i32_8 = arith.constant 0 : i32
    %9 = arith.cmpi eq, %arg2, %c0_i32_8 : i32
    %10 = arith.extui %9 : i1 to i32
    %c0_i32_9 = arith.constant 0 : i32
    %11 = arith.cmpi ne, %10, %c0_i32_9 : i32
    scf.if %11 {
      %c0_10 = arith.constant 0 : index
      %c0_11 = arith.constant 0 : index
      %12 = vector.load %arg7[%c0_10, %c0_11] : memref<8x32xf32, #tpu.memory_space<vmem>>, vector<8x32xf32>
      %c0_12 = arith.constant 0 : index
      %c0_13 = arith.constant 0 : index
      %13 = vector.load %arg5[%c0_12, %c0_13] : memref<1x32xf32, #tpu.memory_space<vmem>>, vector<1x32xf32>
      %14 = vector.broadcast %13 : vector<1x32xf32> to vector<8x32xf32>
      %15 = arith.addf %12, %14 : vector<8x32xf32>
      %c0_14 = arith.constant 0 : index
      %c0_15 = arith.constant 0 : index
      %16 = vector.load %arg6[%c0_14, %c0_15] : memref<8x32xf32, #tpu.memory_space<vmem>>, vector<8x32xf32>
      tpu.vector_store %arg6[%c0_14, %c0_15], %15 {strides = array<i32>} : memref<8x32xf32, #tpu.memory_space<vmem>>, vector<8x32xf32>,
    } else {
    }
    return
  }
  func.func @transform_0(%arg0: i32, %arg1: i32, %arg2: i32) -> (i32, i32) {
    %c0_i32 = arith.constant 0 : i32
    return %arg0, %arg2 : i32, i32
  }
  func.func @transform_1(%arg0: i32, %arg1: i32, %arg2: i32) -> (i32, i32) {
    %c0_i32 = arith.constant 0 : i32
    return %arg2, %arg1 : i32, i32
  }
  func.func @transform_2(%arg0: i32, %arg1: i32, %arg2: i32) -> (i32, i32) {
    %c0_i32 = arith.constant 0 : i32
    %c0_i32_0 = arith.constant 0 : i32
    return %c0_i32, %arg1 : i32, i32
  }
  func.func @transform_3(%arg0: i32, %arg1: i32, %arg2: i32) -> (i32, i32) {
    %c0_i32 = arith.constant 0 : i32
    return %arg0, %arg1 : i32, i32
  }
}

module attributes {stable_mosaic.version = 11 : i64} {
  func.func @_l2norm_kernel(%arg0: memref<2x32xf32, #tpu.memory_space<vmem>>, %arg1: memref<2x32xf32, #tpu.memory_space<vmem>>) attributes {dimension_semantics = [], scalar_prefetch = 0 : i64, scratch_operands = 0 : i64, tpu.core_type = #tpu.core_type<tc>} {
    %c0 = arith.constant 0 : index
    %c0_0 = arith.constant 0 : index
    %0 = vector.load %arg0[%c0, %c0_0] : memref<2x32xf32, #tpu.memory_space<vmem>>, vector<2x32xf32>
    %1 = arith.mulf %0, %0 : vector<2x32xf32>
    %cst = arith.constant dense<0.000000e+00> : vector<2xf32>
    %2 = vector.multi_reduction <add>, %1, %cst [1] : vector<2x32xf32> to vector<2xf32>
    %3 = vector.shape_cast %2 : vector<2xf32> to vector<2x1xf32>
    %cst_1 = arith.constant 9.99999996E-13 : f32
    %4 = vector.broadcast %cst_1 : f32 to vector<2x1xf32>
    %5 = arith.addf %3, %4 : vector<2x1xf32>
    %6 = math.rsqrt %5 : vector<2x1xf32>
    %7 = vector.broadcast %6 : vector<2x1xf32> to vector<2x32xf32>
    %8 = arith.mulf %0, %7 : vector<2x32xf32>
    %c0_2 = arith.constant 0 : index
    %c0_3 = arith.constant 0 : index
    %9 = vector.load %arg1[%c0_2, %c0_3] : memref<2x32xf32, #tpu.memory_space<vmem>>, vector<2x32xf32>
    tpu.vector_store %arg1[%c0_2, %c0_3], %8 {strides = array<i32>} : memref<2x32xf32, #tpu.memory_space<vmem>>, vector<2x32xf32>,
    return
  }
}

module attributes {stable_mosaic.version = 11 : i64} {
  func.func @_linear_kernel(%arg0: i32, %arg1: i32, %arg2: i32, %arg3: memref<24x32xbf16, #tpu.memory_space<vmem>>, %arg4: memref<32x96xbf16, #tpu.memory_space<vmem>>, %arg5: memref<1x96xf32, #tpu.memory_space<vmem>>, %arg6: memref<24x96xbf16, #tpu.memory_space<vmem>>, %arg7: memref<24x96xf32, #tpu.memory_space<vmem>>) attributes {dimension_semantics = [#tpu.dimension_semantics<parallel>, #tpu.dimension_semantics<parallel>, #tpu.dimension_semantics<arbitrary>], iteration_bounds = array<i64: 1, 1, 1>, scalar_prefetch = 0 : i64, scratch_operands = 1 : i64, tpu.core_type = #tpu.core_type<tc>, window_params = [{transform_indices = @transform_0, window_bounds = array<i64: 24, 32>}, {transform_indices = @transform_1, window_bounds = array<i64: 32, 96>}, {transform_indices = @transform_2, window_bounds = array<i64: 1, 96>}, {transform_indices = @transform_3, window_bounds = array<i64: 24, 96>}]} {
    %c0_i32 = arith.constant 0 : i32
    %0 = arith.cmpi eq, %arg2, %c0_i32 : i32
    %1 = arith.extui %0 : i1 to i32
    %c0_i32_0 = arith.constant 0 : i32
    %2 = arith.cmpi ne, %1, %c0_i32_0 : i32
    scf.if %2 {
      %cst_10 = arith.constant 0.000000e+00 : f32
      %12 = vector.broadcast %cst_10 : f32 to vector<24x96xf32>
      %c0_11 = arith.constant 0 : index
      %c0_12 = arith.constant 0 : index
      %13 = vector.load %arg7[%c0_11, %c0_12] : memref<24x96xf32, #tpu.memory_space<vmem>>, vector<24x96xf32>
      tpu.vector_store %arg7[%c0_11, %c0_12], %12 {strides = array<i32>} : memref<24x96xf32, #tpu.memory_space<vmem>>, vector<24x96xf32>,
    } else {
    }
    %c0 = arith.constant 0 : index
    %c0_1 = arith.constant 0 : index
    %3 = vector.load %arg7[%c0, %c0_1] : memref<24x96xf32, #tpu.memory_space<vmem>>, vector<24x96xf32>
    %c0_2 = arith.constant 0 : index
    %c0_3 = arith.constant 0 : index
    %4 = vector.load %arg3[%c0_2, %c0_3] : memref<24x32xbf16, #tpu.memory_space<vmem>>, vector<24x32xbf16>
    %c0_4 = arith.constant 0 : index
    %c0_5 = arith.constant 0 : index
    %5 = vector.load %arg4[%c0_4, %c0_5] : memref<32x96xbf16, #tpu.memory_space<vmem>>, vector<32x96xbf16>
    %cst = arith.constant dense<0.000000e+00> : vector<24x96xf32>
    %6 = tpu.matmul %4, %5, %cst {dimension_numbers = #tpu.dot_dimension_numbers<[1], [0], [0], [1], [0, 0, 1, 1], [], []>} : vector<24x32xbf16>, vector<32x96xbf16>, vector<24x96xf32> -> vector<24x96xf32>
    %7 = arith.addf %3, %6 : vector<24x96xf32>
    %c0_6 = arith.constant 0 : index
    %c0_7 = arith.constant 0 : index
    %8 = vector.load %arg7[%c0_6, %c0_7] : memref<24x96xf32, #tpu.memory_space<vmem>>, vector<24x96xf32>
    tpu.vector_store %arg7[%c0_6, %c0_7], %7 {strides = array<i32>} : memref<24x96xf32, #tpu.memory_space<vmem>>, vector<24x96xf32>,
    %c0_i32_8 = arith.constant 0 : i32
    %9 = arith.cmpi eq, %arg2, %c0_i32_8 : i32
    %10 = arith.extui %9 : i1 to i32
    %c0_i32_9 = arith.constant 0 : i32
    %11 = arith.cmpi ne, %10, %c0_i32_9 : i32
    scf.if %11 {
      %c0_10 = arith.constant 0 : index
      %c0_11 = arith.constant 0 : index
      %12 = vector.load %arg7[%c0_10, %c0_11] : memref<24x96xf32, #tpu.memory_space<vmem>>, vector<24x96xf32>
      %c0_12 = arith.constant 0 : index
      %c0_13 = arith.constant 0 : index
      %13 = vector.load %arg5[%c0_12, %c0_13] : memref<1x96xf32, #tpu.memory_space<vmem>>, vector<1x96xf32>
      %14 = vector.broadcast %13 : vector<1x96xf32> to vector<24x96xf32>
      %15 = arith.addf %12, %14 : vector<24x96xf32>
      %16 = arith.truncf %15 : vector<24x96xf32> to vector<24x96xbf16>
      %c0_14 = arith.constant 0 : index
      %c0_15 = arith.constant 0 : index
      %17 = vector.load %arg6[%c0_14, %c0_15] : memref<24x96xbf16, #tpu.memory_space<vmem>>, vector<24x96xbf16>
      tpu.vector_store %arg6[%c0_14, %c0_15], %16 {strides = array<i32>} : memref<24x96xbf16, #tpu.memory_space<vmem>>, vector<24x96xbf16>,
    } else {
    }
    return
  }
  func.func @transform_0(%arg0: i32, %arg1: i32, %arg2: i32) -> (i32, i32) {
    %c0_i32 = arith.constant 0 : i32
    return %arg0, %arg2 : i32, i32
  }
  func.func @transform_1(%arg0: i32, %arg1: i32, %arg2: i32) -> (i32, i32) {
    %c0_i32 = arith.constant 0 : i32
    return %arg2, %arg1 : i32, i32
  }
  func.func @transform_2(%arg0: i32, %arg1: i32, %arg2: i32) -> (i32, i32) {
    %c0_i32 = arith.constant 0 : i32
    %c0_i32_0 = arith.constant 0 : i32
    return %c0_i32, %arg1 : i32, i32
  }
  func.func @transform_3(%arg0: i32, %arg1: i32, %arg2: i32) -> (i32, i32) {
    %c0_i32 = arith.constant 0 : i32
    return %arg0, %arg1 : i32, i32
  }
}

module attributes {stable_mosaic.version = 11 : i64} {
  func.func @_layernorm_kernel(%arg0: i32, %arg1: memref<24x32xbf16, #tpu.memory_space<vmem>>, %arg2: memref<1x32xf32, #tpu.memory_space<vmem>>, %arg3: memref<1x32xf32, #tpu.memory_space<vmem>>, %arg4: memref<24x32xbf16, #tpu.memory_space<vmem>>) attributes {dimension_semantics = [#tpu.dimension_semantics<parallel>], iteration_bounds = array<i64: 1>, scalar_prefetch = 0 : i64, scratch_operands = 0 : i64, tpu.core_type = #tpu.core_type<tc>, window_params = [{transform_indices = @transform_0, window_bounds = array<i64: 24, 32>}, {pipeline_mode = #tpu.pipeline_mode<synchronous>, transform_indices = @transform_1, window_bounds = array<i64: 1, 32>}, {pipeline_mode = #tpu.pipeline_mode<synchronous>, transform_indices = @transform_2, window_bounds = array<i64: 1, 32>}, {transform_indices = @transform_3, window_bounds = array<i64: 24, 32>}]} {
    %c0 = arith.constant 0 : index
    %c0_0 = arith.constant 0 : index
    %0 = vector.load %arg1[%c0, %c0_0] : memref<24x32xbf16, #tpu.memory_space<vmem>>, vector<24x32xbf16>
    %1 = arith.extf %0 : vector<24x32xbf16> to vector<24x32xf32>
    %cst = arith.constant dense<0.000000e+00> : vector<24xf32>
    %2 = vector.multi_reduction <add>, %1, %cst [1] : vector<24x32xf32> to vector<24xf32>
    %3 = vector.shape_cast %2 : vector<24xf32> to vector<24x1xf32>
    %cst_1 = arith.constant 3.200000e+01 : f32
    %4 = vector.broadcast %cst_1 : f32 to vector<24x1xf32>
    %5 = arith.divf %3, %4 : vector<24x1xf32>
    %6 = vector.broadcast %5 : vector<24x1xf32> to vector<24x32xf32>
    %7 = arith.subf %1, %6 : vector<24x32xf32>
    %8 = arith.mulf %7, %7 : vector<24x32xf32>
    %cst_2 = arith.constant dense<0.000000e+00> : vector<24xf32>
    %9 = vector.multi_reduction <add>, %8, %cst_2 [1] : vector<24x32xf32> to vector<24xf32>
    %10 = vector.shape_cast %9 : vector<24xf32> to vector<24x1xf32>
    %cst_3 = arith.constant 3.200000e+01 : f32
    %11 = vector.broadcast %cst_3 : f32 to vector<24x1xf32>
    %12 = arith.divf %10, %11 : vector<24x1xf32>
    %13 = vector.broadcast %5 : vector<24x1xf32> to vector<24x32xf32>
    %14 = arith.subf %1, %13 : vector<24x32xf32>
    %cst_4 = arith.constant 9.99999974E-6 : f32
    %15 = vector.broadcast %cst_4 : f32 to vector<24x1xf32>
    %16 = arith.addf %12, %15 : vector<24x1xf32>
    %17 = math.rsqrt %16 : vector<24x1xf32>
    %18 = vector.broadcast %17 : vector<24x1xf32> to vector<24x32xf32>
    %19 = arith.mulf %14, %18 : vector<24x32xf32>
    %c0_5 = arith.constant 0 : index
    %c0_6 = arith.constant 0 : index
    %20 = vector.load %arg2[%c0_5, %c0_6] : memref<1x32xf32, #tpu.memory_space<vmem>>, vector<1x32xf32>
    %21 = vector.broadcast %20 : vector<1x32xf32> to vector<24x32xf32>
    %22 = arith.mulf %19, %21 : vector<24x32xf32>
    %c0_7 = arith.constant 0 : index
    %c0_8 = arith.constant 0 : index
    %23 = vector.load %arg3[%c0_7, %c0_8] : memref<1x32xf32, #tpu.memory_space<vmem>>, vector<1x32xf32>
    %24 = vector.broadcast %23 : vector<1x32xf32> to vector<24x32xf32>
    %25 = arith.addf %22, %24 : vector<24x32xf32>
    %26 = arith.truncf %25 : vector<24x32xf32> to vector<24x32xbf16>
    %c0_9 = arith.constant 0 : index
    %c0_10 = arith.constant 0 : index
    %27 = vector.load %arg4[%c0_9, %c0_10] : memref<24x32xbf16, #tpu.memory_space<vmem>>, vector<24x32xbf16>
    tpu.vector_store %arg4[%c0_9, %c0_10], %26 {strides = array<i32>} : memref<24x32xbf16, #tpu.memory_space<vmem>>, vector<24x32xbf16>,
    return
  }
  func.func @transform_0(%arg0: i32) -> (i32, i32) {
    %c0_i32 = arith.constant 0 : i32
    %c0_i32_0 = arith.constant 0 : i32
    return %arg0, %c0_i32 : i32, i32
  }
  func.func @transform_1(%arg0: i32) -> (i32, i32) {
    %c0_i32 = arith.constant 0 : i32
    %c0_i32_0 = arith.constant 0 : i32
    %c0_i32_1 = arith.constant 0 : i32
    return %c0_i32, %c0_i32_0 : i32, i32
  }
  func.func @transform_2(%arg0: i32) -> (i32, i32) {
    %c0_i32 = arith.constant 0 : i32
    %c0_i32_0 = arith.constant 0 : i32
    %c0_i32_1 = arith.constant 0 : i32
    return %c0_i32, %c0_i32_0 : i32, i32
  }
  func.func @transform_3(%arg0: i32) -> (i32, i32) {
    %c0_i32 = arith.constant 0 : i32
    %c0_i32_0 = arith.constant 0 : i32
    return %arg0, %c0_i32 : i32, i32
  }
}

module attributes {stable_mosaic.version = 11 : i64} {
  func.func @_flash_attn_kernel(%arg0: i32, %arg1: i32, %arg2: i32, %arg3: memref<12x8x8xbf16, #tpu.memory_space<vmem>>, %arg4: memref<12x8x8xbf16, #tpu.memory_space<vmem>>, %arg5: memref<12x8x8xbf16, #tpu.memory_space<vmem>>, %arg6: memref<12x8x8xbf16, #tpu.memory_space<vmem>>, %arg7: memref<12x8x1xf32, #tpu.memory_space<vmem>>, %arg8: memref<12x8x1xf32, #tpu.memory_space<vmem>>, %arg9: memref<12x8x8xf32, #tpu.memory_space<vmem>>) attributes {dimension_semantics = [#tpu.dimension_semantics<parallel>, #tpu.dimension_semantics<parallel>, #tpu.dimension_semantics<arbitrary>], iteration_bounds = array<i64: 1, 1, 1>, scalar_prefetch = 0 : i64, scratch_operands = 3 : i64, tpu.core_type = #tpu.core_type<tc>, window_params = [{transform_indices = @transform_0, window_bounds = array<i64: 12, 8, 8>}, {transform_indices = @transform_1, window_bounds = array<i64: 12, 8, 8>}, {transform_indices = @transform_2, window_bounds = array<i64: 12, 8, 8>}, {transform_indices = @transform_3, window_bounds = array<i64: 12, 8, 8>}]} {
    %c0_i32 = arith.constant 0 : i32
    %0 = arith.cmpi eq, %arg2, %c0_i32 : i32
    %1 = arith.extui %0 : i1 to i32
    %c0_i32_0 = arith.constant 0 : i32
    %2 = arith.cmpi ne, %1, %c0_i32_0 : i32
    scf.if %2 {
      %cst = arith.constant -1.000000e+30 : f32
      %9 = vector.broadcast %cst : f32 to vector<12x8x1xf32>
      %c0 = arith.constant 0 : index
      %c0_4 = arith.constant 0 : index
      %c0_5 = arith.constant 0 : index
      %10 = vector.load %arg7[%c0, %c0_4, %c0_5] : memref<12x8x1xf32, #tpu.memory_space<vmem>>, vector<12x8x1xf32>
      tpu.vector_store %arg7[%c0, %c0_4, %c0_5], %9 {strides = array<i32>} : memref<12x8x1xf32, #tpu.memory_space<vmem>>, vector<12x8x1xf32>,
      %cst_6 = arith.constant 0.000000e+00 : f32
      %11 = vector.broadcast %cst_6 : f32 to vector<12x8x1xf32>
      %c0_7 = arith.constant 0 : index
      %c0_8 = arith.constant 0 : index
      %c0_9 = arith.constant 0 : index
      %12 = vector.load %arg8[%c0_7, %c0_8, %c0_9] : memref<12x8x1xf32, #tpu.memory_space<vmem>>, vector<12x8x1xf32>
      tpu.vector_store %arg8[%c0_7, %c0_8, %c0_9], %11 {strides = array<i32>} : memref<12x8x1xf32, #tpu.memory_space<vmem>>, vector<12x8x1xf32>,
      %cst_10 = arith.constant 0.000000e+00 : f32
      %13 = vector.broadcast %cst_10 : f32 to vector<12x8x8xf32>
      %c0_11 = arith.constant 0 : index
      %c0_12 = arith.constant 0 : index
      %c0_13 = arith.constant 0 : index
      %14 = vector.load %arg9[%c0_11, %c0_12, %c0_13] : memref<12x8x8xf32, #tpu.memory_space<vmem>>, vector<12x8x8xf32>
      tpu.vector_store %arg9[%c0_11, %c0_12, %c0_13], %13 {strides = array<i32>} : memref<12x8x8xf32, #tpu.memory_space<vmem>>, vector<12x8x8xf32>,
    } else {
    }
    %3 = arith.cmpi sle, %arg2, %arg1 : i32
    %4 = arith.extui %3 : i1 to i32
    %c0_i32_1 = arith.constant 0 : i32
    %5 = arith.cmpi ne, %4, %c0_i32_1 : i32
    scf.if %5 {
      %c0 = arith.constant 0 : index
      %c0_4 = arith.constant 0 : index
      %c0_5 = arith.constant 0 : index
      %9 = vector.load %arg3[%c0, %c0_4, %c0_5] : memref<12x8x8xbf16, #tpu.memory_space<vmem>>, vector<12x8x8xbf16>
      %cst = arith.constant 3.535160e-01 : bf16
      %10 = vector.broadcast %cst : bf16 to vector<12x8x8xbf16>
      %11 = arith.mulf %9, %10 : vector<12x8x8xbf16>
      %c0_6 = arith.constant 0 : index
      %c0_7 = arith.constant 0 : index
      %c0_8 = arith.constant 0 : index
      %12 = vector.load %arg4[%c0_6, %c0_7, %c0_8] : memref<12x8x8xbf16, #tpu.memory_space<vmem>>, vector<12x8x8xbf16>
      "tpu.trace_start"() <{level = 10 : i32, message = "bqd,bkd->bqk"}> : () -> ()
      %cst_9 = arith.constant dense<0.000000e+00> : vector<12x8x8xf32>
      %13 = tpu.matmul %11, %12, %cst_9 {dimension_numbers = #tpu.dot_dimension_numbers<[2], [2], [1], [1], [0, 0, 0, 1, 1, 1], [0], [0]>} : vector<12x8x8xbf16>, vector<12x8x8xbf16>, vector<12x8x8xf32> -> vector<12x8x8xf32>
      "tpu.trace_stop"() : () -> ()
      %c8_i32 = arith.constant 8 : i32
      %14 = arith.muli %arg2, %c8_i32 : i32
      %15 = tpu.iota {dimensions = array<i32: 2>} : vector<12x8x8xi32>
      %16 = vector.broadcast %14 : i32 to vector<12x8x8xi32>
      %17 = arith.addi %16, %15 : vector<12x8x8xi32>
      %c8_i32_10 = arith.constant 8 : i32
      %18 = vector.broadcast %c8_i32_10 : i32 to vector<12x8x8xi32>
      %19 = arith.cmpi slt, %17, %18 : vector<12x8x8xi32>
      %c8_i32_11 = arith.constant 8 : i32
      %20 = arith.muli %arg1, %c8_i32_11 : i32
      %21 = tpu.iota {dimensions = array<i32: 1>} : vector<12x8x8xi32>
      %22 = vector.broadcast %20 : i32 to vector<12x8x8xi32>
      %23 = arith.addi %22, %21 : vector<12x8x8xi32>
      %24 = arith.cmpi sle, %17, %23 : vector<12x8x8xi32>
      %25 = arith.andi %19, %24 : vector<12x8x8xi1>
      %cst_12 = arith.constant -1.000000e+30 : f32
      %26 = vector.broadcast %cst_12 : f32 to vector<12x8x8xf32>
      %27 = arith.select %25, %13, %26 : vector<12x8x8xi1>, vector<12x8x8xf32>
      %c0_13 = arith.constant 0 : index
      %c0_14 = arith.constant 0 : index
      %c0_15 = arith.constant 0 : index
      %28 = vector.load %arg7[%c0_13, %c0_14, %c0_15] : memref<12x8x1xf32, #tpu.memory_space<vmem>>, vector<12x8x1xf32>
      %cst_16 = arith.constant dense<0xFF800000> : vector<12x8xf32>
      %29 = vector.multi_reduction <maximumf>, %27, %cst_16 [2] : vector<12x8x8xf32> to vector<12x8xf32>
      %30 = vector.shape_cast %29 : vector<12x8xf32> to vector<12x8x1xf32>
      %31 = arith.maximumf %28, %30 : vector<12x8x1xf32>
      %32 = arith.subf %28, %31 : vector<12x8x1xf32>
      %33 = math.exp %32 : vector<12x8x1xf32>
      %34 = vector.broadcast %31 : vector<12x8x1xf32> to vector<12x8x8xf32>
      %35 = arith.subf %27, %34 : vector<12x8x8xf32>
      %36 = math.exp %35 : vector<12x8x8xf32>
      %c0_17 = arith.constant 0 : index
      %c0_18 = arith.constant 0 : index
      %c0_19 = arith.constant 0 : index
      %37 = vector.load %arg8[%c0_17, %c0_18, %c0_19] : memref<12x8x1xf32, #tpu.memory_space<vmem>>, vector<12x8x1xf32>
      %38 = arith.mulf %33, %37 : vector<12x8x1xf32>
      %cst_20 = arith.constant dense<0.000000e+00> : vector<12x8xf32>
      %39 = vector.multi_reduction <add>, %36, %cst_20 [2] : vector<12x8x8xf32> to vector<12x8xf32>
      %40 = vector.shape_cast %39 : vector<12x8xf32> to vector<12x8x1xf32>
      %41 = arith.addf %38, %40 : vector<12x8x1xf32>
      %c0_21 = arith.constant 0 : index
      %c0_22 = arith.constant 0 : index
      %c0_23 = arith.constant 0 : index
      %42 = vector.load %arg8[%c0_21, %c0_22, %c0_23] : memref<12x8x1xf32, #tpu.memory_space<vmem>>, vector<12x8x1xf32>
      tpu.vector_store %arg8[%c0_21, %c0_22, %c0_23], %41 {strides = array<i32>} : memref<12x8x1xf32, #tpu.memory_space<vmem>>, vector<12x8x1xf32>,
      %c0_24 = arith.constant 0 : index
      %c0_25 = arith.constant 0 : index
      %c0_26 = arith.constant 0 : index
      %43 = vector.load %arg9[%c0_24, %c0_25, %c0_26] : memref<12x8x8xf32, #tpu.memory_space<vmem>>, vector<12x8x8xf32>
      %44 = vector.broadcast %33 : vector<12x8x1xf32> to vector<12x8x8xf32>
      %45 = arith.mulf %44, %43 : vector<12x8x8xf32>
      %46 = arith.truncf %36 : vector<12x8x8xf32> to vector<12x8x8xbf16>
      %c0_27 = arith.constant 0 : index
      %c0_28 = arith.constant 0 : index
      %c0_29 = arith.constant 0 : index
      %47 = vector.load %arg5[%c0_27, %c0_28, %c0_29] : memref<12x8x8xbf16, #tpu.memory_space<vmem>>, vector<12x8x8xbf16>
      "tpu.trace_start"() <{level = 10 : i32, message = "bqk,bkd->bqd"}> : () -> ()
      %cst_30 = arith.constant dense<0.000000e+00> : vector<12x8x8xf32>
      %48 = tpu.matmul %46, %47, %cst_30 {dimension_numbers = #tpu.dot_dimension_numbers<[2], [1], [1], [2], [0, 0, 0, 1, 1, 2], [0], [0]>} : vector<12x8x8xbf16>, vector<12x8x8xbf16>, vector<12x8x8xf32> -> vector<12x8x8xf32>
      "tpu.trace_stop"() : () -> ()
      %49 = arith.addf %45, %48 : vector<12x8x8xf32>
      %c0_31 = arith.constant 0 : index
      %c0_32 = arith.constant 0 : index
      %c0_33 = arith.constant 0 : index
      %50 = vector.load %arg9[%c0_31, %c0_32, %c0_33] : memref<12x8x8xf32, #tpu.memory_space<vmem>>, vector<12x8x8xf32>
      tpu.vector_store %arg9[%c0_31, %c0_32, %c0_33], %49 {strides = array<i32>} : memref<12x8x8xf32, #tpu.memory_space<vmem>>, vector<12x8x8xf32>,
      %c0_34 = arith.constant 0 : index
      %c0_35 = arith.constant 0 : index
      %c0_36 = arith.constant 0 : index
      %51 = vector.load %arg7[%c0_34, %c0_35, %c0_36] : memref<12x8x1xf32, #tpu.memory_space<vmem>>, vector<12x8x1xf32>
      tpu.vector_store %arg7[%c0_34, %c0_35, %c0_36], %31 {strides = array<i32>} : memref<12x8x1xf32, #tpu.memory_space<vmem>>, vector<12x8x1xf32>,
    } else {
    }
    %c0_i32_2 = arith.constant 0 : i32
    %6 = arith.cmpi eq, %arg2, %c0_i32_2 : i32
    %7 = arith.extui %6 : i1 to i32
    %c0_i32_3 = arith.constant 0 : i32
    %8 = arith.cmpi ne, %7, %c0_i32_3 : i32
    scf.if %8 {
      %c0 = arith.constant 0 : index
      %c0_4 = arith.constant 0 : index
      %c0_5 = arith.constant 0 : index
      %9 = vector.load %arg9[%c0, %c0_4, %c0_5] : memref<12x8x8xf32, #tpu.memory_space<vmem>>, vector<12x8x8xf32>
      %c0_6 = arith.constant 0 : index
      %c0_7 = arith.constant 0 : index
      %c0_8 = arith.constant 0 : index
      %10 = vector.load %arg8[%c0_6, %c0_7, %c0_8] : memref<12x8x1xf32, #tpu.memory_space<vmem>>, vector<12x8x1xf32>
      %11 = tpu.reciprocal %10 {approx = true} : vector<12x8x1xf32> -> vector<12x8x1xf32>
      %12 = vector.broadcast %11 : vector<12x8x1xf32> to vector<12x8x8xf32>
      %13 = arith.mulf %9, %12 : vector<12x8x8xf32>
      %14 = arith.truncf %13 : vector<12x8x8xf32> to vector<12x8x8xbf16>
      %c0_9 = arith.constant 0 : index
      %c0_10 = arith.constant 0 : index
      %c0_11 = arith.constant 0 : index
      %15 = vector.load %arg6[%c0_9, %c0_10, %c0_11] : memref<12x8x8xbf16, #tpu.memory_space<vmem>>, vector<12x8x8xbf16>
      tpu.vector_store %arg6[%c0_9, %c0_10, %c0_11], %14 {strides = array<i32>} : memref<12x8x8xbf16, #tpu.memory_space<vmem>>, vector<12x8x8xbf16>,
    } else {
    }
    return
  }
  func.func @transform_0(%arg0: i32, %arg1: i32, %arg2: i32) -> (i32, i32, i32) {
    %c0_i32 = arith.constant 0 : i32
    %c0_i32_0 = arith.constant 0 : i32
    return %arg0, %arg1, %c0_i32 : i32, i32, i32
  }
  func.func @transform_1(%arg0: i32, %arg1: i32, %arg2: i32) -> (i32, i32, i32) {
    %c0_i32 = arith.constant 0 : i32
    %c0_i32_0 = arith.constant 0 : i32
    return %arg0, %arg2, %c0_i32 : i32, i32, i32
  }
  func.func @transform_2(%arg0: i32, %arg1: i32, %arg2: i32) -> (i32, i32, i32) {
    %c0_i32 = arith.constant 0 : i32
    %c0_i32_0 = arith.constant 0 : i32
    return %arg0, %arg2, %c0_i32 : i32, i32, i32
  }
  func.func @transform_3(%arg0: i32, %arg1: i32, %arg2: i32) -> (i32, i32, i32) {
    %c0_i32 = arith.constant 0 : i32
    %c0_i32_0 = arith.constant 0 : i32
    return %arg0, %arg1, %c0_i32 : i32, i32, i32
  }
}

module attributes {stable_mosaic.version = 11 : i64} {
  func.func @_linear_kernel(%arg0: i32, %arg1: i32, %arg2: i32, %arg3: memref<24x32xbf16, #tpu.memory_space<vmem>>, %arg4: memref<32x32xbf16, #tpu.memory_space<vmem>>, %arg5: memref<1x32xf32, #tpu.memory_space<vmem>>, %arg6: memref<24x32xbf16, #tpu.memory_space<vmem>>, %arg7: memref<24x32xbf16, #tpu.memory_space<vmem>>, %arg8: memref<24x32xf32, #tpu.memory_space<vmem>>) attributes {dimension_semantics = [#tpu.dimension_semantics<parallel>, #tpu.dimension_semantics<parallel>, #tpu.dimension_semantics<arbitrary>], iteration_bounds = array<i64: 1, 1, 1>, scalar_prefetch = 0 : i64, scratch_operands = 1 : i64, tpu.core_type = #tpu.core_type<tc>, window_params = [{transform_indices = @transform_0, window_bounds = array<i64: 24, 32>}, {transform_indices = @transform_1, window_bounds = array<i64: 32, 32>}, {transform_indices = @transform_2, window_bounds = array<i64: 1, 32>}, {transform_indices = @transform_3, window_bounds = array<i64: 24, 32>}, {transform_indices = @transform_4, window_bounds = array<i64: 24, 32>}]} {
    %c0_i32 = arith.constant 0 : i32
    %0 = arith.cmpi eq, %arg2, %c0_i32 : i32
    %1 = arith.extui %0 : i1 to i32
    %c0_i32_0 = arith.constant 0 : i32
    %2 = arith.cmpi ne, %1, %c0_i32_0 : i32
    scf.if %2 {
      %cst_10 = arith.constant 0.000000e+00 : f32
      %12 = vector.broadcast %cst_10 : f32 to vector<24x32xf32>
      %c0_11 = arith.constant 0 : index
      %c0_12 = arith.constant 0 : index
      %13 = vector.load %arg8[%c0_11, %c0_12] : memref<24x32xf32, #tpu.memory_space<vmem>>, vector<24x32xf32>
      tpu.vector_store %arg8[%c0_11, %c0_12], %12 {strides = array<i32>} : memref<24x32xf32, #tpu.memory_space<vmem>>, vector<24x32xf32>,
    } else {
    }
    %c0 = arith.constant 0 : index
    %c0_1 = arith.constant 0 : index
    %3 = vector.load %arg8[%c0, %c0_1] : memref<24x32xf32, #tpu.memory_space<vmem>>, vector<24x32xf32>
    %c0_2 = arith.constant 0 : index
    %c0_3 = arith.constant 0 : index
    %4 = vector.load %arg3[%c0_2, %c0_3] : memref<24x32xbf16, #tpu.memory_space<vmem>>, vector<24x32xbf16>
    %c0_4 = arith.constant 0 : index
    %c0_5 = arith.constant 0 : index
    %5 = vector.load %arg4[%c0_4, %c0_5] : memref<32x32xbf16, #tpu.memory_space<vmem>>, vector<32x32xbf16>
    %cst = arith.constant dense<0.000000e+00> : vector<24x32xf32>
    %6 = tpu.matmul %4, %5, %cst {dimension_numbers = #tpu.dot_dimension_numbers<[1], [0], [0], [1], [0, 0, 1, 1], [], []>} : vector<24x32xbf16>, vector<32x32xbf16>, vector<24x32xf32> -> vector<24x32xf32>
    %7 = arith.addf %3, %6 : vector<24x32xf32>
    %c0_6 = arith.constant 0 : index
    %c0_7 = arith.constant 0 : index
    %8 = vector.load %arg8[%c0_6, %c0_7] : memref<24x32xf32, #tpu.memory_space<vmem>>, vector<24x32xf32>
    tpu.vector_store %arg8[%c0_6, %c0_7], %7 {strides = array<i32>} : memref<24x32xf32, #tpu.memory_space<vmem>>, vector<24x32xf32>,
    %c0_i32_8 = arith.constant 0 : i32
    %9 = arith.cmpi eq, %arg2, %c0_i32_8 : i32
    %10 = arith.extui %9 : i1 to i32
    %c0_i32_9 = arith.constant 0 : i32
    %11 = arith.cmpi ne, %10, %c0_i32_9 : i32
    scf.if %11 {
      %c0_10 = arith.constant 0 : index
      %c0_11 = arith.constant 0 : index
      %12 = vector.load %arg8[%c0_10, %c0_11] : memref<24x32xf32, #tpu.memory_space<vmem>>, vector<24x32xf32>
      %c0_12 = arith.constant 0 : index
      %c0_13 = arith.constant 0 : index
      %13 = vector.load %arg5[%c0_12, %c0_13] : memref<1x32xf32, #tpu.memory_space<vmem>>, vector<1x32xf32>
      %14 = vector.broadcast %13 : vector<1x32xf32> to vector<24x32xf32>
      %15 = arith.addf %12, %14 : vector<24x32xf32>
      %c0_14 = arith.constant 0 : index
      %c0_15 = arith.constant 0 : index
      %16 = vector.load %arg6[%c0_14, %c0_15] : memref<24x32xbf16, #tpu.memory_space<vmem>>, vector<24x32xbf16>
      %17 = arith.extf %16 : vector<24x32xbf16> to vector<24x32xf32>
      %18 = arith.addf %15, %17 : vector<24x32xf32>
      %19 = arith.truncf %18 : vector<24x32xf32> to vector<24x32xbf16>
      %c0_16 = arith.constant 0 : index
      %c0_17 = arith.constant 0 : index
      %20 = vector.load %arg7[%c0_16, %c0_17] : memref<24x32xbf16, #tpu.memory_space<vmem>>, vector<24x32xbf16>
      tpu.vector_store %arg7[%c0_16, %c0_17], %19 {strides = array<i32>} : memref<24x32xbf16, #tpu.memory_space<vmem>>, vector<24x32xbf16>,
    } else {
    }
    return
  }
  func.func @transform_0(%arg0: i32, %arg1: i32, %arg2: i32) -> (i32, i32) {
    %c0_i32 = arith.constant 0 : i32
    return %arg0, %arg2 : i32, i32
  }
  func.func @transform_1(%arg0: i32, %arg1: i32, %arg2: i32) -> (i32, i32) {
    %c0_i32 = arith.constant 0 : i32
    return %arg2, %arg1 : i32, i32
  }
  func.func @transform_2(%arg0: i32, %arg1: i32, %arg2: i32) -> (i32, i32) {
    %c0_i32 = arith.constant 0 : i32
    %c0_i32_0 = arith.constant 0 : i32
    return %c0_i32, %arg1 : i32, i32
  }
  func.func @transform_3(%arg0: i32, %arg1: i32, %arg2: i32) -> (i32, i32) {
    %c0_i32 = arith.constant 0 : i32
    return %arg0, %arg1 : i32, i32
  }
  func.func @transform_4(%arg0: i32, %arg1: i32, %arg2: i32) -> (i32, i32) {
    %c0_i32 = arith.constant 0 : i32
    return %arg0, %arg1 : i32, i32
  }
}

module attributes {stable_mosaic.version = 11 : i64} {
  func.func @_linear_kernel(%arg0: i32, %arg1: i32, %arg2: i32, %arg3: memref<24x32xbf16, #tpu.memory_space<vmem>>, %arg4: memref<32x128xbf16, #tpu.memory_space<vmem>>, %arg5: memref<1x128xf32, #tpu.memory_space<vmem>>, %arg6: memref<24x128xbf16, #tpu.memory_space<vmem>>, %arg7: memref<24x128xf32, #tpu.memory_space<vmem>>) attributes {dimension_semantics = [#tpu.dimension_semantics<parallel>, #tpu.dimension_semantics<parallel>, #tpu.dimension_semantics<arbitrary>], iteration_bounds = array<i64: 1, 1, 1>, scalar_prefetch = 0 : i64, scratch_operands = 1 : i64, tpu.core_type = #tpu.core_type<tc>, window_params = [{transform_indices = @transform_0, window_bounds = array<i64: 24, 32>}, {transform_indices = @transform_1, window_bounds = array<i64: 32, 128>}, {transform_indices = @transform_2, window_bounds = array<i64: 1, 128>}, {transform_indices = @transform_3, window_bounds = array<i64: 24, 128>}]} {
    %c0_i32 = arith.constant 0 : i32
    %0 = arith.cmpi eq, %arg2, %c0_i32 : i32
    %1 = arith.extui %0 : i1 to i32
    %c0_i32_0 = arith.constant 0 : i32
    %2 = arith.cmpi ne, %1, %c0_i32_0 : i32
    scf.if %2 {
      %cst_10 = arith.constant 0.000000e+00 : f32
      %12 = vector.broadcast %cst_10 : f32 to vector<24x128xf32>
      %c0_11 = arith.constant 0 : index
      %c0_12 = arith.constant 0 : index
      %13 = vector.load %arg7[%c0_11, %c0_12] : memref<24x128xf32, #tpu.memory_space<vmem>>, vector<24x128xf32>
      tpu.vector_store %arg7[%c0_11, %c0_12], %12 {strides = array<i32>} : memref<24x128xf32, #tpu.memory_space<vmem>>, vector<24x128xf32>,
    } else {
    }
    %c0 = arith.constant 0 : index
    %c0_1 = arith.constant 0 : index
    %3 = vector.load %arg7[%c0, %c0_1] : memref<24x128xf32, #tpu.memory_space<vmem>>, vector<24x128xf32>
    %c0_2 = arith.constant 0 : index
    %c0_3 = arith.constant 0 : index
    %4 = vector.load %arg3[%c0_2, %c0_3] : memref<24x32xbf16, #tpu.memory_space<vmem>>, vector<24x32xbf16>
    %c0_4 = arith.constant 0 : index
    %c0_5 = arith.constant 0 : index
    %5 = vector.load %arg4[%c0_4, %c0_5] : memref<32x128xbf16, #tpu.memory_space<vmem>>, vector<32x128xbf16>
    %cst = arith.constant dense<0.000000e+00> : vector<24x128xf32>
    %6 = tpu.matmul %4, %5, %cst {dimension_numbers = #tpu.dot_dimension_numbers<[1], [0], [0], [1], [0, 0, 1, 1], [], []>} : vector<24x32xbf16>, vector<32x128xbf16>, vector<24x128xf32> -> vector<24x128xf32>
    %7 = arith.addf %3, %6 : vector<24x128xf32>
    %c0_6 = arith.constant 0 : index
    %c0_7 = arith.constant 0 : index
    %8 = vector.load %arg7[%c0_6, %c0_7] : memref<24x128xf32, #tpu.memory_space<vmem>>, vector<24x128xf32>
    tpu.vector_store %arg7[%c0_6, %c0_7], %7 {strides = array<i32>} : memref<24x128xf32, #tpu.memory_space<vmem>>, vector<24x128xf32>,
    %c0_i32_8 = arith.constant 0 : i32
    %9 = arith.cmpi eq, %arg2, %c0_i32_8 : i32
    %10 = arith.extui %9 : i1 to i32
    %c0_i32_9 = arith.constant 0 : i32
    %11 = arith.cmpi ne, %10, %c0_i32_9 : i32
    scf.if %11 {
      %c0_10 = arith.constant 0 : index
      %c0_11 = arith.constant 0 : index
      %12 = vector.load %arg7[%c0_10, %c0_11] : memref<24x128xf32, #tpu.memory_space<vmem>>, vector<24x128xf32>
      %c0_12 = arith.constant 0 : index
      %c0_13 = arith.constant 0 : index
      %13 = vector.load %arg5[%c0_12, %c0_13] : memref<1x128xf32, #tpu.memory_space<vmem>>, vector<1x128xf32>
      %14 = vector.broadcast %13 : vector<1x128xf32> to vector<24x128xf32>
      %15 = arith.addf %12, %14 : vector<24x128xf32>
      %cst_14 = arith.constant 1.702000e+00 : f32
      %16 = vector.broadcast %cst_14 : f32 to vector<24x128xf32>
      %17 = arith.mulf %16, %15 : vector<24x128xf32>
      %18 = arith.negf %17 : vector<24x128xf32>
      %19 = math.exp %18 : vector<24x128xf32>
      %cst_15 = arith.constant 1.000000e+00 : f32
      %20 = vector.broadcast %cst_15 : f32 to vector<24x128xf32>
      %21 = arith.addf %20, %19 : vector<24x128xf32>
      %22 = arith.divf %20, %21 : vector<24x128xf32>
      %23 = arith.mulf %15, %22 : vector<24x128xf32>
      %24 = arith.truncf %23 : vector<24x128xf32> to vector<24x128xbf16>
      %c0_16 = arith.constant 0 : index
      %c0_17 = arith.constant 0 : index
      %25 = vector.load %arg6[%c0_16, %c0_17] : memref<24x128xbf16, #tpu.memory_space<vmem>>, vector<24x128xbf16>
      tpu.vector_store %arg6[%c0_16, %c0_17], %24 {strides = array<i32>} : memref<24x128xbf16, #tpu.memory_space<vmem>>, vector<24x128xbf16>,
    } else {
    }
    return
  }
  func.func @transform_0(%arg0: i32, %arg1: i32, %arg2: i32) -> (i32, i32) {
    %c0_i32 = arith.constant 0 : i32
    return %arg0, %arg2 : i32, i32
  }
  func.func @transform_1(%arg0: i32, %arg1: i32, %arg2: i32) -> (i32, i32) {
    %c0_i32 = arith.constant 0 : i32
    return %arg2, %arg1 : i32, i32
  }
  func.func @transform_2(%arg0: i32, %arg1: i32, %arg2: i32) -> (i32, i32) {
    %c0_i32 = arith.constant 0 : i32
    %c0_i32_0 = arith.constant 0 : i32
    return %c0_i32, %arg1 : i32, i32
  }
  func.func @transform_3(%arg0: i32, %arg1: i32, %arg2: i32) -> (i32, i32) {
    %c0_i32 = arith.constant 0 : i32
    return %arg0, %arg1 : i32, i32
  }
}

module attributes {stable_mosaic.version = 11 : i64} {
  func.func @_linear_kernel(%arg0: i32, %arg1: i32, %arg2: i32, %arg3: memref<24x128xbf16, #tpu.memory_space<vmem>>, %arg4: memref<128x32xbf16, #tpu.memory_space<vmem>>, %arg5: memref<1x32xf32, #tpu.memory_space<vmem>>, %arg6: memref<24x32xbf16, #tpu.memory_space<vmem>>, %arg7: memref<24x32xbf16, #tpu.memory_space<vmem>>, %arg8: memref<24x32xf32, #tpu.memory_space<vmem>>) attributes {dimension_semantics = [#tpu.dimension_semantics<parallel>, #tpu.dimension_semantics<parallel>, #tpu.dimension_semantics<arbitrary>], iteration_bounds = array<i64: 1, 1, 1>, scalar_prefetch = 0 : i64, scratch_operands = 1 : i64, tpu.core_type = #tpu.core_type<tc>, window_params = [{transform_indices = @transform_0, window_bounds = array<i64: 24, 128>}, {transform_indices = @transform_1, window_bounds = array<i64: 128, 32>}, {transform_indices = @transform_2, window_bounds = array<i64: 1, 32>}, {transform_indices = @transform_3, window_bounds = array<i64: 24, 32>}, {transform_indices = @transform_4, window_bounds = array<i64: 24, 32>}]} {
    %c0_i32 = arith.constant 0 : i32
    %0 = arith.cmpi eq, %arg2, %c0_i32 : i32
    %1 = arith.extui %0 : i1 to i32
    %c0_i32_0 = arith.constant 0 : i32
    %2 = arith.cmpi ne, %1, %c0_i32_0 : i32
    scf.if %2 {
      %cst_10 = arith.constant 0.000000e+00 : f32
      %12 = vector.broadcast %cst_10 : f32 to vector<24x32xf32>
      %c0_11 = arith.constant 0 : index
      %c0_12 = arith.constant 0 : index
      %13 = vector.load %arg8[%c0_11, %c0_12] : memref<24x32xf32, #tpu.memory_space<vmem>>, vector<24x32xf32>
      tpu.vector_store %arg8[%c0_11, %c0_12], %12 {strides = array<i32>} : memref<24x32xf32, #tpu.memory_space<vmem>>, vector<24x32xf32>,
    } else {
    }
    %c0 = arith.constant 0 : index
    %c0_1 = arith.constant 0 : index
    %3 = vector.load %arg8[%c0, %c0_1] : memref<24x32xf32, #tpu.memory_space<vmem>>, vector<24x32xf32>
    %c0_2 = arith.constant 0 : index
    %c0_3 = arith.constant 0 : index
    %4 = vector.load %arg3[%c0_2, %c0_3] : memref<24x128xbf16, #tpu.memory_space<vmem>>, vector<24x128xbf16>
    %c0_4 = arith.constant 0 : index
    %c0_5 = arith.constant 0 : index
    %5 = vector.load %arg4[%c0_4, %c0_5] : memref<128x32xbf16, #tpu.memory_space<vmem>>, vector<128x32xbf16>
    %cst = arith.constant dense<0.000000e+00> : vector<24x32xf32>
    %6 = tpu.matmul %4, %5, %cst {dimension_numbers = #tpu.dot_dimension_numbers<[1], [0], [0], [1], [0, 0, 1, 1], [], []>} : vector<24x128xbf16>, vector<128x32xbf16>, vector<24x32xf32> -> vector<24x32xf32>
    %7 = arith.addf %3, %6 : vector<24x32xf32>
    %c0_6 = arith.constant 0 : index
    %c0_7 = arith.constant 0 : index
    %8 = vector.load %arg8[%c0_6, %c0_7] : memref<24x32xf32, #tpu.memory_space<vmem>>, vector<24x32xf32>
    tpu.vector_store %arg8[%c0_6, %c0_7], %7 {strides = array<i32>} : memref<24x32xf32, #tpu.memory_space<vmem>>, vector<24x32xf32>,
    %c0_i32_8 = arith.constant 0 : i32
    %9 = arith.cmpi eq, %arg2, %c0_i32_8 : i32
    %10 = arith.extui %9 : i1 to i32
    %c0_i32_9 = arith.constant 0 : i32
    %11 = arith.cmpi ne, %10, %c0_i32_9 : i32
    scf.if %11 {
      %c0_10 = arith.constant 0 : index
      %c0_11 = arith.constant 0 : index
      %12 = vector.load %arg8[%c0_10, %c0_11] : memref<24x32xf32, #tpu.memory_space<vmem>>, vector<24x32xf32>
      %c0_12 = arith.constant 0 : index
      %c0_13 = arith.constant 0 : index
      %13 = vector.load %arg5[%c0_12, %c0_13] : memref<1x32xf32, #tpu.memory_space<vmem>>, vector<1x32xf32>
      %14 = vector.broadcast %13 : vector<1x32xf32> to vector<24x32xf32>
      %15 = arith.addf %12, %14 : vector<24x32xf32>
      %c0_14 = arith.constant 0 : index
      %c0_15 = arith.constant 0 : index
      %16 = vector.load %arg6[%c0_14, %c0_15] : memref<24x32xbf16, #tpu.memory_space<vmem>>, vector<24x32xbf16>
      %17 = arith.extf %16 : vector<24x32xbf16> to vector<24x32xf32>
      %18 = arith.addf %15, %17 : vector<24x32xf32>
      %19 = arith.truncf %18 : vector<24x32xf32> to vector<24x32xbf16>
      %c0_16 = arith.constant 0 : index
      %c0_17 = arith.constant 0 : index
      %20 = vector.load %arg7[%c0_16, %c0_17] : memref<24x32xbf16, #tpu.memory_space<vmem>>, vector<24x32xbf16>
      tpu.vector_store %arg7[%c0_16, %c0_17], %19 {strides = array<i32>} : memref<24x32xbf16, #tpu.memory_space<vmem>>, vector<24x32xbf16>,
    } else {
    }
    return
  }
  func.func @transform_0(%arg0: i32, %arg1: i32, %arg2: i32) -> (i32, i32) {
    %c0_i32 = arith.constant 0 : i32
    return %arg0, %arg2 : i32, i32
  }
  func.func @transform_1(%arg0: i32, %arg1: i32, %arg2: i32) -> (i32, i32) {
    %c0_i32 = arith.constant 0 : i32
    return %arg2, %arg1 : i32, i32
  }
  func.func @transform_2(%arg0: i32, %arg1: i32, %arg2: i32) -> (i32, i32) {
    %c0_i32 = arith.constant 0 : i32
    %c0_i32_0 = arith.constant 0 : i32
    return %c0_i32, %arg1 : i32, i32
  }
  func.func @transform_3(%arg0: i32, %arg1: i32, %arg2: i32) -> (i32, i32) {
    %c0_i32 = arith.constant 0 : i32
    return %arg0, %arg1 : i32, i32
  }
  func.func @transform_4(%arg0: i32, %arg1: i32, %arg2: i32) -> (i32, i32) {
    %c0_i32 = arith.constant 0 : i32
    return %arg0, %arg1 : i32, i32
  }
}

module attributes {stable_mosaic.version = 11 : i64} {
  func.func @_l2norm_kernel(%arg0: memref<3x32xf32, #tpu.memory_space<vmem>>, %arg1: memref<3x32xf32, #tpu.memory_space<vmem>>) attributes {dimension_semantics = [], scalar_prefetch = 0 : i64, scratch_operands = 0 : i64, tpu.core_type = #tpu.core_type<tc>} {
    %c0 = arith.constant 0 : index
    %c0_0 = arith.constant 0 : index
    %0 = vector.load %arg0[%c0, %c0_0] : memref<3x32xf32, #tpu.memory_space<vmem>>, vector<3x32xf32>
    %1 = arith.mulf %0, %0 : vector<3x32xf32>
    %cst = arith.constant dense<0.000000e+00> : vector<3xf32>
    %2 = vector.multi_reduction <add>, %1, %cst [1] : vector<3x32xf32> to vector<3xf32>
    %3 = vector.shape_cast %2 : vector<3xf32> to vector<3x1xf32>
    %cst_1 = arith.constant 9.99999996E-13 : f32
    %4 = vector.broadcast %cst_1 : f32 to vector<3x1xf32>
    %5 = arith.addf %3, %4 : vector<3x1xf32>
    %6 = math.rsqrt %5 : vector<3x1xf32>
    %7 = vector.broadcast %6 : vector<3x1xf32> to vector<3x32xf32>
    %8 = arith.mulf %0, %7 : vector<3x32xf32>
    %c0_2 = arith.constant 0 : index
    %c0_3 = arith.constant 0 : index
    %9 = vector.load %arg1[%c0_2, %c0_3] : memref<3x32xf32, #tpu.memory_space<vmem>>, vector<3x32xf32>
    tpu.vector_store %arg1[%c0_2, %c0_3], %8 {strides = array<i32>} : memref<3x32xf32, #tpu.memory_space<vmem>>, vector<3x32xf32>,
    return
  }
}

module attributes {stable_mosaic.version = 11 : i64} {
  func.func @_logits_kernel(%arg0: memref<1xf32, #tpu.memory_space<smem>>, %arg1: memref<2x32xf32, #tpu.memory_space<vmem>>, %arg2: memref<32x3xf32, #tpu.memory_space<vmem>>, %arg3: memref<2x3xf32, #tpu.memory_space<vmem>>) attributes {dimension_semantics = [], scalar_prefetch = 0 : i64, scratch_operands = 0 : i64, tpu.core_type = #tpu.core_type<tc>} {
    %c0 = arith.constant 0 : index
    %0 = memref.load %arg0[%c0] : memref<1xf32, #tpu.memory_space<smem>>
    %c0_0 = arith.constant 0 : index
    %c0_1 = arith.constant 0 : index
    %1 = vector.load %arg1[%c0_0, %c0_1] : memref<2x32xf32, #tpu.memory_space<vmem>>, vector<2x32xf32>
    %c0_2 = arith.constant 0 : index
    %c0_3 = arith.constant 0 : index
    %2 = vector.load %arg2[%c0_2, %c0_3] : memref<32x3xf32, #tpu.memory_space<vmem>>, vector<32x3xf32>
    %cst = arith.constant dense<0.000000e+00> : vector<2x3xf32>
    %3 = tpu.matmul %1, %2, %cst {dimension_numbers = #tpu.dot_dimension_numbers<[1], [0], [0], [1], [0, 0, 1, 1], [], []>} : vector<2x32xf32>, vector<32x3xf32>, vector<2x3xf32> -> vector<2x3xf32>
    %4 = vector.broadcast %0 : f32 to vector<2x3xf32>
    %5 = arith.mulf %4, %3 : vector<2x3xf32>
    %c0_4 = arith.constant 0 : index
    %c0_5 = arith.constant 0 : index
    %6 = vector.load %arg3[%c0_4, %c0_5] : memref<2x3xf32, #tpu.memory_space<vmem>>, vector<2x3xf32>
    tpu.vector_store %arg3[%c0_4, %c0_5], %5 {strides = array<i32>} : memref<2x3xf32, #tpu.memory_space<vmem>>, vector<2x3xf32>,
    return
  }
}

</mosaic_0001>

<bundles_post_ra>
// kernel: clip_forward.39
= control target key start
LH: loop header
LB: loop body
LE: loop exit
PB: predicated region body
PF: predicated region fallthrough
CT: control target
= control target key end

     0   :  { %vm18_vm0 = vcmask 261120   ;;  %vm72_vm1 = vcmask 257024   ;;  %s132_s0 = inlined_call_operand.vmem [shape: bf16[16,32], index: 0, kind: input, shape index: {}]   ;;  %s133_s1 = inlined_call_operand.vmem [shape: f32[1,32], index: 1, kind: input, shape index: {}]   ;;  %s134_s2 = inlined_call_operand.vmem [shape: f32[1,32], index: 2, kind: input, shape index: {}]   ;;  %s135_s3 = inlined_call_operand.vmem [shape: bf16[16,32], index: 3, kind: output, shape index: {}]  }
   0x1   :  { %v86_v0 = vld [vmem:[%s132_s0] sm:$0xff]  }
   0x2   :  { %v87_v1 = vunpack.c.l.bf16 %v86_v0  ;;  %v88_v2 = vunpack.c.h.bf16 %v86_v0  ;;  %v79_v22 = vld [vmem:[%s133_s1] ss:$0 sm:$0xff] }
   0x3   :  { %v80_v24 = vld [vmem:[%s134_s2] ss:$0 sm:$0xff] }
   0x4   :  { %v19_v3 = vsel %vm18_vm0, %v87_v1, 0.0  ;;  %v22_v4 = vsel %vm18_vm0, %v88_v2, 0.0 }
   0x5   :  { %20 = vadd.xlane.f32.xlu0 %v19_v3 }
   0x9   :  { %23 = vadd.xlane.f32.xlu0 %v22_v4 }
  0x92   :  { %v21_v5 = vpop.xlane.xlu0 %20 }
  0x93   :  { %v26_v6 = vmul.f32 0.03125, %v21_v5 }
  0x95   :  { %v28_v7 = vsub.f32 %v87_v1, %v26_v6 }
  0x96   :  { %v24_v8 = vpop.xlane.xlu0 %23 }
  0x97   :  { %v27_v9 = vmul.f32 0.03125, %v24_v8  ;;  %v30_v10 = vmul.f32 %v28_v7, %v28_v7 }
  0x99   :  { %v29_v11 = vsub.f32 %v88_v2, %v27_v9  ;;  %v32_v12 = vsel %vm18_vm0, %v30_v10, 0.0 }
  0x9a   :  { %33 = vadd.xlane.f32.xlu1 %v32_v12 }
  0x9b   :  { %v31_v13 = vmul.f32 %v29_v11, %v29_v11 }
  0x9d   :  { %v35_v14 = vsel %vm18_vm0, %v31_v13, 0.0 }
  0x9e   :  { %36 = vadd.xlane.f32.xlu1 %v35_v14 }
 0x127   :  { %v34_v15 = vpop.xlane.xlu1 %33 }
 0x128   :  { %v38_v16 = vmul.f32 0.03125, %v34_v15 }
 0x12a   :  { %v40_v17 = vadd.f32 1e-05, %v38_v16 }
 0x12b   :  { %v37_v18 = vpop.xlane.xlu1 %36 }
 0x12c   :  { %89 = vrsqrt.f32 %v40_v17  ;;  %v39_v19 = vmul.f32 0.03125, %v37_v18 }
 0x12e   :  { %v41_v20 = vadd.f32 1e-05, %v39_v19 }
 0x130   :  { %91 = vrsqrt.f32 %v41_v20 }
 0x136   :  { %v90_v21 = vpop.eup %89 }
 0x137   :  { %v44_v23 = vmul.f32 %v90_v21, %v28_v7 }
 0x139   :  { %v53_v25 = vmul.f32 %v79_v22, %v44_v23 }
 0x13a   :  { %v92_v26 = vpop.eup %91 }
 0x13b   :  { %v62_v27 = vadd.f32 %v80_v24, %v53_v25  ;;  %v45_v28 = vmul.f32 %v92_v26, %v29_v11 }
 0x13d   :  { %v83_v29 = vpack.c.bf16 %v62_v27, %v62_v27  ;;  %v54_v30 = vmul.f32 %v79_v22, %v45_v28 }
 0x13f   :  { %73 = vst.msk [vmem:[%s135_s3] sm:$0xf] %vm72_vm1, %v83_v29  ;;  %v63_v31 = vadd.f32 %v80_v24, %v54_v30 }
 0x141   :  { %v84_v32 = vpack.c.bf16 %v63_v31, %v63_v31 }
 0x143   :  { %74 = vst.msk [vmem:[%s135_s3 + $0x4] sm:$0xf] %vm72_vm1, %v84_v32 }

// kernel: clip_forward.38
= control target key start
LH: loop header
LB: loop body
LE: loop exit
PB: predicated region body
PF: predicated region fallthrough
CT: control target
= control target key end

     0   :  { %vm19_vm0 = vcmask 261120   ;;  %v223_v0 = vmov 0   ;;  %v224_v2 = vmov 0.0   ;;  %vm125_vm1 = vcmask 523264   ;;  %s292_s1 = inlined_call_operand.vmem [shape: bf16[192,32], index: 1, kind: input, shape index: {}]   ;;  %s293_s0 = inlined_call_operand.vmem [shape: bf16[8,192], index: 0, kind: input, shape index: {}]   ;;  %s294_s2 = inlined_call_operand.vmem [shape: f32[1,32], index: 2, kind: input, shape index: {}]   ;;  %s295_s3 = inlined_call_operand.vmem [shape: bf16[8,32], index: 3, kind: output, shape index: {}]  }
   0x1   :  { %129 = vmatprep.subr.bf16.mxu0 %v223_v0  ;;  %v209_v1 = vld [vmem:[%s292_s1] sm:$0xff]   ;;  %20 = vst.msk [vmem:[#allocation2] sm:$0xff] %vm19_vm0, %v224_v2  ;;  %v210_v3 = vld [vmem:[%s292_s1 + $0x8] sm:$0xff]   ;;  %v211_v4 = vld [vmem:[%s292_s1 + $0x10] sm:$0xff]   ;;  %vm185_vm2 = vcmask 257024  }
   0x2   :  { %130 = vmatpush1.bf16.msra.mxu0 %v209_v1  ;;  %v212_v5 = vld [vmem:[%s292_s1 + $0x18] sm:$0xff]   ;;  %v22_v6 = vld [vmem:[%s293_s0] sm:$0xff]  ;;  %v214_v9 = vld [vmem:[%s292_s1 + $0x28] sm:$0xff]  }
   0x3   :  { %131 = vmatprep.subr.bf16.mxu0 %v223_v0  ;;  %v192_v7 = vcombine.high %v22_v6, %v22_v6  ;;  %v213_v8 = vld [vmem:[%s292_s1 + $0x20] sm:$0xff]   ;;  %v215_v10 = vld [vmem:[%s292_s1 + $0x30] sm:$0xff]   ;;  %v216_v11 = vld [vmem:[%s292_s1 + $0x38] sm:$0xff]   ;;  %v191_v16 = vcombine.low %v22_v6, %v22_v6 }
   0x4   :  { %v217_v12 = vld [vmem:[%s292_s1 + $0x40] sm:$0xff]   ;;  %v218_v13 = vld [vmem:[%s292_s1 + $0x48] sm:$0xff]   ;;  %v219_v14 = vld [vmem:[%s292_s1 + $0x50] sm:$0xff]  }
   0x5   :  { %205 = vmatprep.mubr.msk.bf16.mxu0 %vm125_vm1, %v192_v7  ;;  %v220_v15 = vld [vmem:[%s292_s1 + $0x58] sm:$0xff]   ;;  %v206_v23 = vld [vmem:[%s294_s2] ss:$0 sm:$0xff] }
   0x6   :  { %132 = vmatpush1.bf16.msra.mxu0 %v210_v3 }
   0x7   :  { %133 = vmatprep.subr.bf16.mxu0 %v223_v0 }
   0x8   :  { %v21_v17 = vld [vmem:[#allocation2] sm:$0xff] }
   0xa   :  { %134 = vmatpush1.bf16.msra.mxu0 %v211_v4 }
   0xb   :  { %135 = vmatprep.subr.bf16.mxu0 %v223_v0 }
   0xe   :  { %136 = vmatpush1.bf16.msra.mxu0 %v212_v5 }
   0xf   :  { %137 = vmatprep.subr.bf16.mxu0 %v223_v0 }
  0x12   :  { %138 = vmatpush1.bf16.msra.mxu0 %v213_v8 }
  0x13   :  { %139 = vmatprep.subr.bf16.mxu0 %v223_v0 }
  0x16   :  { %140 = vmatpush1.bf16.msra.mxu0 %v214_v9 }
  0x17   :  { %141 = vmatprep.subr.bf16.mxu0 %v223_v0 }
  0x1a   :  { %142 = vmatpush1.bf16.msra.mxu0 %v215_v10 }
  0x1b   :  { %143 = vmatprep.subr.bf16.mxu0 %v223_v0 }
  0x1e   :  { %144 = vmatpush1.bf16.msra.mxu0 %v216_v11 }
  0x1f   :  { %145 = vmatprep.subr.bf16.mxu0 %v223_v0 }
  0x22   :  { %146 = vmatpush1.bf16.msra.mxu0 %v217_v12 }
  0x23   :  { %147 = vmatprep.subr.bf16.mxu0 %v223_v0 }
  0x26   :  { %148 = vmatpush1.bf16.msra.mxu0 %v218_v13 }
  0x27   :  { %149 = vmatprep.subr.bf16.mxu0 %v223_v0 }
  0x2a   :  { %150 = vmatpush1.bf16.msra.mxu0 %v219_v14 }
  0x2b   :  { %151 = vmatprep.subr.bf16.mxu0 %v223_v0 }
  0x2e   :  { %152 = vmatpush1.bf16.msra.mxu0 %v220_v15 }
  0x31   :  { %162 = vmatmul.mubr.bf16.vlgmr.msra.gmra.mrb[0].mxu0 %v191_v16 }
 0x104   :  { %v163_v18 = vpop.f32.mrb[0].mxu0 }
 0x105   :  { %v169_v19 = vadd.f32 %v163_v18, %v21_v17  ;;  %v165_v20 = vpop.f32.mrb[1].mxu0 }
 0x106   :  { %v166_v21 = vpop.f32.mrb[2].mxu0 }
 0x107   :  { %171 = vst.msk [vmem:[#allocation2] sm:$0xff] %vm19_vm0, %v169_v19  ;;  %v167_v22 = vpop.f32.mrb[3].mxu0 }
 0x10e   :  { %v175_v24 = vld [vmem:[#allocation2] sm:$0xff] }
 0x10f   :  { %v183_v25 = vadd.f32 %v206_v23, %v175_v24 }
 0x111   :  { %v184_v26 = vpack.c.bf16 %v183_v25, %v183_v25 }
 0x113   :  { %186 = vst.msk [vmem:[%s295_s3] sm:$0xf] %vm185_vm2, %v184_v26 }

// kernel: clip_forward.41
= control target key start
LH: loop header
LB: loop body
LE: loop exit
PB: predicated region body
PF: predicated region fallthrough
CT: control target
= control target key end

     0   :  { %vm19_vm0 = vcmask 785408   ;;  %v151_v0 = vmov 0.0   ;;  %vm152_vm1 = vmmov 0   ;;  %vm47_vm2 = vcmask 261120   ;;  %s195_s1 = inlined_call_operand.vmem [shape: bf16[32,96], index: 1, kind: input, shape index: {}]   ;;  %s196_s0 = inlined_call_operand.vmem [shape: bf16[16,32], index: 0, kind: input, shape index: {}]   ;;  %s197_s2 = inlined_call_operand.vmem [shape: f32[1,96], index: 2, kind: input, shape index: {}]   ;;  %s198_s3 = inlined_call_operand.vmem [shape: bf16[16,96], index: 3, kind: output, shape index: {}]  }
   0x1   :  { %138 = vmatprep.subr.bf16.mxu0 %v151_v0  ;;  %v148_v1 = vld [vmem:[%s195_s1] sm:$0xff]   ;;  %142 = vmatprep.mubr.msk.bf16.mxu0 %vm152_vm1, %v151_v0  ;;  %20 = vst.msk [vmem:[#allocation2] sm:$0xff] %vm19_vm0, %v151_v0  ;;  %21 = vst.msk [vmem:[#allocation2 + $0x8] sm:$0xff] %vm19_vm0, %v151_v0  ;;  %v149_v2 = vld [vmem:[%s195_s1 + $0x8] sm:$0xff]   ;;  %vm119_vm3 = vcmask 781312  }
   0x2   :  { %139 = vmatpush3.bf16.msra.mxu0 %v148_v1  ;;  %v150_v3 = vld [vmem:[%s196_s0] sm:$0xff]  }
   0x3   :  { %140 = vmatprep.subr.bf16.mxu0 %v151_v0  ;;  %v130_v12 = vld [vmem:[%s197_s2] ss:$0 sm:$0xff] }
   0x6   :  { %141 = vmatpush3.bf16.msra.mxu0 %v149_v2 }
   0x8   :  { %v22_v4 = vld [vmem:[#allocation2] sm:$0xff]  ;;  %v23_v6 = vld [vmem:[#allocation2 + $0x8] sm:$0xff] }
   0x9   :  { %143 = vmatmul.mubr.msk.bf16.vlgmr.msra.gmra.mrb[0].mxu0 %vm47_vm2, %v150_v3 }
  0xdc   :  { %v85_v5 = vpop.f32.mrb[0].mxu0 }
  0xdd   :  { %v92_v7 = vadd.f32 %v85_v5, %v22_v4  ;;  %v144_v8 = vpop.f32.mrb[1].mxu0 }
  0xde   :  { %v88_v9 = vpop.f32.mrb[2].mxu0 }
  0xdf   :  { %95 = vst.msk [vmem:[#allocation2] sm:$0xff] %vm19_vm0, %v92_v7  ;;  %v93_v10 = vadd.f32 %v88_v9, %v23_v6  ;;  %v145_v11 = vpop.f32.mrb[3].mxu0 }
  0xe1   :  { %96 = vst.msk [vmem:[#allocation2 + $0x8] sm:$0xff] %vm19_vm0, %v93_v10 }
  0xe6   :  { %v100_v13 = vld [vmem:[#allocation2] sm:$0xff] }
  0xe7   :  { %v109_v14 = vadd.f32 %v130_v12, %v100_v13 }
  0xe8   :  { %v101_v15 = vld [vmem:[#allocation2 + $0x8] sm:$0xff] }
  0xe9   :  { %v133_v16 = vpack.c.bf16 %v109_v14, %v109_v14  ;;  %v110_v17 = vadd.f32 %v130_v12, %v101_v15 }
  0xeb   :  { %120 = vst.msk [vmem:[%s198_s3] sm:$0xf] %vm119_vm3, %v133_v16  ;;  %v134_v18 = vpack.c.bf16 %v110_v17, %v110_v17 }
  0xed   :  { %121 = vst.msk [vmem:[%s198_s3 + $0x4] sm:$0xf] %vm119_vm3, %v134_v18 }

// kernel: clip_forward.43
= control target key start
LH: loop header
LB: loop body
LE: loop exit
PB: predicated region body
PF: predicated region fallthrough
CT: control target
= control target key end

     0   :  { %vm22_vm0 = vcmask 261120   ;;  %v163_v0 = vmov 0.0   ;;  %vm164_vm1 = vmmov 0   ;;  %vm127_vm2 = vcmask 257024   ;;  %s216_s1 = inlined_call_operand.vmem [shape: bf16[32,32], index: 1, kind: input, shape index: {}]   ;;  %s217_s0 = inlined_call_operand.vmem [shape: bf16[16,32], index: 0, kind: input, shape index: {}]   ;;  %s218_s3 = inlined_call_operand.vmem [shape: bf16[16,32], index: 3, kind: input, shape index: {}]   ;;  %s219_s2 = inlined_call_operand.vmem [shape: f32[1,32], index: 2, kind: input, shape index: {}]   ;;  %s220_s4 = inlined_call_operand.vmem [shape: bf16[16,32], index: 4, kind: output, shape index: {}]  }
   0x1   :  { %150 = vmatprep.subr.bf16.mxu0 %v163_v0  ;;  %v160_v1 = vld [vmem:[%s216_s1] sm:$0xff]   ;;  %154 = vmatprep.mubr.msk.bf16.mxu0 %vm164_vm1, %v163_v0  ;;  %23 = vst.msk [vmem:[#allocation2] sm:$0xff] %vm22_vm0, %v163_v0  ;;  %24 = vst.msk [vmem:[#allocation2 + $0x8] sm:$0xff] %vm22_vm0, %v163_v0  ;;  %v161_v2 = vld [vmem:[%s216_s1 + $0x8] sm:$0xff]  }
   0x2   :  { %151 = vmatpush3.bf16.msra.mxu0 %v160_v1  ;;  %v162_v3 = vld [vmem:[%s217_s0] sm:$0xff]  }
   0x3   :  { %152 = vmatprep.subr.bf16.mxu0 %v163_v0  ;;  %v144_v12 = vld [vmem:[%s218_s3] sm:$0xff]  }
   0x4   :  { %v138_v13 = vld [vmem:[%s219_s2] ss:$0 sm:$0xff]  ;;  %v145_v14 = vunpack.c.l.bf16 %v144_v12  ;;  %v146_v17 = vunpack.c.h.bf16 %v144_v12 }
   0x6   :  { %153 = vmatpush3.bf16.msra.mxu0 %v161_v2 }
   0x8   :  { %v25_v4 = vld [vmem:[#allocation2] sm:$0xff]  ;;  %v26_v6 = vld [vmem:[#allocation2 + $0x8] sm:$0xff] }
   0x9   :  { %155 = vmatmul.mubr.msk.bf16.vlgmr.msra.gmra.mrb[0].mxu0 %vm22_vm0, %v162_v3 }
  0xdc   :  { %v88_v5 = vpop.f32.mrb[0].mxu0 }
  0xdd   :  { %v95_v7 = vadd.f32 %v88_v5, %v25_v4  ;;  %v156_v8 = vpop.f32.mrb[1].mxu0 }
  0xde   :  { %v91_v9 = vpop.f32.mrb[2].mxu0 }
  0xdf   :  { %97 = vst.msk [vmem:[#allocation2] sm:$0xff] %vm22_vm0, %v95_v7  ;;  %v96_v10 = vadd.f32 %v91_v9, %v26_v6  ;;  %v157_v11 = vpop.f32.mrb[3].mxu0 }
  0xe1   :  { %98 = vst.msk [vmem:[#allocation2 + $0x8] sm:$0xff] %vm22_vm0, %v96_v10 }
  0xe6   :  { %v102_v15 = vld [vmem:[#allocation2] sm:$0xff] }
  0xe7   :  { %v111_v16 = vadd.f32 %v138_v13, %v102_v15 }
  0xe8   :  { %v103_v18 = vld [vmem:[#allocation2 + $0x8] sm:$0xff] }
  0xe9   :  { %v117_v19 = vadd.f32 %v145_v14, %v111_v16  ;;  %v112_v20 = vadd.f32 %v138_v13, %v103_v18 }
  0xeb   :  { %v141_v21 = vpack.c.bf16 %v117_v19, %v117_v19  ;;  %v118_v22 = vadd.f32 %v146_v17, %v112_v20 }
  0xed   :  { %128 = vst.msk [vmem:[%s220_s4] sm:$0xf] %vm127_vm2, %v141_v21  ;;  %v142_v23 = vpack.c.bf16 %v118_v22, %v118_v22 }
  0xef   :  { %129 = vst.msk [vmem:[%s220_s4 + $0x4] sm:$0xf] %vm127_vm2, %v142_v23 }

// kernel: clip_forward.46
= control target key start
LH: loop header
LB: loop body
LE: loop exit
PB: predicated region body
PF: predicated region fallthrough
CT: control target
= control target key end

     0   :  { %vm22_vm0 = vcmask 261120   ;;  %v238_v0 = vmov 0.0   ;;  %vm239_vm1 = vmmov 0   ;;  %vm173_vm2 = vcmask 257024   ;;  %s308_s1 = inlined_call_operand.vmem [shape: bf16[128,32], index: 1, kind: input, shape index: {}]   ;;  %s309_s0 = inlined_call_operand.vmem [shape: bf16[16,128], index: 0, kind: input, shape index: {}]   ;;  %s310_s3 = inlined_call_operand.vmem [shape: bf16[16,32], index: 3, kind: input, shape index: {}]   ;;  %s311_s2 = inlined_call_operand.vmem [shape: f32[1,32], index: 2, kind: input, shape index: {}]   ;;  %s312_s4 = inlined_call_operand.vmem [shape: bf16[16,32], index: 4, kind: output, shape index: {}]  }
   0x1   :  { %207 = vmatprep.subr.bf16.mxu0 %v238_v0  ;;  %v229_v1 = vld [vmem:[%s308_s1] sm:$0xff]   ;;  %223 = vmatprep.mubr.msk.bf16.mxu0 %vm239_vm1, %v238_v0  ;;  %23 = vst.msk [vmem:[#allocation2] sm:$0xff] %vm22_vm0, %v238_v0  ;;  %24 = vst.msk [vmem:[#allocation2 + $0x8] sm:$0xff] %vm22_vm0, %v238_v0  ;;  %v230_v2 = vld [vmem:[%s308_s1 + $0x8] sm:$0xff]  }
   0x2   :  { %208 = vmatpush3.bf16.msra.mxu0 %v229_v1  ;;  %v231_v3 = vld [vmem:[%s308_s1 + $0x10] sm:$0xff]   ;;  %v232_v4 = vld [vmem:[%s308_s1 + $0x18] sm:$0xff]   ;;  %v233_v5 = vld [vmem:[%s308_s1 + $0x20] sm:$0xff]  }
   0x3   :  { %209 = vmatprep.subr.bf16.mxu0 %v238_v0  ;;  %v234_v6 = vld [vmem:[%s308_s1 + $0x28] sm:$0xff]   ;;  %v235_v7 = vld [vmem:[%s308_s1 + $0x30] sm:$0xff]   ;;  %v236_v8 = vld [vmem:[%s308_s1 + $0x38] sm:$0xff]  }
   0x4   :  { %v237_v9 = vld [vmem:[%s309_s0] sm:$0xff]  }
   0x5   :  { %v195_v18 = vld [vmem:[%s310_s3] sm:$0xff]  }
   0x6   :  { %210 = vmatpush3.bf16.msra.mxu0 %v230_v2  ;;  %v189_v19 = vld [vmem:[%s311_s2] ss:$0 sm:$0xff]  ;;  %v196_v20 = vunpack.c.l.bf16 %v195_v18  ;;  %v197_v23 = vunpack.c.h.bf16 %v195_v18 }
   0x7   :  { %211 = vmatprep.subr.bf16.mxu0 %v238_v0 }
   0x8   :  { %v25_v10 = vld [vmem:[#allocation2] sm:$0xff]  ;;  %v26_v12 = vld [vmem:[#allocation2 + $0x8] sm:$0xff] }
   0xa   :  { %212 = vmatpush3.bf16.msra.mxu0 %v231_v3 }
   0xb   :  { %213 = vmatprep.subr.bf16.mxu0 %v238_v0 }
   0xe   :  { %214 = vmatpush3.bf16.msra.mxu0 %v232_v4 }
   0xf   :  { %215 = vmatprep.subr.bf16.mxu0 %v238_v0 }
  0x12   :  { %216 = vmatpush3.bf16.msra.mxu0 %v233_v5 }
  0x13   :  { %217 = vmatprep.subr.bf16.mxu0 %v238_v0 }
  0x16   :  { %218 = vmatpush3.bf16.msra.mxu0 %v234_v6 }
  0x17   :  { %219 = vmatprep.subr.bf16.mxu0 %v238_v0 }
  0x1a   :  { %220 = vmatpush3.bf16.msra.mxu0 %v235_v7 }
  0x1b   :  { %221 = vmatprep.subr.bf16.mxu0 %v238_v0 }
  0x1e   :  { %222 = vmatpush3.bf16.msra.mxu0 %v236_v8 }
  0x21   :  { %224 = vmatmul.mubr.bf16.vlgmr.msra.gmra.mrb[0].mxu0 %v237_v9 }
  0xf4   :  { %v133_v11 = vpop.f32.mrb[0].mxu0 }
  0xf5   :  { %v140_v13 = vadd.f32 %v133_v11, %v25_v10  ;;  %v225_v14 = vpop.f32.mrb[1].mxu0 }
  0xf6   :  { %v136_v15 = vpop.f32.mrb[2].mxu0 }
  0xf7   :  { %143 = vst.msk [vmem:[#allocation2] sm:$0xff] %vm22_vm0, %v140_v13  ;;  %v141_v16 = vadd.f32 %v136_v15, %v26_v12  ;;  %v226_v17 = vpop.f32.mrb[3].mxu0 }
  0xf9   :  { %144 = vst.msk [vmem:[#allocation2 + $0x8] sm:$0xff] %vm22_vm0, %v141_v16 }
  0xfe   :  { %v148_v21 = vld [vmem:[#allocation2] sm:$0xff] }
  0xff   :  { %v157_v22 = vadd.f32 %v189_v19, %v148_v21 }
 0x100   :  { %v149_v24 = vld [vmem:[#allocation2 + $0x8] sm:$0xff] }
 0x101   :  { %v163_v25 = vadd.f32 %v196_v20, %v157_v22  ;;  %v158_v26 = vadd.f32 %v189_v19, %v149_v24 }
 0x103   :  { %v192_v27 = vpack.c.bf16 %v163_v25, %v163_v25  ;;  %v164_v28 = vadd.f32 %v197_v23, %v158_v26 }
 0x105   :  { %174 = vst.msk [vmem:[%s312_s4] sm:$0xf] %vm173_vm2, %v192_v27  ;;  %v193_v29 = vpack.c.bf16 %v164_v28, %v164_v28 }
 0x107   :  { %175 = vst.msk [vmem:[%s312_s4 + $0x4] sm:$0xf] %vm173_vm2, %v193_v29 }

// kernel: clip_forward.42
= control target key start
LH: loop header
LB: loop body
LE: loop exit
PB: predicated region body
PF: predicated region fallthrough
CT: control target
= control target key end

     0   :  { %vm37_vm0 = vcmask 64512   ;;  %v1397_v0 = vmov 0.0   ;;  %vm1398_vm1 = vmmov 0   ;;  %vm20_vm2 = vcmask 7168   ;;  %s1830_s1 = inlined_call_operand.vmem [shape: bf16[8,8,8], index: 1, kind: input, shape index: {}]   ;;  %s1831_s0 = inlined_call_operand.vmem [shape: bf16[8,8,8], index: 0, kind: input, shape index: {}]   ;;  %s1832_s2 = inlined_call_operand.vmem [shape: bf16[8,8,8], index: 2, kind: input, shape index: {}]   ;;  %s1833_s3 = inlined_call_operand.vmem [shape: bf16[8,8,8], index: 3, kind: output, shape index: {}]  }
   0x1   :  { %1247 = vmatprep.subr.bf16.mxu0 %v1397_v0  ;;  %v62_v1 = vld [vmem:[%s1830_s1] sm:$0xf]  ;;  %38 = vst.msk [vmem:[#allocation4] sm:$0xff] %vm37_vm0, %v1397_v0  ;;  %39 = vst.msk [vmem:[#allocation4 + $0x8] sm:$0xff] %vm37_vm0, %v1397_v0  ;;  %1253 = vmatprep.subr.bf16.mxu1 %v1397_v0  ;;  %v63_v2 = vld [vmem:[%s1830_s1 + $0x4] sm:$0xf]  ;;  %v440_v34 = vlaneseq }
   0x2   :  { %40 = vst.msk [vmem:[#allocation4 + $0x10] sm:$0xff] %vm37_vm0, %v1397_v0  ;;  %41 = vst.msk [vmem:[#allocation4 + $0x18] sm:$0xff] %vm37_vm0, %v1397_v0  ;;  %v75_v3 = vsel %vm37_vm0, %v62_v1, 0  ;;  %v121_v4 = vsel %vm37_vm0, %v63_v2, 0  ;;  %1249 = vmatprep.mubr.msk.bf16.mxu0 %vm1398_vm1, %v1397_v0  ;;  %1255 = vmatprep.mubr.msk.bf16.mxu1 %vm1398_vm1, %v1397_v0  ;;  %v46_v5 = vld [vmem:[%s1831_s0] sm:$0xf] }
   0x3   :  { %42 = vst.msk [vmem:[#allocation4 + $0x20] sm:$0xff] %vm37_vm0, %v1397_v0  ;;  %43 = vst.msk [vmem:[#allocation4 + $0x28] sm:$0xff] %vm37_vm0, %v1397_v0  ;;  %1248 = vmatpush3.bf16.xpose.msra.mxu0 %v75_v3  ;;  %1254 = vmatpush3.bf16.xpose.msra.mxu1 %v121_v4  ;;  %v47_v6 = vld [vmem:[%s1831_s0 + $0x4] sm:$0xf]  ;;  %v64_v7 = vld [vmem:[%s1830_s1 + $0x8] sm:$0xf] }
   0x4   :  { %44 = vst.msk [vmem:[#allocation4 + $0x30] sm:$0xff] %vm37_vm0, %v1397_v0  ;;  %45 = vst.msk [vmem:[#allocation4 + $0x38] sm:$0xff] %vm37_vm0, %v1397_v0  ;;  %1259 = vmatprep.subr.bf16.mxu0 %v1397_v0  ;;  %1265 = vmatprep.subr.bf16.mxu1 %v1397_v0  ;;  %v65_v8 = vld [vmem:[%s1830_s1 + $0xc] sm:$0xf]  ;;  %v54_v9 = vmul.bf16 1052065461, %v46_v5 }
   0x5   :  { %v55_v10 = vmul.bf16 1052065461, %v47_v6  ;;  %v167_v11 = vsel %vm37_vm0, %v64_v7, 0  ;;  %v213_v12 = vsel %vm37_vm0, %v65_v8, 0  ;;  %v48_v13 = vld [vmem:[%s1831_s0 + $0x8] sm:$0xf] }
   0x6   :  { %v49_v14 = vld [vmem:[%s1831_s0 + $0xc] sm:$0xf]  ;;  %v66_v15 = vld [vmem:[%s1830_s1 + $0x10] sm:$0xf]  ;;  %v67_v16 = vld [vmem:[%s1830_s1 + $0x14] sm:$0xf] }
   0x7   :  { %v56_v17 = vmul.bf16 1052065461, %v48_v13  ;;  %v57_v18 = vmul.bf16 1052065461, %v49_v14  ;;  %v259_v19 = vsel %vm37_vm0, %v66_v15, 0  ;;  %v305_v20 = vsel %vm37_vm0, %v67_v16, 0 }
   0x8   :  { %v50_v21 = vld [vmem:[%s1831_s0 + $0x10] sm:$0xf]  ;;  %v51_v22 = vld [vmem:[%s1831_s0 + $0x14] sm:$0xf]  ;;  %v68_v23 = vld [vmem:[%s1830_s1 + $0x18] sm:$0xf] }
   0x9   :  { %v69_v24 = vld [vmem:[%s1830_s1 + $0x1c] sm:$0xf]  ;;  %v58_v25 = vmul.bf16 1052065461, %v50_v21  ;;  %v59_v26 = vmul.bf16 1052065461, %v51_v22 }
   0xa   :  { %1250 = vmatmul.mubr.msk.bf16.vlgmr.msra.gmra.mrb[0].mxu0 %vm37_vm0, %v54_v9  ;;  %1256 = vmatmul.mubr.msk.bf16.vlgmr.msra.gmra.mrb[0].mxu1 %vm37_vm0, %v55_v10  ;;  %v351_v27 = vsel %vm37_vm0, %v68_v23, 0  ;;  %v397_v28 = vsel %vm37_vm0, %v69_v24, 0  ;;  %v52_v29 = vld [vmem:[%s1831_s0 + $0x18] sm:$0xf]  ;;  %v53_v30 = vld [vmem:[%s1831_s0 + $0x1c] sm:$0xf] }
   0xb   :  { %1260 = vmatpush3.bf16.xpose.msra.mxu0 %v167_v11  ;;  %1266 = vmatpush3.bf16.xpose.msra.mxu1 %v213_v12  ;;  %v60_v31 = vmul.bf16 1052065461, %v52_v29  ;;  %v61_v32 = vmul.bf16 1052065461, %v53_v30  ;;  %v1399_v33 = vmov -1e+30  }
   0xc   :  { %1261 = vmatprep.mubr.msk.bf16.mxu0 %vm1398_vm1, %v1397_v0  ;;  %1271 = vmatprep.subr.bf16.mxu0 %v1397_v0  ;;  %21 = vst.msk [vmem:[#allocation2] sm:$0xff] %vm20_vm2, %v1399_v33  ;;  %22 = vst.msk [vmem:[#allocation2 + $0x8] sm:$0xff] %vm20_vm2, %v1399_v33  ;;  %v441_v35 = vand.u32 127, %v440_v34  ;;  %v1400_v9 = vmov 0   ;;  %vm713_vm4 = vcmask 1043456   ;;  %vm1186_vm5 = vcmask 60416  }
   0xd   :  { %1267 = vmatprep.mubr.msk.bf16.mxu1 %vm1398_vm1, %v1397_v0  ;;  %1277 = vmatprep.subr.bf16.mxu1 %v1397_v0  ;;  %23 = vst.msk [vmem:[#allocation2 + $0x10] sm:$0xff] %vm20_vm2, %v1399_v33  ;;  %24 = vst.msk [vmem:[#allocation2 + $0x18] sm:$0xff] %vm20_vm2, %v1399_v33 }
   0xe   :  { %25 = vst.msk [vmem:[#allocation2 + $0x20] sm:$0xff] %vm20_vm2, %v1399_v33  ;;  %26 = vst.msk [vmem:[#allocation2 + $0x28] sm:$0xff] %vm20_vm2, %v1399_v33  ;;  %vm444_vm3 = vcmp.lt.s32.totalorder %v441_v35, 5  ;;  %1347 = vset.pattern.permute.xlu0 %v1400_v9  ;;  %1348 = vset.pattern.permute.xlu1 %v1400_v9  ;;  %v708_v9 = vld [vmem:[%s1832_s2 + $0x18] sm:$0xf] }
   0xf   :  { %27 = vst.msk [vmem:[#allocation2 + $0x30] sm:$0xff] %vm20_vm2, %v1399_v33  ;;  %28 = vst.msk [vmem:[#allocation2 + $0x38] sm:$0xff] %vm20_vm2, %v1399_v33 }
  0x10   :  { %29 = vst.msk [vmem:[#allocation3] sm:$0xff] %vm20_vm2, %v1397_v0  ;;  %30 = vst.msk [vmem:[#allocation3 + $0x8] sm:$0xff] %vm20_vm2, %v1397_v0 }
  0x11   :  { %31 = vst.msk [vmem:[#allocation3 + $0x10] sm:$0xff] %vm20_vm2, %v1397_v0  ;;  %32 = vst.msk [vmem:[#allocation3 + $0x18] sm:$0xff] %vm20_vm2, %v1397_v0 }
  0x12   :  { %1262 = vmatmul.mubr.msk.bf16.vlgmr.msra.gmra.mrb[4].mxu0 %vm37_vm0, %v56_v17  ;;  %1268 = vmatmul.mubr.msk.bf16.vlgmr.msra.gmra.mrb[4].mxu1 %vm37_vm0, %v57_v18  ;;  %33 = vst.msk [vmem:[#allocation3 + $0x20] sm:$0xff] %vm20_vm2, %v1397_v0  ;;  %34 = vst.msk [vmem:[#allocation3 + $0x28] sm:$0xff] %vm20_vm2, %v1397_v0 }
  0x13   :  { %1272 = vmatpush3.bf16.xpose.msra.mxu0 %v259_v19  ;;  %1278 = vmatpush3.bf16.xpose.msra.mxu1 %v305_v20  ;;  %35 = vst.msk [vmem:[#allocation3 + $0x30] sm:$0xff] %vm20_vm2, %v1397_v0  ;;  %36 = vst.msk [vmem:[#allocation3 + $0x38] sm:$0xff] %vm20_vm2, %v1397_v0  ;;  %v1595_v22 = vld [vmem:[#allocation2] sm:$0xff] }
  0x14   :  { %1273 = vmatprep.mubr.msk.bf16.mxu0 %vm1398_vm1, %v1397_v0  ;;  %1283 = vmatprep.subr.bf16.mxu0 %v1397_v0  ;;  %v1610_v29 = vld [vmem:[#allocation2 + $0x10] sm:$0xff]  ;;  %v1620_v33 = vld [vmem:[#allocation2 + $0x18] sm:$0xff] }
  0x15   :  { %1279 = vmatprep.mubr.msk.bf16.mxu1 %vm1398_vm1, %v1397_v0  ;;  %1289 = vmatprep.subr.bf16.mxu1 %v1397_v0 }
  0x1a   :  { %1274 = vmatmul.mubr.msk.bf16.vlgmr.msra.gmra.mrb[8].mxu0 %vm37_vm0, %v58_v25  ;;  %1280 = vmatmul.mubr.msk.bf16.vlgmr.msra.gmra.mrb[8].mxu1 %vm37_vm0, %v59_v26  ;;  %v1600_v25 = vld [vmem:[#allocation2 + $0x8] sm:$0xff] }
  0x1b   :  { %1284 = vmatpush3.bf16.xpose.msra.mxu0 %v351_v27  ;;  %1290 = vmatpush3.bf16.xpose.msra.mxu1 %v397_v28 }
  0x1c   :  { %1285 = vmatprep.mubr.msk.bf16.mxu0 %vm1398_vm1, %v1397_v0  ;;  %1291 = vmatprep.mubr.msk.bf16.mxu1 %vm1398_vm1, %v1397_v0 }
  0x1d   :  { %1295 = vmatprep.subr.bf16.mxu0 %v1397_v0  ;;  %1301 = vmatprep.subr.bf16.mxu1 %v1397_v0 }
  0x22   :  { %1286 = vmatmul.mubr.msk.bf16.vlgmr.msra.gmra.mrb[12].mxu0 %vm37_vm0, %v60_v31  ;;  %1292 = vmatmul.mubr.msk.bf16.vlgmr.msra.gmra.mrb[12].mxu1 %vm37_vm0, %v61_v32 }
  0x23   :  { %1297 = vmatprep.mubr.msk.bf16.mxu0 %vm1398_vm1, %v1397_v0  ;;  %1303 = vmatprep.mubr.msk.bf16.mxu1 %vm1398_vm1, %v1397_v0 }
  0xdd   :  { %v111_v36 = vpop.f32.mrb[0].mxu0  ;;  %v157_v37 = vpop.f32.mrb[0].mxu1 }
  0xde   :  { %v1556_v38 = vsel %vm444_vm3, %v111_v36, -1e+30  ;;  %v1251_v39 = vpop.f32.mrb[1].mxu0  ;;  %v1559_v40 = vsel %vm444_vm3, %v157_v37, -1e+30  ;;  %v1257_v41 = vpop.f32.mrb[1].mxu1 }
  0xdf   :  { %v114_v42 = vpop.f32.mrb[2].mxu0  ;;  %v461_v43 = vsel %vm37_vm0, %v1556_v38, -inf  ;;  %v160_v44 = vpop.f32.mrb[2].mxu1  ;;  %v464_v47 = vsel %vm37_vm0, %v1559_v40, -inf  ;;  %v1630_v37 = vld [vmem:[#allocation2 + $0x20] sm:$0xff]  ;;  %v1632_v39 = vld [vmem:[#allocation2 + $0x28] sm:$0xff] }
  0xe0   :  { %462 = vmax.xlane.f32.xlu0 %v461_v43  ;;  %v1252_v45 = vpop.f32.mrb[3].mxu0  ;;  %v1258_v46 = vpop.f32.mrb[3].mxu1  ;;  %v702_v42 = vld [vmem:[%s1832_s2] sm:$0xf] }
  0xe1   :  { %v715_v45 = vsel %vm713_vm4, %v702_v42, 0 }
  0xe2   :  { %1296 = vmatpush3.bf16.msra.mxu0 %v715_v45 }
  0xe3   :  { %1307 = vmatprep.subr.bf16.mxu0 %v1397_v0 }
  0xe4   :  { %465 = vmax.xlane.f32.xlu0 %v464_v47 }
  0xe5   :  { %v203_v48 = vpop.f32.mrb[4].mxu0  ;;  %v249_v49 = vpop.f32.mrb[4].mxu1 }
  0xe6   :  { %v1566_v50 = vsel %vm444_vm3, %v203_v48, -1e+30  ;;  %v1263_v51 = vpop.f32.mrb[5].mxu0  ;;  %v1569_v52 = vsel %vm444_vm3, %v249_v49, -1e+30  ;;  %v1269_v53 = vpop.f32.mrb[5].mxu1 }
  0xe7   :  { %v206_v54 = vpop.f32.mrb[6].mxu0  ;;  %v467_v55 = vsel %vm37_vm0, %v1566_v50, -inf  ;;  %v252_v56 = vpop.f32.mrb[6].mxu1  ;;  %v470_v59 = vsel %vm37_vm0, %v1569_v52, -inf  ;;  %v703_v51 = vld [vmem:[%s1832_s2 + $0x4] sm:$0xf] }
  0xe8   :  { %468 = vmax.xlane.f32.xlu1 %v467_v55  ;;  %v1264_v57 = vpop.f32.mrb[7].mxu0  ;;  %v1270_v58 = vpop.f32.mrb[7].mxu1  ;;  %v761_v53 = vsel %vm713_vm4, %v703_v51, 0  ;;  %v1663_v54 = vld [vmem:[#allocation2 + $0x30] sm:$0xff]  ;;  %v1665_v55 = vld [vmem:[#allocation2 + $0x38] sm:$0xff] }
  0xe9   :  { %1302 = vmatpush3.bf16.msra.mxu1 %v761_v53  ;;  %v704_v56 = vld [vmem:[%s1832_s2 + $0x8] sm:$0xf] }
  0xea   :  { %1313 = vmatprep.subr.bf16.mxu1 %v1397_v0 }
  0xec   :  { %471 = vmax.xlane.f32.xlu1 %v470_v59  ;;  %v807_v59 = vsel %vm713_vm4, %v704_v56, 0 }
  0xed   :  { %v295_v60 = vpop.f32.mrb[8].mxu0  ;;  %v341_v61 = vpop.f32.mrb[8].mxu1 }
  0xee   :  { %v1576_v62 = vsel %vm444_vm3, %v295_v60, -1e+30  ;;  %v1275_v63 = vpop.f32.mrb[9].mxu0  ;;  %v1579_v1 = vsel %vm444_vm3, %v341_v61, -1e+30  ;;  %v1281_v2 = vpop.f32.mrb[9].mxu1 }
  0xef   :  { %v298_v3 = vpop.f32.mrb[10].mxu0  ;;  %v473_v4 = vsel %vm37_vm0, %v1576_v62, -inf  ;;  %v344_v5 = vpop.f32.mrb[10].mxu1  ;;  %v476_v6 = vsel %vm37_vm0, %v1579_v1, -inf }
  0xf0   :  { %474 = vmax.xlane.f32.xlu0 %v473_v4  ;;  %v1276_v7 = vpop.f32.mrb[11].mxu0  ;;  %v1282_v8 = vpop.f32.mrb[11].mxu1  ;;  %477 = vmax.xlane.f32.xlu1 %v476_v6  ;;  %v705_v3 = vld [vmem:[%s1832_s2 + $0xc] sm:$0xf]  ;;  %v706_v5 = vld [vmem:[%s1832_s2 + $0x10] sm:$0xf] }
  0xf1   :  { %v853_v4 = vsel %vm713_vm4, %v705_v3, 0  ;;  %v899_v6 = vsel %vm713_vm4, %v706_v5, 0  ;;  %v707_v7 = vld [vmem:[%s1832_s2 + $0x14] sm:$0xf] }
  0xf2   :  { %v1701_v8 = vsel %vm713_vm4, %v707_v7, 0 }
  0xf5   :  { %v387_v10 = vpop.f32.mrb[12].mxu0  ;;  %v433_v11 = vpop.f32.mrb[12].mxu1 }
  0xf6   :  { %v1586_v12 = vsel %vm444_vm3, %v387_v10, -1e+30  ;;  %v1287_v13 = vpop.f32.mrb[13].mxu0  ;;  %v1589_v14 = vsel %vm444_vm3, %v433_v11, -1e+30  ;;  %v1293_v15 = vpop.f32.mrb[13].mxu1 }
  0xf7   :  { %v390_v16 = vpop.f32.mrb[14].mxu0  ;;  %v479_v17 = vsel %vm37_vm0, %v1586_v12, -inf  ;;  %v436_v18 = vpop.f32.mrb[14].mxu1  ;;  %v482_v19 = vsel %vm37_vm0, %v1589_v14, -inf  ;;  %v1707_v10 = vsel %vm713_vm4, %v708_v9, 0 }
  0xf8   :  { %480 = vmax.xlane.f32.xlu0 %v479_v17  ;;  %v1288_v20 = vpop.f32.mrb[15].mxu0  ;;  %v1294_v21 = vpop.f32.mrb[15].mxu1  ;;  %483 = vmax.xlane.f32.xlu1 %v482_v19  ;;  %v709_v11 = vld [vmem:[%s1832_s2 + $0x1c] sm:$0xf] }
  0xf9   :  { %v1713_v13 = vsel %vm713_vm4, %v709_v11, 0 }
 0x16d   :  { %v463_v23 = vpop.xlane.xlu0 %462 }
 0x16e   :  { %v1598_v24 = vmax.f32 %v1595_v22, %v463_v23 }
 0x170   :  { %v493_v26 = vsub.f32 %v1595_v22, %v1598_v24  ;;  %1095 = vst.msk [vmem:[#allocation2] sm:$0xff] %vm20_vm2, %v1598_v24  ;;  %519 = vperm.xlu0 %1347, %v1598_v24  }
 0x171   :  { %v466_v27 = vpop.xlane.xlu0 %465 }
 0x172   :  { %v1608_v28 = vmax.f32 %v1600_v25, %v466_v27 }
 0x174   :  { %v494_v30 = vsub.f32 %v1600_v25, %v1608_v28  ;;  %1096 = vst.msk [vmem:[#allocation2 + $0x8] sm:$0xff] %vm20_vm2, %v1608_v28  ;;  %524 = vperm.xlu1 %1348, %v1608_v28  }
 0x175   :  { %v469_v31 = vpop.xlane.xlu1 %468 }
 0x176   :  { %v1618_v32 = vmax.f32 %v1610_v29, %v469_v31 }
 0x178   :  { %v495_v34 = vsub.f32 %v1610_v29, %v1618_v32  ;;  %1097 = vst.msk [vmem:[#allocation2 + $0x10] sm:$0xff] %vm20_vm2, %v1618_v32  ;;  %529 = vperm.xlu1 %1348, %v1618_v32  }
 0x179   :  { %v472_v35 = vpop.xlane.xlu1 %471 }
 0x17a   :  { %v1628_v36 = vmax.f32 %v1620_v33, %v472_v35 }
 0x17c   :  { %v496_v41 = vsub.f32 %v1620_v33, %v1628_v36  ;;  %1098 = vst.msk [vmem:[#allocation2 + $0x18] sm:$0xff] %vm20_vm2, %v1628_v36  ;;  %534 = vperm.xlu1 %1348, %v1628_v36  }
 0x17d   :  { %v475_v43 = vpop.xlane.xlu0 %474  ;;  %v478_v44 = vpop.xlane.xlu1 %477 }
 0x17e   :  { %v1644_v46 = vmax.f32 %v1630_v37, %v475_v43  ;;  %v1647_v47 = vmax.f32 %v1632_v39, %v478_v44 }
 0x180   :  { %v497_v48 = vsub.f32 %v1630_v37, %v1644_v46  ;;  %1099 = vst.msk [vmem:[#allocation2 + $0x20] sm:$0xff] %vm20_vm2, %v1644_v46  ;;  %539 = vperm.xlu1 %1348, %v1644_v46   ;;  %v498_v49 = vsub.f32 %v1632_v39, %v1647_v47  ;;  %1100 = vst.msk [vmem:[#allocation2 + $0x28] sm:$0xff] %vm20_vm2, %v1647_v47  ;;  %v581_v39 = vld [vmem:[#allocation3] sm:$0xff] }
 0x182   :  { %v509_v25 = vmul.f32 1.442695, %v497_v48  ;;  %v511_v22 = vmul.f32 1.442695, %v498_v49 }
 0x184   :  { %544 = vperm.xlu1 %1348, %v1647_v47   ;;  %v582_v47 = vld [vmem:[#allocation3 + $0x8] sm:$0xff] }
 0x185   :  { %v481_v57 = vpop.xlane.xlu0 %480  ;;  %v484_v58 = vpop.xlane.xlu1 %483 }
 0x186   :  { %v1674_v60 = vmax.f32 %v1663_v54, %v481_v57  ;;  %v1677_v61 = vmax.f32 %v1665_v55, %v484_v58 }
 0x188   :  { %v499_v63 = vsub.f32 %v1663_v54, %v1674_v60  ;;  %1101 = vst.msk [vmem:[#allocation2 + $0x30] sm:$0xff] %vm20_vm2, %v1674_v60  ;;  %549 = vperm.xlu1 %1348, %v1674_v60   ;;  %v500_v2 = vsub.f32 %v1665_v55, %v1677_v61  ;;  %1102 = vst.msk [vmem:[#allocation2 + $0x38] sm:$0xff] %vm20_vm2, %v1677_v61  ;;  %v583_v55 = vld [vmem:[#allocation3 + $0x10] sm:$0xff] }
 0x18a   :  { %v513_v24 = vmul.f32 1.442695, %v499_v63 }
 0x18c   :  { %554 = vperm.xlu1 %1348, %v1677_v61  }
 0x1ef   :  { %v520_v15 = vpop.permute.xlu0 %519 }
 0x1f0   :  { %v557_v16 = vsub.f32 %v1556_v38, %v520_v15 }
 0x1f2   :  { %v565_v17 = vmul.f32 1.442695, %v557_v16 }
 0x1f3   :  { %v525_v18 = vpop.permute.xlu1 %524 }
 0x1f4   :  { %1349 = vpow2.f32 %v565_v17  ;;  %v558_v19 = vsub.f32 %v1559_v40, %v525_v18 }
 0x1f6   :  { %v567_v20 = vmul.f32 1.442695, %v558_v19 }
 0x1f7   :  { %v530_v21 = vpop.permute.xlu1 %529 }
 0x1f8   :  { %1351 = vpow2.f32 %v567_v20  ;;  %v559_v23 = vsub.f32 %v1566_v50, %v530_v21 }
 0x1fa   :  { %v569_v27 = vmul.f32 1.442695, %v559_v23 }
 0x1fb   :  { %v535_v31 = vpop.permute.xlu1 %534 }
 0x1fc   :  { %1353 = vpow2.f32 %v569_v27  ;;  %v560_v35 = vsub.f32 %v1569_v52, %v535_v31 }
 0x1fe   :  { %v1350_v42 = vpop.eup %1349  ;;  %v571_v43 = vmul.f32 1.442695, %v560_v35  ;;  %v505_v35 = vmul.f32 1.442695, %v495_v34 }
 0x1ff   :  { %v540_v44 = vpop.permute.xlu1 %539  ;;  %v597_v38 = vsel %vm37_vm0, %v1350_v42, 0.0  ;;  %v694_v45 = vpack.c.bf16 %v1350_v42, %v1350_v42  ;;  %v507_v42 = vmul.f32 1.442695, %v496_v41 }
 0x200   :  { %1355 = vpow2.f32 %v571_v43  ;;  %v561_v51 = vsub.f32 %v1576_v62, %v540_v44  ;;  %598 = vadd.xlane.f32.xlu1 %v597_v38 }
 0x201   :  { %1298 = vmatmul.mubr.msk.bf16.vlgmr.msra.gmra.mrb[16].mxu0 %vm37_vm0, %v694_v45 }
 0x202   :  { %v1352_v40 = vpop.eup %1351  ;;  %v573_v53 = vmul.f32 1.442695, %v561_v51  ;;  %1308 = vmatpush3.bf16.msra.mxu0 %v807_v59  ;;  %1309 = vmatprep.mubr.msk.bf16.mxu0 %vm1398_vm1, %v1397_v0  ;;  %v585_v51 = vld [vmem:[#allocation3 + $0x20] sm:$0xff] }
 0x203   :  { %v545_v50 = vpop.permute.xlu1 %544  ;;  %v600_v52 = vsel %vm37_vm0, %v1352_v40, 0.0  ;;  %v695_v56 = vpack.c.bf16 %v1352_v40, %v1352_v40  ;;  %1319 = vmatprep.subr.bf16.mxu0 %v1397_v0 }
 0x204   :  { %1357 = vpow2.f32 %v573_v53  ;;  %v562_v57 = vsub.f32 %v1579_v1, %v545_v50  ;;  %601 = vadd.xlane.f32.xlu0 %v600_v52 }
 0x205   :  { %1304 = vmatmul.mubr.msk.bf16.vlgmr.msra.gmra.mrb[16].mxu1 %vm37_vm0, %v695_v56  ;;  %v586_v56 = vld [vmem:[#allocation3 + $0x28] sm:$0xff] }
 0x206   :  { %v1354_v62 = vpop.eup %1353  ;;  %v575_v58 = vmul.f32 1.442695, %v562_v57  ;;  %1314 = vmatpush3.bf16.msra.mxu1 %v853_v4  ;;  %1315 = vmatprep.mubr.msk.bf16.mxu1 %vm1398_vm1, %v1397_v0 }
 0x207   :  { %v550_v59 = vpop.permute.xlu1 %549  ;;  %v603_v3 = vsel %vm37_vm0, %v1354_v62, 0.0  ;;  %v696_v5 = vpack.c.bf16 %v1354_v62, %v1354_v62  ;;  %1325 = vmatprep.subr.bf16.mxu1 %v1397_v0 }
 0x208   :  { %1359 = vpow2.f32 %v575_v58  ;;  %v563_v7 = vsub.f32 %v1586_v12, %v550_v59  ;;  %604 = vadd.xlane.f32.xlu0 %v603_v3  ;;  %v587_v3 = vld [vmem:[#allocation3 + $0x30] sm:$0xff] }
 0x209   :  { %1310 = vmatmul.mubr.msk.bf16.vlgmr.msra.gmra.mrb[20].mxu0 %vm37_vm0, %v696_v5 }
 0x20a   :  { %v1356_v1 = vpop.eup %1355  ;;  %v577_v9 = vmul.f32 1.442695, %v563_v7  ;;  %1320 = vmatpush3.bf16.msra.mxu0 %v899_v6  ;;  %1321 = vmatprep.mubr.msk.bf16.mxu0 %vm1398_vm1, %v1397_v0 }
 0x20b   :  { %v555_v4 = vpop.permute.xlu1 %554  ;;  %v606_v11 = vsel %vm37_vm0, %v1356_v1, 0.0  ;;  %v697_v15 = vpack.c.bf16 %v1356_v1, %v1356_v1  ;;  %1331 = vmatprep.subr.bf16.mxu0 %v1397_v0 }
 0x20c   :  { %1361 = vpow2.f32 %v577_v9  ;;  %v564_v16 = vsub.f32 %v1589_v14, %v555_v4  ;;  %607 = vadd.xlane.f32.xlu1 %v606_v11  ;;  %v588_v11 = vld [vmem:[#allocation3 + $0x38] sm:$0xff] }
 0x20d   :  { %1316 = vmatmul.mubr.msk.bf16.vlgmr.msra.gmra.mrb[20].mxu1 %vm37_vm0, %v697_v15 }
 0x20e   :  { %v1358_v12 = vpop.eup %1357  ;;  %v579_v17 = vmul.f32 1.442695, %v564_v16  ;;  %1326 = vmatpush3.bf16.msra.mxu1 %v1701_v8  ;;  %1327 = vmatprep.mubr.msk.bf16.mxu1 %vm1398_vm1, %v1397_v0 }
 0x20f   :  { %v609_v6 = vsel %vm37_vm0, %v1358_v12, 0.0  ;;  %v698_v18 = vpack.c.bf16 %v1358_v12, %v1358_v12  ;;  %1337 = vmatprep.subr.bf16.mxu1 %v1397_v0 }
 0x210   :  { %1363 = vpow2.f32 %v579_v17  ;;  %610 = vadd.xlane.f32.xlu0 %v609_v6 }
 0x211   :  { %1322 = vmatmul.mubr.msk.bf16.vlgmr.msra.gmra.mrb[24].mxu0 %vm37_vm0, %v698_v18 }
 0x212   :  { %v1360_v14 = vpop.eup %1359  ;;  %1332 = vmatpush3.bf16.msra.mxu0 %v1707_v10  ;;  %1333 = vmatprep.mubr.msk.bf16.mxu0 %vm1398_vm1, %v1397_v0 }
 0x213   :  { %v612_v8 = vsel %vm37_vm0, %v1360_v14, 0.0  ;;  %v699_v19 = vpack.c.bf16 %v1360_v14, %v1360_v14 }
 0x214   :  { %613 = vadd.xlane.f32.xlu1 %v612_v8 }
 0x215   :  { %1328 = vmatmul.mubr.msk.bf16.vlgmr.msra.gmra.mrb[24].mxu1 %vm37_vm0, %v699_v19 }
 0x216   :  { %v1362_v20 = vpop.eup %1361  ;;  %1338 = vmatpush3.bf16.msra.mxu1 %v1713_v13  ;;  %1339 = vmatprep.mubr.msk.bf16.mxu1 %vm1398_vm1, %v1397_v0  ;;  %v503_v13 = vmul.f32 1.442695, %v494_v30  ;;  %v501_v0 = vmul.f32 1.442695, %v493_v26  ;;  %v515_v26 = vmul.f32 1.442695, %v500_v2 }
 0x217   :  { %v615_v21 = vsel %vm37_vm0, %v1362_v20, 0.0  ;;  %v700_v23 = vpack.c.bf16 %v1362_v20, %v1362_v20  ;;  %v584_v2 = vld [vmem:[#allocation3 + $0x18] sm:$0xff] }
 0x218   :  { %616 = vadd.xlane.f32.xlu0 %v615_v21  ;;  %1365 = vpow2.f32 %v503_v13  ;;  %v638_v13 = vld [vmem:[#allocation4] sm:$0xff] }
 0x219   :  { %1334 = vmatmul.mubr.msk.bf16.vlgmr.msra.gmra.mrb[28].mxu0 %vm37_vm0, %v700_v23  ;;  %1367 = vpow2.f32 %v501_v0 }
 0x21a   :  { %v1364_v10 = vpop.eup %1363  ;;  %1369 = vpow2.f32 %v505_v35 }
 0x21b   :  { %v618_v27 = vsel %vm37_vm0, %v1364_v10, 0.0  ;;  %v701_v31 = vpack.c.bf16 %v1364_v10, %v1364_v10  ;;  %1371 = vpow2.f32 %v507_v42 }
 0x21c   :  { %619 = vadd.xlane.f32.xlu1 %v618_v27  ;;  %1373 = vpow2.f32 %v509_v25  ;;  %v639_v25 = vld [vmem:[#allocation4 + $0x8] sm:$0xff] }
 0x21d   :  { %1340 = vmatmul.mubr.msk.bf16.vlgmr.msra.gmra.mrb[28].mxu1 %vm37_vm0, %v701_v31  ;;  %1375 = vpow2.f32 %v511_v22 }
 0x21e   :  { %1377 = vpow2.f32 %v513_v24 }
 0x21f   :  { %1379 = vpow2.f32 %v515_v26 }
 0x222   :  { %v1366_v28 = vpop.eup %1365 }
 0x223   :  { %v1368_v29 = vpop.eup %1367  ;;  %v590_v49 = vmul.f32 %v1366_v28, %v582_v47  ;;  %v641_v47 = vld [vmem:[#allocation4 + $0x18] sm:$0xff] }
 0x224   :  { %v1370_v30 = vpop.eup %1369  ;;  %v589_v41 = vmul.f32 %v1368_v29, %v581_v39 }
 0x225   :  { %v1372_v32 = vpop.eup %1371  ;;  %v591_v61 = vmul.f32 %v1370_v30, %v583_v55 }
 0x226   :  { %v1374_v33 = vpop.eup %1373  ;;  %v592_v38 = vmul.f32 %v1372_v32, %v584_v2  ;;  %v642_v2 = vld [vmem:[#allocation4 + $0x20] sm:$0xff] }
 0x227   :  { %v1376_v34 = vpop.eup %1375  ;;  %v593_v50 = vmul.f32 %v1374_v33, %v585_v51 }
 0x228   :  { %v1378_v36 = vpop.eup %1377  ;;  %v594_v58 = vmul.f32 %v1376_v34, %v586_v56 }
 0x229   :  { %v1380_v37 = vpop.eup %1379  ;;  %v595_v9 = vmul.f32 %v1378_v36, %v587_v3 }
 0x22a   :  { %v596_v17 = vmul.f32 %v1380_v37, %v588_v11 }
 0x22d   :  { %653 = vperm.xlu1 %1348, %v1366_v28  }
 0x22e   :  { %648 = vperm.xlu0 %1347, %v1368_v29  }
 0x231   :  { %658 = vperm.xlu1 %1348, %v1370_v30  }
 0x232   :  { %663 = vperm.xlu0 %1347, %v1372_v32   ;;  %v640_v32 = vld [vmem:[#allocation4 + $0x10] sm:$0xff] }
 0x235   :  { %668 = vperm.xlu1 %1348, %v1374_v33  }
 0x236   :  { %673 = vperm.xlu0 %1347, %v1376_v34  }
 0x239   :  { %678 = vperm.xlu1 %1348, %v1378_v36  }
 0x23a   :  { %683 = vperm.xlu0 %1347, %v1380_v37  }
 0x28d   :  { %v599_v46 = vpop.xlane.xlu1 %598 }
 0x28e   :  { %v621_v48 = vadd.f32 %v599_v46, %v589_v41 }
 0x290   :  { %630 = vst.msk [vmem:[#allocation3] sm:$0xff] %vm20_vm2, %v621_v48 }
 0x291   :  { %v602_v54 = vpop.xlane.xlu0 %601 }
 0x292   :  { %v622_v60 = vadd.f32 %v602_v54, %v590_v49 }
 0x294   :  { %631 = vst.msk [vmem:[#allocation3 + $0x8] sm:$0xff] %vm20_vm2, %v622_v60 }
 0x295   :  { %v605_v63 = vpop.xlane.xlu0 %604 }
 0x296   :  { %v623_v43 = vadd.f32 %v605_v63, %v591_v61 }
 0x297   :  { %v1114_v44 = vld [vmem:[#allocation3] sm:$0xff] }
 0x298   :  { %632 = vst.msk [vmem:[#allocation3 + $0x10] sm:$0xff] %vm20_vm2, %v623_v43  ;;  %1381 = vrcp.f32 %v1114_v44 }
 0x299   :  { %v608_v45 = vpop.xlane.xlu1 %607 }
 0x29a   :  { %v624_v40 = vadd.f32 %v608_v45, %v592_v38 }
 0x29b   :  { %v1115_v53 = vld [vmem:[#allocation3 + $0x8] sm:$0xff] }
 0x29c   :  { %633 = vst.msk [vmem:[#allocation3 + $0x18] sm:$0xff] %vm20_vm2, %v624_v40  ;;  %1383 = vrcp.f32 %v1115_v53 }
 0x29d   :  { %v611_v52 = vpop.xlane.xlu0 %610 }
 0x29e   :  { %v625_v57 = vadd.f32 %v611_v52, %v593_v50  ;;  %v643_v50 = vld [vmem:[#allocation4 + $0x28] sm:$0xff] }
 0x29f   :  { %v1116_v62 = vld [vmem:[#allocation3 + $0x10] sm:$0xff] }
 0x2a0   :  { %634 = vst.msk [vmem:[#allocation3 + $0x20] sm:$0xff] %vm20_vm2, %v625_v57  ;;  %1385 = vrcp.f32 %v1116_v62 }
 0x2a1   :  { %v614_v59 = vpop.xlane.xlu1 %613 }
 0x2a2   :  { %v1382_v5 = vpop.eup %1381  ;;  %v626_v7 = vadd.f32 %v614_v59, %v594_v58 }
 0x2a3   :  { %1132 = vperm.xlu1 %1348, %v1382_v5   ;;  %v1117_v1 = vld [vmem:[#allocation3 + $0x18] sm:$0xff]  ;;  %v644_v5 = vld [vmem:[#allocation4 + $0x30] sm:$0xff] }
 0x2a4   :  { %635 = vst.msk [vmem:[#allocation3 + $0x28] sm:$0xff] %vm20_vm2, %v626_v7  ;;  %1387 = vrcp.f32 %v1117_v1 }
 0x2a5   :  { %v617_v4 = vpop.xlane.xlu0 %616 }
 0x2a6   :  { %v1384_v15 = vpop.eup %1383  ;;  %v627_v16 = vadd.f32 %v617_v4, %v595_v9 }
 0x2a7   :  { %1137 = vperm.xlu0 %1347, %v1384_v15   ;;  %v1118_v12 = vld [vmem:[#allocation3 + $0x20] sm:$0xff] }
 0x2a8   :  { %636 = vst.msk [vmem:[#allocation3 + $0x30] sm:$0xff] %vm20_vm2, %v627_v16  ;;  %1389 = vrcp.f32 %v1118_v12  ;;  %v645_v12 = vld [vmem:[#allocation4 + $0x38] sm:$0xff] }
 0x2a9   :  { %v620_v6 = vpop.xlane.xlu1 %619 }
 0x2aa   :  { %v1386_v18 = vpop.eup %1385  ;;  %v628_v14 = vadd.f32 %v620_v6, %v596_v17 }
 0x2ab   :  { %1142 = vperm.xlu1 %1348, %v1386_v18   ;;  %v1119_v8 = vld [vmem:[#allocation3 + $0x28] sm:$0xff] }
 0x2ac   :  { %637 = vst.msk [vmem:[#allocation3 + $0x38] sm:$0xff] %vm20_vm2, %v628_v14  ;;  %1391 = vrcp.f32 %v1119_v8 }
 0x2ad   :  { %v649_v0 = vpop.permute.xlu0 %648  ;;  %v654_v35 = vpop.permute.xlu1 %653 }
 0x2ae   :  { %v1388_v19 = vpop.eup %1387  ;;  %v686_v42 = vmul.f32 %v649_v0, %v638_v13  ;;  %v687_v29 = vmul.f32 %v654_v35, %v639_v25 }
 0x2af   :  { %1147 = vperm.xlu0 %1347, %v1388_v19   ;;  %v1120_v20 = vld [vmem:[#allocation3 + $0x30] sm:$0xff] }
 0x2b0   :  { %1393 = vrcp.f32 %v1120_v20 }
 0x2b1   :  { %v659_v33 = vpop.permute.xlu1 %658  ;;  %v664_v48 = vpop.permute.xlu0 %663 }
 0x2b2   :  { %v1390_v21 = vpop.eup %1389  ;;  %v688_v41 = vmul.f32 %v659_v33, %v640_v32  ;;  %v689_v61 = vmul.f32 %v664_v48, %v641_v47 }
 0x2b3   :  { %1152 = vperm.xlu1 %1348, %v1390_v21   ;;  %v1121_v23 = vld [vmem:[#allocation3 + $0x38] sm:$0xff] }
 0x2b4   :  { %1395 = vrcp.f32 %v1121_v23 }
 0x2b5   :  { %v669_v43 = vpop.permute.xlu1 %668  ;;  %v674_v52 = vpop.permute.xlu0 %673 }
 0x2b6   :  { %v1392_v10 = vpop.eup %1391  ;;  %v690_v40 = vmul.f32 %v669_v43, %v642_v2  ;;  %v691_v59 = vmul.f32 %v674_v52, %v643_v50 }
 0x2b7   :  { %1157 = vperm.xlu0 %1347, %v1392_v10  }
 0x2b9   :  { %v679_v7 = vpop.permute.xlu1 %678  ;;  %v684_v17 = vpop.permute.xlu0 %683 }
 0x2ba   :  { %v1394_v27 = vpop.eup %1393  ;;  %v692_v15 = vmul.f32 %v679_v7, %v644_v5  ;;  %v693_v19 = vmul.f32 %v684_v17, %v645_v12 }
 0x2bb   :  { %1162 = vperm.xlu1 %1348, %v1394_v27  }
 0x2be   :  { %v1396_v31 = vpop.eup %1395 }
 0x2bf   :  { %1167 = vperm.xlu0 %1347, %v1396_v31  }
 0x2d4   :  { %v751_v22 = vpop.f32.mrb[16].mxu0 }
 0x2d5   :  { %v1079_v24 = vadd.f32 %v751_v22, %v686_v42  ;;  %v1299_v26 = vpop.f32.mrb[17].mxu0 }
 0x2d6   :  { %v754_v28 = vpop.f32.mrb[18].mxu0 }
 0x2d7   :  { %1087 = vst.msk [vmem:[#allocation4] sm:$0xff] %vm37_vm0, %v1079_v24  ;;  %v1300_v30 = vpop.f32.mrb[19].mxu0 }
 0x2d8   :  { %v797_v34 = vpop.f32.mrb[16].mxu1 }
 0x2d9   :  { %v1080_v36 = vadd.f32 %v797_v34, %v687_v29  ;;  %v1305_v37 = vpop.f32.mrb[17].mxu1 }
 0x2da   :  { %v800_v39 = vpop.f32.mrb[18].mxu1 }
 0x2db   :  { %1088 = vst.msk [vmem:[#allocation4 + $0x8] sm:$0xff] %vm37_vm0, %v1080_v36  ;;  %v1306_v46 = vpop.f32.mrb[19].mxu1 }
 0x2dc   :  { %v843_v49 = vpop.f32.mrb[20].mxu0 }
 0x2dd   :  { %v1081_v54 = vadd.f32 %v843_v49, %v688_v41  ;;  %v1311_v55 = vpop.f32.mrb[21].mxu0 }
 0x2de   :  { %v846_v60 = vpop.f32.mrb[22].mxu0  ;;  %v1106_v0 = vld [vmem:[#allocation4] sm:$0xff] }
 0x2df   :  { %1089 = vst.msk [vmem:[#allocation4 + $0x10] sm:$0xff] %vm37_vm0, %v1081_v54  ;;  %v1312_v63 = vpop.f32.mrb[23].mxu0 }
 0x2e0   :  { %v889_v44 = vpop.f32.mrb[20].mxu1 }
 0x2e1   :  { %v1082_v38 = vadd.f32 %v889_v44, %v689_v61  ;;  %v1317_v45 = vpop.f32.mrb[21].mxu1 }
 0x2e2   :  { %v892_v51 = vpop.f32.mrb[22].mxu1  ;;  %v1107_v25 = vld [vmem:[#allocation4 + $0x8] sm:$0xff] }
 0x2e3   :  { %1090 = vst.msk [vmem:[#allocation4 + $0x18] sm:$0xff] %vm37_vm0, %v1082_v38  ;;  %v1318_v53 = vpop.f32.mrb[23].mxu1 }
 0x2e4   :  { %v935_v56 = vpop.f32.mrb[24].mxu0 }
 0x2e5   :  { %v1083_v57 = vadd.f32 %v935_v56, %v690_v40  ;;  %v1323_v62 = vpop.f32.mrb[25].mxu0 }
 0x2e6   :  { %v938_v58 = vpop.f32.mrb[26].mxu0  ;;  %v1108_v29 = vld [vmem:[#allocation4 + $0x10] sm:$0xff] }
 0x2e7   :  { %1091 = vst.msk [vmem:[#allocation4 + $0x20] sm:$0xff] %vm37_vm0, %v1083_v57  ;;  %v1324_v3 = vpop.f32.mrb[27].mxu0 }
 0x2e8   :  { %v981_v1 = vpop.f32.mrb[24].mxu1 }
 0x2e9   :  { %v1084_v9 = vadd.f32 %v981_v1, %v691_v59  ;;  %v1329_v4 = vpop.f32.mrb[25].mxu1 }
 0x2ea   :  { %v984_v11 = vpop.f32.mrb[26].mxu1  ;;  %v1109_v33 = vld [vmem:[#allocation4 + $0x18] sm:$0xff] }
 0x2eb   :  { %1092 = vst.msk [vmem:[#allocation4 + $0x28] sm:$0xff] %vm37_vm0, %v1084_v9  ;;  %v1330_v16 = vpop.f32.mrb[27].mxu1 }
 0x2ec   :  { %v1027_v6 = vpop.f32.mrb[28].mxu0 }
 0x2ed   :  { %v1085_v18 = vadd.f32 %v1027_v6, %v692_v15  ;;  %v1335_v14 = vpop.f32.mrb[29].mxu0 }
 0x2ee   :  { %v1030_v8 = vpop.f32.mrb[30].mxu0  ;;  %v1110_v41 = vld [vmem:[#allocation4 + $0x20] sm:$0xff] }
 0x2ef   :  { %1093 = vst.msk [vmem:[#allocation4 + $0x30] sm:$0xff] %vm37_vm0, %v1085_v18  ;;  %v1336_v20 = vpop.f32.mrb[31].mxu0 }
 0x2f0   :  { %v1073_v21 = vpop.f32.mrb[28].mxu1 }
 0x2f1   :  { %v1086_v23 = vadd.f32 %v1073_v21, %v693_v19  ;;  %v1341_v10 = vpop.f32.mrb[29].mxu1 }
 0x2f2   :  { %v1076_v27 = vpop.f32.mrb[30].mxu1  ;;  %v1111_v48 = vld [vmem:[#allocation4 + $0x28] sm:$0xff] }
 0x2f3   :  { %1094 = vst.msk [vmem:[#allocation4 + $0x38] sm:$0xff] %vm37_vm0, %v1086_v23  ;;  %v1342_v31 = vpop.f32.mrb[31].mxu1 }
 0x2f6   :  { %v1112_v61 = vld [vmem:[#allocation4 + $0x30] sm:$0xff] }
 0x2fa   :  { %v1113_v43 = vld [vmem:[#allocation4 + $0x38] sm:$0xff] }
 0x322   :  { %v1133_v13 = vpop.permute.xlu1 %1132 }
 0x323   :  { %v1170_v35 = vmul.f32 %v1133_v13, %v1106_v0 }
 0x325   :  { %v1178_v42 = vpack.c.bf16 %v1170_v35, %v1170_v35 }
 0x326   :  { %v1138_v22 = vpop.permute.xlu0 %1137 }
 0x327   :  { %1187 = vst.msk [vmem:[%s1833_s3] sm:$0xf] %vm1186_vm5, %v1178_v42  ;;  %v1171_v24 = vmul.f32 %v1138_v22, %v1107_v25 }
 0x329   :  { %v1179_v26 = vpack.c.bf16 %v1171_v24, %v1171_v24 }
 0x32a   :  { %v1143_v28 = vpop.permute.xlu1 %1142 }
 0x32b   :  { %1188 = vst.msk [vmem:[%s1833_s3 + $0x4] sm:$0xf] %vm1186_vm5, %v1179_v26  ;;  %v1172_v30 = vmul.f32 %v1143_v28, %v1108_v29 }
 0x32d   :  { %v1180_v32 = vpack.c.bf16 %v1172_v30, %v1172_v30 }
 0x32e   :  { %v1148_v34 = vpop.permute.xlu0 %1147 }
 0x32f   :  { %1189 = vst.msk [vmem:[%s1833_s3 + $0x8] sm:$0xf] %vm1186_vm5, %v1180_v32  ;;  %v1173_v36 = vmul.f32 %v1148_v34, %v1109_v33 }
 0x331   :  { %v1181_v37 = vpack.c.bf16 %v1173_v36, %v1173_v36 }
 0x332   :  { %v1153_v39 = vpop.permute.xlu1 %1152 }
 0x333   :  { %1190 = vst.msk [vmem:[%s1833_s3 + $0xc] sm:$0xf] %vm1186_vm5, %v1181_v37  ;;  %v1174_v46 = vmul.f32 %v1153_v39, %v1110_v41 }
 0x335   :  { %v1182_v47 = vpack.c.bf16 %v1174_v46, %v1174_v46 }
 0x336   :  { %v1158_v49 = vpop.permute.xlu0 %1157 }
 0x337   :  { %1191 = vst.msk [vmem:[%s1833_s3 + $0x10] sm:$0xf] %vm1186_vm5, %v1182_v47  ;;  %v1175_v54 = vmul.f32 %v1158_v49, %v1111_v48 }
 0x339   :  { %v1183_v55 = vpack.c.bf16 %v1175_v54, %v1175_v54 }
 0x33a   :  { %v1163_v60 = vpop.permute.xlu1 %1162 }
 0x33b   :  { %1192 = vst.msk [vmem:[%s1833_s3 + $0x14] sm:$0xf] %vm1186_vm5, %v1183_v55  ;;  %v1176_v63 = vmul.f32 %v1163_v60, %v1112_v61 }
 0x33d   :  { %v1184_v2 = vpack.c.bf16 %v1176_v63, %v1176_v63 }
 0x33e   :  { %v1168_v44 = vpop.permute.xlu0 %1167 }
 0x33f   :  { %1193 = vst.msk [vmem:[%s1833_s3 + $0x18] sm:$0xf] %vm1186_vm5, %v1184_v2  ;;  %v1177_v38 = vmul.f32 %v1168_v44, %v1113_v43 }
 0x341   :  { %v1185_v45 = vpack.c.bf16 %v1177_v38, %v1177_v38 }
 0x343   :  { %1194 = vst.msk [vmem:[%s1833_s3 + $0x1c] sm:$0xf] %vm1186_vm5, %v1185_v45 }

// kernel: clip_forward.45
= control target key start
LH: loop header
LB: loop body
LE: loop exit
PB: predicated region body
PF: predicated region fallthrough
CT: control target
= control target key end

     0   :  { %v179_v0 = vmov 0.0   ;;  %vm180_vm0 = vmmov 0   ;;  %vm46_vm1 = vcmask 261120   ;;  %s216_s1 = inlined_call_operand.vmem [shape: bf16[32,128], index: 1, kind: input, shape index: {}]   ;;  %s217_s0 = inlined_call_operand.vmem [shape: bf16[16,32], index: 0, kind: input, shape index: {}]   ;;  %s218_s2 = inlined_call_operand.vmem [shape: f32[1,128], index: 2, kind: input, shape index: {}]   ;;  %s219_s3 = inlined_call_operand.vmem [shape: bf16[16,128], index: 3, kind: output, shape index: {}]  }
   0x1   :  { %158 = vmatprep.subr.bf16.mxu0 %v179_v0  ;;  %v168_v1 = vld [vmem:[%s216_s1] sm:$0xff]   ;;  %162 = vmatprep.mubr.msk.bf16.mxu0 %vm180_vm0, %v179_v0  ;;  %v169_v2 = vld [vmem:[%s216_s1 + $0x8] sm:$0xff]  }
   0x2   :  { %159 = vmatpush3.bf16.msra.mxu0 %v168_v1  ;;  %v170_v3 = vld [vmem:[%s217_s0] sm:$0xff]  }
   0x3   :  { %160 = vmatprep.subr.bf16.mxu0 %v179_v0  ;;  %v143_v4 = vld [vmem:[%s218_s2] ss:$0 sm:$0xff] }
   0x6   :  { %161 = vmatpush3.bf16.msra.mxu0 %v169_v2 }
   0x9   :  { %163 = vmatmul.mubr.msk.bf16.vlgmr.msra.gmra.mrb[0].mxu0 %vm46_vm1, %v170_v3 }
  0xdc   :  { %v84_v5 = vpop.f32.mrb[0].mxu0 }
  0xdd   :  { %v107_v6 = vadd.f32 %v143_v4, %v84_v5  ;;  %v164_v7 = vpop.f32.mrb[1].mxu0 }
  0xde   :  { %v87_v8 = vpop.f32.mrb[2].mxu0 }
  0xdf   :  { %v144_v9 = vmul.f32 -1.702, %v107_v6  ;;  %v108_v10 = vadd.f32 %v143_v4, %v87_v8  ;;  %v165_v11 = vpop.f32.mrb[3].mxu0 }
  0xe1   :  { %v113_v12 = vmul.f32 1.442695, %v144_v9  ;;  %v145_v13 = vmul.f32 -1.702, %v108_v10 }
  0xe3   :  { %171 = vpow2.f32 %v113_v12  ;;  %v115_v14 = vmul.f32 1.442695, %v145_v13 }
  0xe5   :  { %173 = vpow2.f32 %v115_v14 }
  0xed   :  { %v172_v15 = vpop.eup %171 }
  0xee   :  { %v117_v16 = vadd.f32 1.0, %v172_v15 }
  0xef   :  { %v174_v17 = vpop.eup %173 }
  0xf0   :  { %175 = vrcp.f32 %v117_v16  ;;  %v118_v18 = vadd.f32 1.0, %v174_v17 }
  0xf2   :  { %177 = vrcp.f32 %v118_v18 }
  0xfa   :  { %v176_v19 = vpop.eup %175 }
  0xfb   :  { %v123_v21 = vmul.f32 %v176_v19, %v107_v6 }
  0xfc   :  { %v178_v20 = vpop.eup %177 }
  0xfd   :  { %v124_v22 = vmul.f32 %v178_v20, %v108_v10 }
  0xff   :  { %v153_v23 = vpack.c.bf16 %v124_v22, %v123_v21 }
 0x101   :  { %154 = vst [vmem:[%s219_s3] sm:$0xff] %v153_v23  }

// kernel: clip_forward.54
= control target key start
LH: loop header
LB: loop body
LE: loop exit
PB: predicated region body
PF: predicated region fallthrough
CT: control target
= control target key end

     0   :  { %vm16_vm0 = vcmask 261120   ;;  %vm48_vm1 = vcmask 257024   ;;  %s90_s0 = inlined_call_operand.vmem [shape: bf16[8,32], index: 0, kind: input, shape index: {}]   ;;  %s91_s1 = inlined_call_operand.vmem [shape: f32[1,32], index: 1, kind: input, shape index: {}]   ;;  %s92_s2 = inlined_call_operand.vmem [shape: f32[1,32], index: 2, kind: input, shape index: {}]   ;;  %s93_s3 = inlined_call_operand.vmem [shape: bf16[8,32], index: 3, kind: output, shape index: {}]  }
   0x1   :  { %v14_v0 = vld [vmem:[%s90_s0] sm:$0xf] }
   0x2   :  { %v15_v1 = vunpack.c.l.bf16 %v14_v0  ;;  %v54_v12 = vld [vmem:[%s91_s1] ss:$0 sm:$0xff] }
   0x3   :  { %v55_v14 = vld [vmem:[%s92_s2] ss:$0 sm:$0xff] }
   0x4   :  { %v17_v2 = vsel %vm16_vm0, %v15_v1, 0.0 }
   0x5   :  { %18 = vadd.xlane.f32.xlu0 %v17_v2 }
  0x92   :  { %v19_v3 = vpop.xlane.xlu0 %18 }
  0x93   :  { %v21_v4 = vmul.f32 0.03125, %v19_v3 }
  0x95   :  { %v22_v5 = vsub.f32 %v15_v1, %v21_v4 }
  0x97   :  { %v23_v6 = vmul.f32 %v22_v5, %v22_v5 }
  0x99   :  { %v24_v7 = vsel %vm16_vm0, %v23_v6, 0.0 }
  0x9a   :  { %25 = vadd.xlane.f32.xlu0 %v24_v7 }
 0x127   :  { %v26_v8 = vpop.xlane.xlu0 %25 }
 0x128   :  { %v27_v9 = vmul.f32 0.03125, %v26_v8 }
 0x12a   :  { %v28_v10 = vadd.f32 1e-05, %v27_v9 }
 0x12c   :  { %56 = vrsqrt.f32 %v28_v10 }
 0x136   :  { %v57_v11 = vpop.eup %56 }
 0x137   :  { %v30_v13 = vmul.f32 %v57_v11, %v22_v5 }
 0x139   :  { %v38_v15 = vmul.f32 %v54_v12, %v30_v13 }
 0x13b   :  { %v46_v16 = vadd.f32 %v55_v14, %v38_v15 }
 0x13d   :  { %v47_v17 = vpack.c.bf16 %v46_v16, %v46_v16 }
 0x13f   :  { %49 = vst.msk [vmem:[%s93_s3] sm:$0xf] %vm48_vm1, %v47_v17 }

// kernel: clip_forward.55
= control target key start
LH: loop header
LB: loop body
LE: loop exit
PB: predicated region body
PF: predicated region fallthrough
CT: control target
= control target key end

     0   :  { %vm19_vm0 = vcmask 261120   ;;  %v121_v0 = vmov 0.0   ;;  %vm122_vm1 = vmmov 0   ;;  %s162_s1 = inlined_call_operand.vmem [shape: bf16[32,32], index: 1, kind: input, shape index: {}]   ;;  %s163_s0 = inlined_call_operand.vmem [shape: bf16[8,32], index: 0, kind: input, shape index: {}]   ;;  %s164_s2 = inlined_call_operand.vmem [shape: f32[1,32], index: 2, kind: input, shape index: {}]   ;;  %s165_s3 = inlined_call_operand.vmem [shape: f32[8,32], index: 3, kind: output, shape index: {}]  }
   0x1   :  { %109 = vmatprep.subr.bf16.mxu0 %v121_v0  ;;  %v119_v1 = vld [vmem:[%s162_s1] sm:$0xff]   ;;  %113 = vmatprep.mubr.msk.bf16.mxu0 %vm122_vm1, %v121_v0  ;;  %20 = vst.msk [vmem:[#allocation2] sm:$0xff] %vm19_vm0, %v121_v0  ;;  %v120_v2 = vld [vmem:[%s162_s1 + $0x8] sm:$0xff]  }
   0x2   :  { %110 = vmatpush3.bf16.msra.mxu0 %v119_v1  ;;  %v22_v3 = vld [vmem:[%s163_s0] sm:$0xf] }
   0x3   :  { %111 = vmatprep.subr.bf16.mxu0 %v121_v0  ;;  %v105_v10 = vld [vmem:[%s164_s2] ss:$0 sm:$0xff] }
   0x6   :  { %112 = vmatpush3.bf16.msra.mxu0 %v120_v2 }
   0x8   :  { %v21_v4 = vld [vmem:[#allocation2] sm:$0xff] }
   0x9   :  { %114 = vmatmul.mubr.msk.bf16.vlgmr.msra.gmra.mrb[0].mxu0 %vm19_vm0, %v22_v3 }
  0xdc   :  { %v77_v5 = vpop.f32.mrb[0].mxu0 }
  0xdd   :  { %v83_v6 = vadd.f32 %v77_v5, %v21_v4  ;;  %v115_v7 = vpop.f32.mrb[1].mxu0 }
  0xde   :  { %v80_v8 = vpop.f32.mrb[2].mxu0 }
  0xdf   :  { %84 = vst.msk [vmem:[#allocation2] sm:$0xff] %vm19_vm0, %v83_v6  ;;  %v116_v9 = vpop.f32.mrb[3].mxu0 }
  0xe6   :  { %v88_v11 = vld [vmem:[#allocation2] sm:$0xff] }
  0xe7   :  { %v96_v12 = vadd.f32 %v105_v10, %v88_v11 }
  0xe9   :  { %97 = vst.msk [vmem:[%s165_s3] sm:$0xff] %vm19_vm0, %v96_v12 }

// kernel: clip_forward.56
= control target key start
LH: loop header
LB: loop body
LE: loop exit
PB: predicated region body
PF: predicated region fallthrough
CT: control target
= control target key end

     0   :  { %vm10_vm0 = vcmask 254976   ;;  %s40_s0 = inlined_call_operand.vmem [shape: f32[2,32], index: 0, kind: input, shape index: {}]   ;;  %s41_s1 = inlined_call_operand.vmem [shape: f32[2,32], index: 1, kind: output, shape index: {}]  }
   0x1   :  { %v8_v0 = vld [vmem:[%s40_s0] sm:$0x3] }
   0x2   :  { %v9_v1 = vmul.f32 %v8_v0, %v8_v0 }
   0x4   :  { %v11_v2 = vsel %vm10_vm0, %v9_v1, 0.0 }
   0x5   :  { %12 = vadd.xlane.f32.xlu0 %v11_v2 }
  0x92   :  { %v13_v3 = vpop.xlane.xlu0 %12 }
  0x93   :  { %v14_v4 = vadd.f32 1e-12, %v13_v3 }
  0x95   :  { %22 = vrsqrt.f32 %v14_v4 }
  0x9f   :  { %v23_v5 = vpop.eup %22 }
  0xa0   :  { %v16_v6 = vmul.f32 %v23_v5, %v8_v0 }
  0xa2   :  { %17 = vst.msk [vmem:[%s41_s1] sm:$0x3] %vm10_vm0, %v16_v6 }

// kernel: clip_forward.58
= control target key start
LH: loop header
LB: loop body
LE: loop exit
PB: predicated region body
PF: predicated region fallthrough
CT: control target
= control target key end

     0   :  { %vm19_vm0 = vcmask 785408   ;;  %v182_v1 = vmov 0.0   ;;  %vm53_vm1 = vcmask 261120   ;;  %vm144_vm2 = vcmask 781312   ;;  %s233_s1 = inlined_call_operand.vmem [shape: bf16[32,96], index: 1, kind: input, shape index: {}]   ;;  %s234_s0 = inlined_call_operand.vmem [shape: bf16[24,32], index: 0, kind: input, shape index: {}]   ;;  %s235_s2 = inlined_call_operand.vmem [shape: f32[1,96], index: 2, kind: input, shape index: {}]   ;;  %s236_s3 = inlined_call_operand.vmem [shape: bf16[24,96], index: 3, kind: output, shape index: {}]  }
   0x1   :  { %v178_v0 = vld [vmem:[%s233_s1] sm:$0xff]   ;;  %22 = vst.msk [vmem:[#allocation2 + $0x10] sm:$0xff] %vm19_vm0, %v182_v1  ;;  %20 = vst.msk [vmem:[#allocation2] sm:$0xff] %vm19_vm0, %v182_v1  ;;  %v179_v2 = vld [vmem:[%s233_s1 + $0x8] sm:$0xff]  }
   0x2   :  { %21 = vst.msk [vmem:[#allocation2 + $0x8] sm:$0xff] %vm19_vm0, %v182_v1  ;;  %169 = vmatprep.subr.bf16.mxu0 %v178_v0  ;;  %v180_v3 = vld [vmem:[%s234_s0] sm:$0xff]   ;;  %v181_v4 = vld [vmem:[%s234_s0 + $0x8] ss:$0 sps:$4 sm:$0xff]  }
   0x3   :  { %170 = vmatpush3.bf16.msra.mxu0 %v178_v0  ;;  %173 = vmatprep.mubr.msk.bf16.mxu0 %vm53_vm1, %v180_v3  ;;  %v158_v15 = vld [vmem:[%s235_s2] ss:$0 sm:$0xff] }
   0x4   :  { %171 = vmatprep.subr.bf16.mxu0 %v179_v2 }
   0x7   :  { %172 = vmatpush3.bf16.msra.mxu0 %v179_v2 }
   0x8   :  { %v25_v5 = vld [vmem:[#allocation2 + $0x10] sm:$0xff]  ;;  %v23_v6 = vld [vmem:[#allocation2] sm:$0xff] }
   0x9   :  { %v24_v10 = vld [vmem:[#allocation2 + $0x8] sm:$0xff] }
   0xa   :  { %174 = vmatmul.mubr.msk.bf16.vlgmr.msra.gmra.mrb[0].mxu0 %vm53_vm1, %v181_v4 }
  0xdd   :  { %v175_v7 = vpop.f32.mrb[0].mxu0 }
  0xde   :  { %v110_v8 = vadd.f32 %v175_v7, %v25_v5  ;;  %v94_v9 = vpop.f32.mrb[1].mxu0 }
  0xdf   :  { %v108_v11 = vadd.f32 %v94_v9, %v23_v6  ;;  %v176_v12 = vpop.f32.mrb[2].mxu0 }
  0xe0   :  { %114 = vst.msk [vmem:[#allocation2 + $0x10] sm:$0xff] %vm19_vm0, %v110_v8  ;;  %v97_v13 = vpop.f32.mrb[3].mxu0 }
  0xe1   :  { %112 = vst.msk [vmem:[#allocation2] sm:$0xff] %vm19_vm0, %v108_v11  ;;  %v109_v14 = vadd.f32 %v97_v13, %v24_v10 }
  0xe3   :  { %113 = vst.msk [vmem:[#allocation2 + $0x8] sm:$0xff] %vm19_vm0, %v109_v14 }
  0xe7   :  { %v120_v16 = vld [vmem:[#allocation2 + $0x10] sm:$0xff] }
  0xe8   :  { %v130_v17 = vadd.f32 %v158_v15, %v120_v16  ;;  %v118_v18 = vld [vmem:[#allocation2] sm:$0xff] }
  0xe9   :  { %v128_v19 = vadd.f32 %v158_v15, %v118_v18 }
  0xea   :  { %v164_v20 = vpack.c.bf16 %v130_v17, %v130_v17  ;;  %v119_v21 = vld [vmem:[#allocation2 + $0x8] sm:$0xff] }
  0xeb   :  { %v162_v22 = vpack.c.bf16 %v128_v19, %v128_v19  ;;  %v129_v23 = vadd.f32 %v158_v15, %v119_v21 }
  0xec   :  { %147 = vst.msk [vmem:[%s236_s3 + $0x8] sm:$0xf] %vm144_vm2, %v164_v20 }
  0xed   :  { %145 = vst.msk [vmem:[%s236_s3] sm:$0xf] %vm144_vm2, %v162_v22  ;;  %v163_v24 = vpack.c.bf16 %v129_v23, %v129_v23 }
  0xef   :  { %146 = vst.msk [vmem:[%s236_s3 + $0x4] sm:$0xf] %vm144_vm2, %v163_v24 }

// kernel: clip_forward.57
= control target key start
LH: loop header
LB: loop body
LE: loop exit
PB: predicated region body
PF: predicated region fallthrough
CT: control target
= control target key end

     0   :  { %vm20_vm0 = vcmask 261120   ;;  %vm94_vm1 = vcmask 257024   ;;  %s167_s0 = inlined_call_operand.vmem [shape: bf16[24,32], index: 0, kind: input, shape index: {}]   ;;  %s168_s1 = inlined_call_operand.vmem [shape: f32[1,32], index: 1, kind: input, shape index: {}]   ;;  %s169_s2 = inlined_call_operand.vmem [shape: f32[1,32], index: 2, kind: input, shape index: {}]   ;;  %s170_s3 = inlined_call_operand.vmem [shape: bf16[24,32], index: 3, kind: output, shape index: {}]  }
   0x1   :  { %v111_v0 = vld [vmem:[%s167_s0] sm:$0xff]   ;;  %v16_v1 = vld [vmem:[%s167_s0 + $0x8] sm:$0xf] }
   0x2   :  { %v112_v2 = vunpack.c.l.bf16 %v111_v0  ;;  %v19_v3 = vunpack.c.l.bf16 %v16_v1  ;;  %v113_v4 = vunpack.c.h.bf16 %v111_v0  ;;  %v102_v33 = vld [vmem:[%s168_s1] ss:$0 sm:$0xff] }
   0x3   :  { %v103_v35 = vld [vmem:[%s169_s2] ss:$0 sm:$0xff] }
   0x4   :  { %v21_v5 = vsel %vm20_vm0, %v112_v2, 0.0  ;;  %v27_v6 = vsel %vm20_vm0, %v19_v3, 0.0  ;;  %v24_v7 = vsel %vm20_vm0, %v113_v4, 0.0 }
   0x5   :  { %22 = vadd.xlane.f32.xlu0 %v21_v5  ;;  %28 = vadd.xlane.f32.xlu1 %v27_v6 }
   0x9   :  { %25 = vadd.xlane.f32.xlu0 %v24_v7 }
  0x92   :  { %v23_v8 = vpop.xlane.xlu0 %22  ;;  %v29_v9 = vpop.xlane.xlu1 %28 }
  0x93   :  { %v31_v10 = vmul.f32 0.03125, %v23_v8  ;;  %v33_v11 = vmul.f32 0.03125, %v29_v9 }
  0x95   :  { %v34_v12 = vsub.f32 %v112_v2, %v31_v10  ;;  %v36_v13 = vsub.f32 %v19_v3, %v33_v11 }
  0x96   :  { %v26_v14 = vpop.xlane.xlu0 %25 }
  0x97   :  { %v32_v15 = vmul.f32 0.03125, %v26_v14  ;;  %v37_v16 = vmul.f32 %v34_v12, %v34_v12  ;;  %v39_v17 = vmul.f32 %v36_v13, %v36_v13 }
  0x99   :  { %v35_v18 = vsub.f32 %v113_v4, %v32_v15  ;;  %v40_v19 = vsel %vm20_vm0, %v37_v16, 0.0  ;;  %v46_v20 = vsel %vm20_vm0, %v39_v17, 0.0 }
  0x9a   :  { %41 = vadd.xlane.f32.xlu1 %v40_v19 }
  0x9b   :  { %v38_v21 = vmul.f32 %v35_v18, %v35_v18 }
  0x9d   :  { %v43_v22 = vsel %vm20_vm0, %v38_v21, 0.0 }
  0x9e   :  { %47 = vadd.xlane.f32.xlu1 %v46_v20  ;;  %44 = vadd.xlane.f32.xlu0 %v43_v22 }
 0x127   :  { %v42_v23 = vpop.xlane.xlu1 %41 }
 0x128   :  { %v49_v24 = vmul.f32 0.03125, %v42_v23 }
 0x12a   :  { %v52_v25 = vadd.f32 1e-05, %v49_v24 }
 0x12b   :  { %v48_v26 = vpop.xlane.xlu1 %47  ;;  %v45_v27 = vpop.xlane.xlu0 %44 }
 0x12c   :  { %114 = vrsqrt.f32 %v52_v25  ;;  %v51_v28 = vmul.f32 0.03125, %v48_v26  ;;  %v50_v29 = vmul.f32 0.03125, %v45_v27 }
 0x12e   :  { %v54_v30 = vadd.f32 1e-05, %v51_v28  ;;  %v53_v31 = vadd.f32 1e-05, %v50_v29 }
 0x130   :  { %116 = vrsqrt.f32 %v54_v30 }
 0x131   :  { %118 = vrsqrt.f32 %v53_v31 }
 0x136   :  { %v115_v32 = vpop.eup %114 }
 0x137   :  { %v58_v34 = vmul.f32 %v115_v32, %v34_v12 }
 0x139   :  { %v68_v36 = vmul.f32 %v102_v33, %v58_v34 }
 0x13a   :  { %v117_v37 = vpop.eup %116 }
 0x13b   :  { %v119_v38 = vpop.eup %118  ;;  %v78_v39 = vadd.f32 %v103_v35, %v68_v36  ;;  %v60_v40 = vmul.f32 %v117_v37, %v36_v13 }
 0x13c   :  { %v59_v41 = vmul.f32 %v119_v38, %v35_v18 }
 0x13d   :  { %v107_v42 = vpack.c.bf16 %v78_v39, %v78_v39  ;;  %v70_v43 = vmul.f32 %v102_v33, %v60_v40 }
 0x13e   :  { %v69_v44 = vmul.f32 %v102_v33, %v59_v41 }
 0x13f   :  { %95 = vst.msk [vmem:[%s170_s3] sm:$0xf] %vm94_vm1, %v107_v42  ;;  %v80_v45 = vadd.f32 %v103_v35, %v70_v43 }
 0x140   :  { %v79_v46 = vadd.f32 %v103_v35, %v69_v44 }
 0x141   :  { %v109_v47 = vpack.c.bf16 %v80_v45, %v80_v45 }
 0x142   :  { %v108_v48 = vpack.c.bf16 %v79_v46, %v79_v46 }
 0x143   :  { %97 = vst.msk [vmem:[%s170_s3 + $0x8] sm:$0xf] %vm94_vm1, %v109_v47 }
 0x144   :  { %96 = vst.msk [vmem:[%s170_s3 + $0x4] sm:$0xf] %vm94_vm1, %v108_v48 }

// kernel: clip_forward.60
= control target key start
LH: loop header
LB: loop body
LE: loop exit
PB: predicated region body
PF: predicated region fallthrough
CT: control target
= control target key end

     0   :  { %vm22_vm0 = vcmask 261120   ;;  %v197_v1 = vmov 0.0   ;;  %vm155_vm1 = vcmask 257024   ;;  %s261_s1 = inlined_call_operand.vmem [shape: bf16[32,32], index: 1, kind: input, shape index: {}]   ;;  %s262_s0 = inlined_call_operand.vmem [shape: bf16[24,32], index: 0, kind: input, shape index: {}]   ;;  %s263_s3 = inlined_call_operand.vmem [shape: bf16[24,32], index: 3, kind: input, shape index: {}]   ;;  %s264_s2 = inlined_call_operand.vmem [shape: f32[1,32], index: 2, kind: input, shape index: {}]   ;;  %s265_s4 = inlined_call_operand.vmem [shape: bf16[24,32], index: 4, kind: output, shape index: {}]  }
   0x1   :  { %v193_v0 = vld [vmem:[%s261_s1] sm:$0xff]   ;;  %25 = vst.msk [vmem:[#allocation2 + $0x10] sm:$0xff] %vm22_vm0, %v197_v1  ;;  %23 = vst.msk [vmem:[#allocation2] sm:$0xff] %vm22_vm0, %v197_v1  ;;  %v194_v2 = vld [vmem:[%s261_s1 + $0x8] sm:$0xff]  }
   0x2   :  { %24 = vst.msk [vmem:[#allocation2 + $0x8] sm:$0xff] %vm22_vm0, %v197_v1  ;;  %184 = vmatprep.subr.bf16.mxu0 %v193_v0  ;;  %v195_v3 = vld [vmem:[%s262_s0] sm:$0xff]   ;;  %v196_v4 = vld [vmem:[%s262_s0 + $0x8] ss:$0 sps:$4 sm:$0xff]  }
   0x3   :  { %185 = vmatpush3.bf16.msra.mxu0 %v193_v0  ;;  %188 = vmatprep.mubr.msk.bf16.mxu0 %vm22_vm0, %v195_v3  ;;  %v135_v15 = vld [vmem:[%s263_s3 + $0x8] sm:$0xf]  ;;  %v177_v16 = vld [vmem:[%s263_s3] sm:$0xff]  }
   0x4   :  { %186 = vmatprep.subr.bf16.mxu0 %v194_v2  ;;  %v169_v17 = vld [vmem:[%s264_s2] ss:$0 sm:$0xff]  ;;  %v138_v18 = vunpack.c.l.bf16 %v135_v15  ;;  %v178_v20 = vunpack.c.l.bf16 %v177_v16  ;;  %v179_v24 = vunpack.c.h.bf16 %v177_v16 }
   0x7   :  { %187 = vmatpush3.bf16.msra.mxu0 %v194_v2 }
   0x8   :  { %v28_v5 = vld [vmem:[#allocation2 + $0x10] sm:$0xff]  ;;  %v26_v6 = vld [vmem:[#allocation2] sm:$0xff] }
   0x9   :  { %v27_v10 = vld [vmem:[#allocation2 + $0x8] sm:$0xff] }
   0xa   :  { %189 = vmatmul.mubr.msk.bf16.vlgmr.msra.gmra.mrb[0].mxu0 %vm22_vm0, %v196_v4 }
  0xdd   :  { %v190_v7 = vpop.f32.mrb[0].mxu0 }
  0xde   :  { %v113_v8 = vadd.f32 %v190_v7, %v28_v5  ;;  %v97_v9 = vpop.f32.mrb[1].mxu0 }
  0xdf   :  { %v111_v11 = vadd.f32 %v97_v9, %v26_v6  ;;  %v191_v12 = vpop.f32.mrb[2].mxu0 }
  0xe0   :  { %116 = vst.msk [vmem:[#allocation2 + $0x10] sm:$0xff] %vm22_vm0, %v113_v8  ;;  %v100_v13 = vpop.f32.mrb[3].mxu0 }
  0xe1   :  { %114 = vst.msk [vmem:[#allocation2] sm:$0xff] %vm22_vm0, %v111_v11  ;;  %v112_v14 = vadd.f32 %v100_v13, %v27_v10 }
  0xe3   :  { %115 = vst.msk [vmem:[#allocation2 + $0x8] sm:$0xff] %vm22_vm0, %v112_v14 }
  0xe7   :  { %v122_v19 = vld [vmem:[#allocation2 + $0x10] sm:$0xff] }
  0xe8   :  { %v132_v21 = vadd.f32 %v169_v17, %v122_v19  ;;  %v120_v22 = vld [vmem:[#allocation2] sm:$0xff] }
  0xe9   :  { %v130_v23 = vadd.f32 %v169_v17, %v120_v22 }
  0xea   :  { %v141_v25 = vadd.f32 %v138_v18, %v132_v21  ;;  %v121_v26 = vld [vmem:[#allocation2 + $0x8] sm:$0xff] }
  0xeb   :  { %v139_v27 = vadd.f32 %v178_v20, %v130_v23  ;;  %v131_v28 = vadd.f32 %v169_v17, %v121_v26 }
  0xec   :  { %v175_v29 = vpack.c.bf16 %v141_v25, %v141_v25 }
  0xed   :  { %v173_v30 = vpack.c.bf16 %v139_v27, %v139_v27  ;;  %v140_v31 = vadd.f32 %v179_v24, %v131_v28 }
  0xee   :  { %158 = vst.msk [vmem:[%s265_s4 + $0x8] sm:$0xf] %vm155_vm1, %v175_v29 }
  0xef   :  { %156 = vst.msk [vmem:[%s265_s4] sm:$0xf] %vm155_vm1, %v173_v30  ;;  %v174_v32 = vpack.c.bf16 %v140_v31, %v140_v31 }
  0xf1   :  { %157 = vst.msk [vmem:[%s265_s4 + $0x4] sm:$0xf] %vm155_vm1, %v174_v32 }

// kernel: clip_forward.62
= control target key start
LH: loop header
LB: loop body
LE: loop exit
PB: predicated region body
PF: predicated region fallthrough
CT: control target
= control target key end

     0   :  { %vm52_vm0 = vcmask 261120   ;;  %s263_s1 = inlined_call_operand.vmem [shape: bf16[32,128], index: 1, kind: input, shape index: {}]   ;;  %s264_s0 = inlined_call_operand.vmem [shape: bf16[24,32], index: 0, kind: input, shape index: {}]   ;;  %s265_s2 = inlined_call_operand.vmem [shape: f32[1,128], index: 2, kind: input, shape index: {}]   ;;  %s266_s3 = inlined_call_operand.vmem [shape: bf16[24,128], index: 3, kind: output, shape index: {}]  }
   0x1   :  { %v206_v0 = vld [vmem:[%s263_s1] sm:$0xff]   ;;  %v207_v1 = vld [vmem:[%s263_s1 + $0x8] sm:$0xff]  }
   0x2   :  { %198 = vmatprep.subr.bf16.mxu0 %v206_v0  ;;  %v208_v2 = vld [vmem:[%s264_s0] sm:$0xff]   ;;  %v209_v3 = vld [vmem:[%s264_s0 + $0x8] ss:$0 sps:$4 sm:$0xff]  }
   0x3   :  { %199 = vmatpush3.bf16.msra.mxu0 %v206_v0  ;;  %202 = vmatprep.mubr.msk.bf16.mxu0 %vm52_vm0, %v208_v2  ;;  %v179_v4 = vld [vmem:[%s265_s2] ss:$0 sm:$0xff] }
   0x4   :  { %200 = vmatprep.subr.bf16.mxu0 %v207_v1 }
   0x7   :  { %201 = vmatpush3.bf16.msra.mxu0 %v207_v1 }
   0xa   :  { %203 = vmatmul.mubr.msk.bf16.vlgmr.msra.gmra.mrb[0].mxu0 %vm52_vm0, %v209_v3 }
  0xdd   :  { %v204_v5 = vpop.f32.mrb[0].mxu0 }
  0xde   :  { %v128_v6 = vadd.f32 %v204_v5, %v179_v4  ;;  %v93_v7 = vpop.f32.mrb[1].mxu0 }
  0xdf   :  { %v126_v8 = vadd.f32 %v179_v4, %v93_v7  ;;  %v205_v9 = vpop.f32.mrb[2].mxu0 }
  0xe0   :  { %v182_v10 = vmul.f32 -1.702, %v128_v6  ;;  %v96_v11 = vpop.f32.mrb[3].mxu0 }
  0xe1   :  { %v180_v12 = vmul.f32 -1.702, %v126_v8  ;;  %v127_v13 = vadd.f32 %v179_v4, %v96_v11 }
  0xe2   :  { %v139_v14 = vmul.f32 1.442695, %v182_v10 }
  0xe3   :  { %v135_v15 = vmul.f32 1.442695, %v180_v12  ;;  %v181_v16 = vmul.f32 -1.702, %v127_v13 }
  0xe4   :  { %210 = vpow2.f32 %v139_v14 }
  0xe5   :  { %212 = vpow2.f32 %v135_v15  ;;  %v137_v17 = vmul.f32 1.442695, %v181_v16 }
  0xe7   :  { %214 = vpow2.f32 %v137_v17 }
  0xee   :  { %v211_v18 = vpop.eup %210 }
  0xef   :  { %v213_v19 = vpop.eup %212  ;;  %v143_v20 = vadd.f32 1.0, %v211_v18 }
  0xf0   :  { %v141_v21 = vadd.f32 1.0, %v213_v19 }
  0xf1   :  { %v215_v22 = vpop.eup %214  ;;  %216 = vrcp.f32 %v143_v20 }
  0xf2   :  { %218 = vrcp.f32 %v141_v21  ;;  %v142_v23 = vadd.f32 1.0, %v215_v22 }
  0xf4   :  { %220 = vrcp.f32 %v142_v23 }
  0xfb   :  { %v217_v24 = vpop.eup %216 }
  0xfc   :  { %v219_v25 = vpop.eup %218  ;;  %v152_v26 = vmul.f32 %v217_v24, %v128_v6 }
  0xfd   :  { %v150_v29 = vmul.f32 %v219_v25, %v126_v8 }
  0xfe   :  { %v221_v27 = vpop.eup %220  ;;  %v188_v28 = vpack.c.bf16 %v152_v26, %v152_v26 }
  0xff   :  { %v151_v30 = vmul.f32 %v221_v27, %v127_v13 }
 0x100   :  { %168 = vst [vmem:[%s266_s3 + $0x8] sm:$0xf] %v188_v28 }
 0x101   :  { %v192_v31 = vpack.c.bf16 %v151_v30, %v150_v29 }
 0x103   :  { %193 = vst [vmem:[%s266_s3] sm:$0xff] %v192_v31  }

// kernel: clip_forward.63
= control target key start
LH: loop header
LB: loop body
LE: loop exit
PB: predicated region body
PF: predicated region fallthrough
CT: control target
= control target key end

     0   :  { %vm22_vm0 = vcmask 261120   ;;  %v269_v1 = vmov 0.0   ;;  %vm199_vm1 = vcmask 257024   ;;  %s349_s1 = inlined_call_operand.vmem [shape: bf16[128,32], index: 1, kind: input, shape index: {}]   ;;  %s350_s0 = inlined_call_operand.vmem [shape: bf16[24,128], index: 0, kind: input, shape index: {}]   ;;  %s351_s3 = inlined_call_operand.vmem [shape: bf16[24,32], index: 3, kind: input, shape index: {}]   ;;  %s352_s2 = inlined_call_operand.vmem [shape: f32[1,32], index: 2, kind: input, shape index: {}]   ;;  %s353_s4 = inlined_call_operand.vmem [shape: bf16[24,32], index: 4, kind: output, shape index: {}]  }
   0x1   :  { %v259_v0 = vld [vmem:[%s349_s1] sm:$0xff]   ;;  %25 = vst.msk [vmem:[#allocation2 + $0x10] sm:$0xff] %vm22_vm0, %v269_v1  ;;  %23 = vst.msk [vmem:[#allocation2] sm:$0xff] %vm22_vm0, %v269_v1  ;;  %v260_v2 = vld [vmem:[%s349_s1 + $0x8] sm:$0xff]  }
   0x2   :  { %24 = vst.msk [vmem:[#allocation2 + $0x8] sm:$0xff] %vm22_vm0, %v269_v1  ;;  %238 = vmatprep.subr.bf16.mxu0 %v259_v0  ;;  %v261_v3 = vld [vmem:[%s349_s1 + $0x10] sm:$0xff]   ;;  %v262_v4 = vld [vmem:[%s349_s1 + $0x18] sm:$0xff]   ;;  %v267_v5 = vld [vmem:[%s350_s0] sm:$0xff]  }
   0x3   :  { %239 = vmatpush3.bf16.msra.mxu0 %v259_v0  ;;  %254 = vmatprep.mubr.bf16.mxu0 %v267_v5  ;;  %v263_v6 = vld [vmem:[%s349_s1 + $0x20] sm:$0xff]   ;;  %v264_v7 = vld [vmem:[%s349_s1 + $0x28] sm:$0xff]   ;;  %v265_v8 = vld [vmem:[%s349_s1 + $0x30] sm:$0xff]  }
   0x4   :  { %240 = vmatprep.subr.bf16.mxu0 %v260_v2  ;;  %v266_v9 = vld [vmem:[%s349_s1 + $0x38] sm:$0xff]   ;;  %v268_v10 = vld [vmem:[%s350_s0 + $0x8] ss:$0 sps:$4 sm:$0xff]   ;;  %v225_v22 = vld [vmem:[%s351_s3] sm:$0xff]  }
   0x5   :  { %v179_v21 = vld [vmem:[%s351_s3 + $0x8] sm:$0xf]  ;;  %v217_v23 = vld [vmem:[%s352_s2] ss:$0 sm:$0xff]  ;;  %v226_v26 = vunpack.c.l.bf16 %v225_v22  ;;  %v227_v30 = vunpack.c.h.bf16 %v225_v22 }
   0x6   :  { %v182_v24 = vunpack.c.l.bf16 %v179_v21 }
   0x7   :  { %241 = vmatpush3.bf16.msra.mxu0 %v260_v2 }
   0x8   :  { %242 = vmatprep.subr.bf16.mxu0 %v261_v3  ;;  %v28_v11 = vld [vmem:[#allocation2 + $0x10] sm:$0xff]  ;;  %v26_v12 = vld [vmem:[#allocation2] sm:$0xff] }
   0x9   :  { %v27_v16 = vld [vmem:[#allocation2 + $0x8] sm:$0xff] }
   0xb   :  { %243 = vmatpush3.bf16.msra.mxu0 %v261_v3 }
   0xc   :  { %244 = vmatprep.subr.bf16.mxu0 %v262_v4 }
   0xf   :  { %245 = vmatpush3.bf16.msra.mxu0 %v262_v4 }
  0x10   :  { %246 = vmatprep.subr.bf16.mxu0 %v263_v6 }
  0x13   :  { %247 = vmatpush3.bf16.msra.mxu0 %v263_v6 }
  0x14   :  { %248 = vmatprep.subr.bf16.mxu0 %v264_v7 }
  0x17   :  { %249 = vmatpush3.bf16.msra.mxu0 %v264_v7 }
  0x18   :  { %250 = vmatprep.subr.bf16.mxu0 %v265_v8 }
  0x1b   :  { %251 = vmatpush3.bf16.msra.mxu0 %v265_v8 }
  0x1c   :  { %252 = vmatprep.subr.bf16.mxu0 %v266_v9 }
  0x1f   :  { %253 = vmatpush3.bf16.msra.mxu0 %v266_v9 }
  0x22   :  { %255 = vmatmul.mubr.bf16.vlgmr.msra.gmra.mrb[0].mxu0 %v268_v10 }
  0xf5   :  { %v256_v13 = vpop.f32.mrb[0].mxu0 }
  0xf6   :  { %v156_v14 = vadd.f32 %v256_v13, %v28_v11  ;;  %v140_v15 = vpop.f32.mrb[1].mxu0 }
  0xf7   :  { %v154_v17 = vadd.f32 %v140_v15, %v26_v12  ;;  %v257_v18 = vpop.f32.mrb[2].mxu0 }
  0xf8   :  { %160 = vst.msk [vmem:[#allocation2 + $0x10] sm:$0xff] %vm22_vm0, %v156_v14  ;;  %v143_v19 = vpop.f32.mrb[3].mxu0 }
  0xf9   :  { %158 = vst.msk [vmem:[#allocation2] sm:$0xff] %vm22_vm0, %v154_v17  ;;  %v155_v20 = vadd.f32 %v143_v19, %v27_v16 }
  0xfb   :  { %159 = vst.msk [vmem:[#allocation2 + $0x8] sm:$0xff] %vm22_vm0, %v155_v20 }
  0xff   :  { %v166_v25 = vld [vmem:[#allocation2 + $0x10] sm:$0xff] }
 0x100   :  { %v176_v27 = vadd.f32 %v217_v23, %v166_v25  ;;  %v164_v28 = vld [vmem:[#allocation2] sm:$0xff] }
 0x101   :  { %v174_v29 = vadd.f32 %v217_v23, %v164_v28 }
 0x102   :  { %v185_v31 = vadd.f32 %v182_v24, %v176_v27  ;;  %v165_v32 = vld [vmem:[#allocation2 + $0x8] sm:$0xff] }
 0x103   :  { %v183_v33 = vadd.f32 %v226_v26, %v174_v29  ;;  %v175_v34 = vadd.f32 %v217_v23, %v165_v32 }
 0x104   :  { %v223_v35 = vpack.c.bf16 %v185_v31, %v185_v31 }
 0x105   :  { %v221_v36 = vpack.c.bf16 %v183_v33, %v183_v33  ;;  %v184_v37 = vadd.f32 %v227_v30, %v175_v34 }
 0x106   :  { %202 = vst.msk [vmem:[%s353_s4 + $0x8] sm:$0xf] %vm199_vm1, %v223_v35 }
 0x107   :  { %200 = vst.msk [vmem:[%s353_s4] sm:$0xf] %vm199_vm1, %v221_v36  ;;  %v222_v38 = vpack.c.bf16 %v184_v37, %v184_v37 }
 0x109   :  { %201 = vst.msk [vmem:[%s353_s4 + $0x4] sm:$0xf] %vm199_vm1, %v222_v38 }

// kernel: clip_forward.59
= control target key start
LH: loop header
LB: loop body
LE: loop exit
PB: predicated region body
PF: predicated region fallthrough
CT: control target
= control target key end

     0   :  { %vm45_vm0 = vcmask 64512   ;;  %v2084_v0 = vmov 0.0   ;;  %vm2085_vm1 = vmmov 0   ;;  %vm20_vm2 = vcmask 7168   ;;  %s2770_s1 = inlined_call_operand.vmem [shape: bf16[12,8,8], index: 1, kind: input, shape index: {}]   ;;  %s2771_s0 = inlined_call_operand.vmem [shape: bf16[12,8,8], index: 0, kind: input, shape index: {}]   ;;  %s2772_s2 = inlined_call_operand.vmem [shape: bf16[12,8,8], index: 2, kind: input, shape index: {}]   ;;  %s2773_s3 = inlined_call_operand.vmem [shape: bf16[12,8,8], index: 3, kind: output, shape index: {}]  }
   0x1   :  { %1862 = vmatprep.subr.bf16.mxu0 %v2084_v0  ;;  %1868 = vmatprep.subr.bf16.mxu1 %v2084_v0  ;;  %v86_v1 = vld [vmem:[%s2770_s1] sm:$0xf]  ;;  %46 = vst.msk [vmem:[#allocation4] sm:$0xff] %vm45_vm0, %v2084_v0  ;;  %47 = vst.msk [vmem:[#allocation4 + $0x8] sm:$0xff] %vm45_vm0, %v2084_v0  ;;  %v87_v2 = vld [vmem:[%s2770_s1 + $0x4] sm:$0xf]  ;;  %v652_v50 = vlaneseq }
   0x2   :  { %48 = vst.msk [vmem:[#allocation4 + $0x10] sm:$0xff] %vm45_vm0, %v2084_v0  ;;  %49 = vst.msk [vmem:[#allocation4 + $0x18] sm:$0xff] %vm45_vm0, %v2084_v0  ;;  %v103_v3 = vsel %vm45_vm0, %v86_v1, 0  ;;  %v149_v4 = vsel %vm45_vm0, %v87_v2, 0  ;;  %1864 = vmatprep.mubr.msk.bf16.mxu0 %vm2085_vm1, %v2084_v0  ;;  %1870 = vmatprep.mubr.msk.bf16.mxu1 %vm2085_vm1, %v2084_v0  ;;  %v62_v5 = vld [vmem:[%s2771_s0] sm:$0xf] }
   0x3   :  { %50 = vst.msk [vmem:[#allocation4 + $0x20] sm:$0xff] %vm45_vm0, %v2084_v0  ;;  %51 = vst.msk [vmem:[#allocation4 + $0x28] sm:$0xff] %vm45_vm0, %v2084_v0  ;;  %1863 = vmatpush3.bf16.xpose.msra.mxu0 %v103_v3  ;;  %1869 = vmatpush3.bf16.xpose.msra.mxu1 %v149_v4  ;;  %v63_v6 = vld [vmem:[%s2771_s0 + $0x4] sm:$0xf]  ;;  %v88_v7 = vld [vmem:[%s2770_s1 + $0x8] sm:$0xf] }
   0x4   :  { %52 = vst.msk [vmem:[#allocation4 + $0x30] sm:$0xff] %vm45_vm0, %v2084_v0  ;;  %53 = vst.msk [vmem:[#allocation4 + $0x38] sm:$0xff] %vm45_vm0, %v2084_v0  ;;  %1874 = vmatprep.subr.bf16.mxu0 %v2084_v0  ;;  %1880 = vmatprep.subr.bf16.mxu1 %v2084_v0  ;;  %v89_v8 = vld [vmem:[%s2770_s1 + $0xc] sm:$0xf]  ;;  %v74_v9 = vmul.bf16 1052065461, %v62_v5 }
   0x5   :  { %54 = vst.msk [vmem:[#allocation4 + $0x40] sm:$0xff] %vm45_vm0, %v2084_v0  ;;  %55 = vst.msk [vmem:[#allocation4 + $0x48] sm:$0xff] %vm45_vm0, %v2084_v0  ;;  %v75_v10 = vmul.bf16 1052065461, %v63_v6  ;;  %v195_v11 = vsel %vm45_vm0, %v88_v7, 0  ;;  %v241_v12 = vsel %vm45_vm0, %v89_v8, 0 }
   0x6   :  { %56 = vst.msk [vmem:[#allocation4 + $0x50] sm:$0xff] %vm45_vm0, %v2084_v0  ;;  %57 = vst.msk [vmem:[#allocation4 + $0x58] sm:$0xff] %vm45_vm0, %v2084_v0  ;;  %v64_v13 = vld [vmem:[%s2771_s0 + $0x8] sm:$0xf]  ;;  %v65_v14 = vld [vmem:[%s2771_s0 + $0xc] sm:$0xf] }
   0x7   :  { %v90_v15 = vld [vmem:[%s2770_s1 + $0x10] sm:$0xf]  ;;  %v91_v16 = vld [vmem:[%s2770_s1 + $0x14] sm:$0xf]  ;;  %v76_v17 = vmul.bf16 1052065461, %v64_v13 }
   0x8   :  { %v77_v18 = vmul.bf16 1052065461, %v65_v14  ;;  %v287_v19 = vsel %vm45_vm0, %v90_v15, 0  ;;  %v333_v20 = vsel %vm45_vm0, %v91_v16, 0  ;;  %v66_v21 = vld [vmem:[%s2771_s0 + $0x10] sm:$0xf] }
   0x9   :  { %v67_v22 = vld [vmem:[%s2771_s0 + $0x14] sm:$0xf]  ;;  %v92_v23 = vld [vmem:[%s2770_s1 + $0x18] sm:$0xf]  ;;  %v93_v24 = vld [vmem:[%s2770_s1 + $0x1c] sm:$0xf] }
   0xa   :  { %1865 = vmatmul.mubr.msk.bf16.vlgmr.msra.gmra.mrb[0].mxu0 %vm45_vm0, %v74_v9  ;;  %1871 = vmatmul.mubr.msk.bf16.vlgmr.msra.gmra.mrb[0].mxu1 %vm45_vm0, %v75_v10  ;;  %v78_v25 = vmul.bf16 1052065461, %v66_v21  ;;  %v79_v26 = vmul.bf16 1052065461, %v67_v22  ;;  %v379_v27 = vsel %vm45_vm0, %v92_v23, 0  ;;  %v425_v28 = vsel %vm45_vm0, %v93_v24, 0 }
   0xb   :  { %1875 = vmatpush3.bf16.xpose.msra.mxu0 %v195_v11  ;;  %1881 = vmatpush3.bf16.xpose.msra.mxu1 %v241_v12  ;;  %v68_v29 = vld [vmem:[%s2771_s0 + $0x18] sm:$0xf]  ;;  %v69_v30 = vld [vmem:[%s2771_s0 + $0x1c] sm:$0xf]  ;;  %v94_v31 = vld [vmem:[%s2770_s1 + $0x20] sm:$0xf] }
   0xc   :  { %1876 = vmatprep.mubr.msk.bf16.mxu0 %vm2085_vm1, %v2084_v0  ;;  %1882 = vmatprep.mubr.msk.bf16.mxu1 %vm2085_vm1, %v2084_v0  ;;  %v95_v32 = vld [vmem:[%s2770_s1 + $0x24] sm:$0xf]  ;;  %v80_v33 = vmul.bf16 1052065461, %v68_v29  ;;  %v81_v34 = vmul.bf16 1052065461, %v69_v30 }
   0xd   :  { %1886 = vmatprep.subr.bf16.mxu0 %v2084_v0  ;;  %1892 = vmatprep.subr.bf16.mxu1 %v2084_v0  ;;  %v471_v35 = vsel %vm45_vm0, %v94_v31, 0  ;;  %v517_v36 = vsel %vm45_vm0, %v95_v32, 0  ;;  %v70_v37 = vld [vmem:[%s2771_s0 + $0x20] sm:$0xf]  ;;  %v71_v38 = vld [vmem:[%s2771_s0 + $0x24] sm:$0xf] }
   0xe   :  { %v96_v39 = vld [vmem:[%s2770_s1 + $0x28] sm:$0xf]  ;;  %v97_v40 = vld [vmem:[%s2770_s1 + $0x2c] sm:$0xf]  ;;  %v82_v41 = vmul.bf16 1052065461, %v70_v37 }
   0xf   :  { %v83_v42 = vmul.bf16 1052065461, %v71_v38  ;;  %v563_v43 = vsel %vm45_vm0, %v96_v39, 0  ;;  %v609_v44 = vsel %vm45_vm0, %v97_v40, 0  ;;  %v72_v45 = vld [vmem:[%s2771_s0 + $0x28] sm:$0xf] }
  0x10   :  { %v73_v46 = vld [vmem:[%s2771_s0 + $0x2c] sm:$0xf]  ;;  %v84_v47 = vmul.bf16 1052065461, %v72_v45  ;;  %v2086_v49 = vmov -1e+30  }
  0x11   :  { %v85_v48 = vmul.bf16 1052065461, %v73_v46  ;;  %21 = vst.msk [vmem:[#allocation2] sm:$0xff] %vm20_vm2, %v2086_v49  ;;  %22 = vst.msk [vmem:[#allocation2 + $0x8] sm:$0xff] %vm20_vm2, %v2086_v49  ;;  %v653_v51 = vand.u32 127, %v652_v50  ;;  %v659_v52 = vshrl.u32 %v652_v50, 7 }
  0x12   :  { %1877 = vmatmul.mubr.msk.bf16.vlgmr.msra.gmra.mrb[4].mxu0 %vm45_vm0, %v76_v17  ;;  %1883 = vmatmul.mubr.msk.bf16.vlgmr.msra.gmra.mrb[4].mxu1 %vm45_vm0, %v77_v18  ;;  %23 = vst.msk [vmem:[#allocation2 + $0x10] sm:$0xff] %vm20_vm2, %v2086_v49  ;;  %24 = vst.msk [vmem:[#allocation2 + $0x18] sm:$0xff] %vm20_vm2, %v2086_v49  ;;  %vm1064_vm6 = vcmask 1043456   ;;  %vm1773_vm7 = vcmask 60416  }
  0x13   :  { %1887 = vmatpush3.bf16.xpose.msra.mxu0 %v287_v19  ;;  %1893 = vmatpush3.bf16.xpose.msra.mxu1 %v333_v20  ;;  %25 = vst.msk [vmem:[#allocation2 + $0x20] sm:$0xff] %vm20_vm2, %v2086_v49  ;;  %26 = vst.msk [vmem:[#allocation2 + $0x28] sm:$0xff] %vm20_vm2, %v2086_v49  ;;  %vm656_vm3 = vcmp.lt.s32.totalorder %v653_v51, 8  ;;  %vm662_vm4 = vcmp.le.s32.totalorder %v653_v51, %v659_v52 }
  0x14   :  { %1888 = vmatprep.mubr.msk.bf16.mxu0 %vm2085_vm1, %v2084_v0  ;;  %1894 = vmatprep.mubr.msk.bf16.mxu1 %vm2085_vm1, %v2084_v0  ;;  %27 = vst.msk [vmem:[#allocation2 + $0x30] sm:$0xff] %vm20_vm2, %v2086_v49  ;;  %28 = vst.msk [vmem:[#allocation2 + $0x38] sm:$0xff] %vm20_vm2, %v2086_v49 }
  0x15   :  { %1898 = vmatprep.subr.bf16.mxu0 %v2084_v0  ;;  %1904 = vmatprep.subr.bf16.mxu1 %v2084_v0  ;;  %29 = vst.msk [vmem:[#allocation2 + $0x40] sm:$0xff] %vm20_vm2, %v2086_v49  ;;  %30 = vst.msk [vmem:[#allocation2 + $0x48] sm:$0xff] %vm20_vm2, %v2086_v49 }
  0x16   :  { %31 = vst.msk [vmem:[#allocation2 + $0x50] sm:$0xff] %vm20_vm2, %v2086_v49  ;;  %32 = vst.msk [vmem:[#allocation2 + $0x58] sm:$0xff] %vm20_vm2, %v2086_v49 }
  0x17   :  { %33 = vst.msk [vmem:[#allocation3] sm:$0xff] %vm20_vm2, %v2084_v0  ;;  %34 = vst.msk [vmem:[#allocation3 + $0x8] sm:$0xff] %vm20_vm2, %v2084_v0 }
  0x18   :  { %35 = vst.msk [vmem:[#allocation3 + $0x10] sm:$0xff] %vm20_vm2, %v2084_v0  ;;  %36 = vst.msk [vmem:[#allocation3 + $0x18] sm:$0xff] %vm20_vm2, %v2084_v0 }
  0x19   :  { %37 = vst.msk [vmem:[#allocation3 + $0x20] sm:$0xff] %vm20_vm2, %v2084_v0  ;;  %38 = vst.msk [vmem:[#allocation3 + $0x28] sm:$0xff] %vm20_vm2, %v2084_v0 }
  0x1a   :  { %1889 = vmatmul.mubr.msk.bf16.vlgmr.msra.gmra.mrb[8].mxu0 %vm45_vm0, %v78_v25  ;;  %1895 = vmatmul.mubr.msk.bf16.vlgmr.msra.gmra.mrb[8].mxu1 %vm45_vm0, %v79_v26  ;;  %39 = vst.msk [vmem:[#allocation3 + $0x30] sm:$0xff] %vm20_vm2, %v2084_v0  ;;  %40 = vst.msk [vmem:[#allocation3 + $0x38] sm:$0xff] %vm20_vm2, %v2084_v0 }
  0x1b   :  { %1899 = vmatpush3.bf16.xpose.msra.mxu0 %v379_v27  ;;  %1905 = vmatpush3.bf16.xpose.msra.mxu1 %v425_v28  ;;  %41 = vst.msk [vmem:[#allocation3 + $0x40] sm:$0xff] %vm20_vm2, %v2084_v0  ;;  %42 = vst.msk [vmem:[#allocation3 + $0x48] sm:$0xff] %vm20_vm2, %v2084_v0  ;;  %v2087_v27 = vmov 0  }
  0x1c   :  { %1900 = vmatprep.mubr.msk.bf16.mxu0 %vm2085_vm1, %v2084_v0  ;;  %1906 = vmatprep.mubr.msk.bf16.mxu1 %vm2085_vm1, %v2084_v0  ;;  %43 = vst.msk [vmem:[#allocation3 + $0x50] sm:$0xff] %vm20_vm2, %v2084_v0  ;;  %44 = vst.msk [vmem:[#allocation3 + $0x58] sm:$0xff] %vm20_vm2, %v2084_v0 }
  0x1d   :  { %1910 = vmatprep.subr.bf16.mxu0 %v2084_v0  ;;  %1916 = vmatprep.subr.bf16.mxu1 %v2084_v0  ;;  %vm2306_vm5 = vmand %vm656_vm3, %vm662_vm4 }
  0x1e   :  { %2010 = vset.pattern.permute.xlu0 %v2087_v27  ;;  %2011 = vset.pattern.permute.xlu1 %v2087_v27  ;;  %v1049_v27 = vld [vmem:[%s2772_s2] sm:$0xf] }
  0x22   :  { %1901 = vmatmul.mubr.msk.bf16.vlgmr.msra.gmra.mrb[12].mxu0 %vm45_vm0, %v80_v33  ;;  %1907 = vmatmul.mubr.msk.bf16.vlgmr.msra.gmra.mrb[12].mxu1 %vm45_vm0, %v81_v34 }
  0x23   :  { %1911 = vmatpush3.bf16.xpose.msra.mxu0 %v471_v35  ;;  %1917 = vmatpush3.bf16.xpose.msra.mxu1 %v517_v36 }
  0x24   :  { %1912 = vmatprep.mubr.msk.bf16.mxu0 %vm2085_vm1, %v2084_v0  ;;  %1918 = vmatprep.mubr.msk.bf16.mxu1 %vm2085_vm1, %v2084_v0 }
  0x25   :  { %1922 = vmatprep.subr.bf16.mxu0 %v2084_v0  ;;  %1928 = vmatprep.subr.bf16.mxu1 %v2084_v0 }
  0x2a   :  { %1913 = vmatmul.mubr.msk.bf16.vlgmr.msra.gmra.mrb[16].mxu0 %vm45_vm0, %v82_v41  ;;  %1919 = vmatmul.mubr.msk.bf16.vlgmr.msra.gmra.mrb[16].mxu1 %vm45_vm0, %v83_v42 }
  0x2b   :  { %1923 = vmatpush3.bf16.xpose.msra.mxu0 %v563_v43  ;;  %1929 = vmatpush3.bf16.xpose.msra.mxu1 %v609_v44 }
  0x2c   :  { %1924 = vmatprep.mubr.msk.bf16.mxu0 %vm2085_vm1, %v2084_v0  ;;  %1930 = vmatprep.mubr.msk.bf16.mxu1 %vm2085_vm1, %v2084_v0 }
  0x2d   :  { %1934 = vmatprep.subr.bf16.mxu0 %v2084_v0  ;;  %1940 = vmatprep.subr.bf16.mxu1 %v2084_v0 }
  0x32   :  { %1925 = vmatmul.mubr.msk.bf16.vlgmr.msra.gmra.mrb[20].mxu0 %vm45_vm0, %v84_v47  ;;  %1931 = vmatmul.mubr.msk.bf16.vlgmr.msra.gmra.mrb[20].mxu1 %vm45_vm0, %v85_v48 }
  0x33   :  { %1936 = vmatprep.mubr.msk.bf16.mxu0 %vm2085_vm1, %v2084_v0  ;;  %1942 = vmatprep.mubr.msk.bf16.mxu1 %vm2085_vm1, %v2084_v0 }
  0xdd   :  { %v139_v54 = vpop.f32.mrb[0].mxu0  ;;  %v185_v55 = vpop.f32.mrb[0].mxu1 }
  0xde   :  { %v2312_v56 = vsel %vm2306_vm5, %v139_v54, -1e+30  ;;  %v1866_v57 = vpop.f32.mrb[1].mxu0  ;;  %v1872_v58 = vpop.f32.mrb[1].mxu1  ;;  %v2318_v62 = vsel %vm2306_vm5, %v185_v55, -1e+30 }
  0xdf   :  { %v142_v59 = vpop.f32.mrb[2].mxu0  ;;  %v188_v60 = vpop.f32.mrb[2].mxu1  ;;  %v688_v61 = vsel %vm45_vm0, %v2312_v56, -inf  ;;  %v691_v2 = vsel %vm45_vm0, %v2318_v62, -inf }
  0xe0   :  { %v1873_v63 = vpop.f32.mrb[3].mxu1  ;;  %689 = vmax.xlane.f32.xlu0 %v688_v61  ;;  %v1867_v1 = vpop.f32.mrb[3].mxu0 }
  0xe4   :  { %692 = vmax.xlane.f32.xlu0 %v691_v2 }
  0xe5   :  { %v231_v3 = vpop.f32.mrb[4].mxu0  ;;  %v277_v4 = vpop.f32.mrb[4].mxu1 }
  0xe6   :  { %v2324_v5 = vsel %vm2306_vm5, %v231_v3, -1e+30  ;;  %v1878_v6 = vpop.f32.mrb[5].mxu0  ;;  %v1884_v7 = vpop.f32.mrb[5].mxu1  ;;  %v2330_v11 = vsel %vm2306_vm5, %v277_v4, -1e+30 }
  0xe7   :  { %v234_v8 = vpop.f32.mrb[6].mxu0  ;;  %v280_v9 = vpop.f32.mrb[6].mxu1  ;;  %v694_v10 = vsel %vm45_vm0, %v2324_v5, -inf  ;;  %v697_v14 = vsel %vm45_vm0, %v2330_v11, -inf  ;;  %v2382_v4 = vld [vmem:[#allocation2] sm:$0xff]  ;;  %v2387_v7 = vld [vmem:[#allocation2 + $0x8] sm:$0xff] }
  0xe8   :  { %v1885_v12 = vpop.f32.mrb[7].mxu1  ;;  %695 = vmax.xlane.f32.xlu1 %v694_v10  ;;  %v1879_v13 = vpop.f32.mrb[7].mxu0 }
  0xe9   :  { %v2397_v12 = vld [vmem:[#allocation2 + $0x10] sm:$0xff] }
  0xec   :  { %698 = vmax.xlane.f32.xlu1 %v697_v14 }
  0xed   :  { %v323_v15 = vpop.f32.mrb[8].mxu0  ;;  %v369_v16 = vpop.f32.mrb[8].mxu1 }
  0xee   :  { %v2336_v17 = vsel %vm2306_vm5, %v323_v15, -1e+30  ;;  %v2340_v18 = vsel %vm2306_vm5, %v369_v16, -1e+30  ;;  %v1890_v19 = vpop.f32.mrb[9].mxu0  ;;  %v1896_v20 = vpop.f32.mrb[9].mxu1 }
  0xef   :  { %v326_v21 = vpop.f32.mrb[10].mxu0  ;;  %v372_v22 = vpop.f32.mrb[10].mxu1  ;;  %v700_v23 = vsel %vm45_vm0, %v2336_v17, -inf  ;;  %v703_v24 = vsel %vm45_vm0, %v2340_v18, -inf  ;;  %v2407_v16 = vld [vmem:[#allocation2 + $0x18] sm:$0xff] }
  0xf0   :  { %v1897_v25 = vpop.f32.mrb[11].mxu1  ;;  %701 = vmax.xlane.f32.xlu0 %v700_v23  ;;  %v1891_v26 = vpop.f32.mrb[11].mxu0  ;;  %704 = vmax.xlane.f32.xlu1 %v703_v24  ;;  %v2417_v22 = vld [vmem:[#allocation2 + $0x20] sm:$0xff]  ;;  %v2419_v23 = vld [vmem:[#allocation2 + $0x28] sm:$0xff] }
  0xf5   :  { %v415_v28 = vpop.f32.mrb[12].mxu0  ;;  %v461_v29 = vpop.f32.mrb[12].mxu1 }
  0xf6   :  { %v2348_v30 = vsel %vm2306_vm5, %v415_v28, -1e+30  ;;  %v2352_v31 = vsel %vm2306_vm5, %v461_v29, -1e+30  ;;  %v1902_v32 = vpop.f32.mrb[13].mxu0  ;;  %v1908_v33 = vpop.f32.mrb[13].mxu1 }
  0xf7   :  { %v418_v34 = vpop.f32.mrb[14].mxu0  ;;  %v464_v35 = vpop.f32.mrb[14].mxu1  ;;  %v706_v36 = vsel %vm45_vm0, %v2348_v30, -inf  ;;  %v709_v37 = vsel %vm45_vm0, %v2352_v31, -inf  ;;  %v1066_v32 = vsel %vm1064_vm6, %v1049_v27, 0 }
  0xf8   :  { %v1909_v38 = vpop.f32.mrb[15].mxu1  ;;  %707 = vmax.xlane.f32.xlu0 %v706_v36  ;;  %v1903_v39 = vpop.f32.mrb[15].mxu0  ;;  %710 = vmax.xlane.f32.xlu1 %v709_v37  ;;  %v1050_v35 = vld [vmem:[%s2772_s2 + $0x4] sm:$0xf]  ;;  %v2450_v37 = vld [vmem:[#allocation2 + $0x30] sm:$0xff] }
  0xf9   :  { %1935 = vmatpush3.bf16.msra.mxu0 %v1066_v32  ;;  %v1112_v36 = vsel %vm1064_vm6, %v1050_v35, 0  ;;  %v2452_v38 = vld [vmem:[#allocation2 + $0x38] sm:$0xff] }
  0xfa   :  { %1946 = vmatprep.subr.bf16.mxu0 %v2084_v0  ;;  %1941 = vmatpush3.bf16.msra.mxu1 %v1112_v36 }
  0xfb   :  { %1952 = vmatprep.subr.bf16.mxu1 %v2084_v0 }
  0xfd   :  { %v507_v40 = vpop.f32.mrb[16].mxu0  ;;  %v553_v41 = vpop.f32.mrb[16].mxu1 }
  0xfe   :  { %v2360_v42 = vsel %vm2306_vm5, %v507_v40, -1e+30  ;;  %v2364_v43 = vsel %vm2306_vm5, %v553_v41, -1e+30  ;;  %v1914_v44 = vpop.f32.mrb[17].mxu0  ;;  %v1920_v45 = vpop.f32.mrb[17].mxu1 }
  0xff   :  { %v510_v46 = vpop.f32.mrb[18].mxu0  ;;  %v556_v47 = vpop.f32.mrb[18].mxu1  ;;  %v715_v48 = vsel %vm45_vm0, %v2364_v43, -inf  ;;  %v712_v49 = vsel %vm45_vm0, %v2360_v42, -inf  ;;  %v1051_v41 = vld [vmem:[%s2772_s2 + $0x8] sm:$0xf] }
 0x100   :  { %v1921_v50 = vpop.f32.mrb[19].mxu1  ;;  %716 = vmax.xlane.f32.xlu1 %v715_v48  ;;  %713 = vmax.xlane.f32.xlu0 %v712_v49  ;;  %v1915_v51 = vpop.f32.mrb[19].mxu0  ;;  %v2466_v46 = vsel %vm1064_vm6, %v1051_v41, 0  ;;  %v1052_v49 = vld [vmem:[%s2772_s2 + $0xc] sm:$0xf] }
 0x101   :  { %v2481_v50 = vsel %vm1064_vm6, %v1052_v49, 0  ;;  %v2483_v51 = vld [vmem:[#allocation2 + $0x48] sm:$0xff]  ;;  %v1057_v49 = vld [vmem:[%s2772_s2 + $0x20] sm:$0xf] }
 0x105   :  { %v599_v52 = vpop.f32.mrb[20].mxu0  ;;  %v645_v54 = vpop.f32.mrb[20].mxu1 }
 0x106   :  { %v2372_v55 = vsel %vm2306_vm5, %v599_v52, -1e+30  ;;  %v2376_v57 = vsel %vm2306_vm5, %v645_v54, -1e+30  ;;  %v1926_v58 = vpop.f32.mrb[21].mxu0  ;;  %v1932_v59 = vpop.f32.mrb[21].mxu1 }
 0x107   :  { %v602_v60 = vpop.f32.mrb[22].mxu0  ;;  %v648_v61 = vpop.f32.mrb[22].mxu1  ;;  %v721_v63 = vsel %vm45_vm0, %v2376_v57, -inf  ;;  %v718_v1 = vsel %vm45_vm0, %v2372_v55, -inf  ;;  %v2485_v52 = vld [vmem:[#allocation2 + $0x40] sm:$0xff] }
 0x108   :  { %v1933_v2 = vpop.f32.mrb[23].mxu1  ;;  %722 = vmax.xlane.f32.xlu1 %v721_v63  ;;  %719 = vmax.xlane.f32.xlu0 %v718_v1  ;;  %v1927_v3 = vpop.f32.mrb[23].mxu0  ;;  %v1053_v59 = vld [vmem:[%s2772_s2 + $0x10] sm:$0xf] }
 0x109   :  { %v2498_v63 = vsel %vm1064_vm6, %v1053_v59, 0  ;;  %v1054_v3 = vld [vmem:[%s2772_s2 + $0x14] sm:$0xf] }
 0x16d   :  { %v690_v6 = vpop.xlane.xlu0 %689 }
 0x16e   :  { %v2385_v53 = vmax.f32 %v2382_v4, %v690_v6  ;;  %v2514_v6 = vsel %vm1064_vm6, %v1054_v3, 0  ;;  %v1059_v3 = vld [vmem:[%s2772_s2 + $0x28] sm:$0xf] }
 0x170   :  { %v736_v8 = vsub.f32 %v2382_v4, %v2385_v53  ;;  %1638 = vst.msk [vmem:[#allocation2] sm:$0xff] %vm20_vm2, %v2385_v53  ;;  %774 = vperm.xlu0 %2010, %v2385_v53  }
 0x171   :  { %v693_v9 = vpop.xlane.xlu0 %692 }
 0x172   :  { %v2395_v10 = vmax.f32 %v2387_v7, %v693_v9  ;;  %v2516_v9 = vld [vmem:[#allocation2 + $0x58] sm:$0xff] }
 0x174   :  { %v737_v13 = vsub.f32 %v2387_v7, %v2395_v10  ;;  %1639 = vst.msk [vmem:[#allocation2 + $0x8] sm:$0xff] %vm20_vm2, %v2395_v10  ;;  %779 = vperm.xlu1 %2011, %v2395_v10  }
 0x175   :  { %v696_v14 = vpop.xlane.xlu1 %695 }
 0x176   :  { %v2405_v15 = vmax.f32 %v2397_v12, %v696_v14  ;;  %v2518_v14 = vld [vmem:[#allocation2 + $0x50] sm:$0xff] }
 0x178   :  { %v738_v19 = vsub.f32 %v2397_v12, %v2405_v15  ;;  %1640 = vst.msk [vmem:[#allocation2 + $0x10] sm:$0xff] %vm20_vm2, %v2405_v15  ;;  %784 = vperm.xlu1 %2011, %v2405_v15  }
 0x179   :  { %v699_v20 = vpop.xlane.xlu1 %698 }
 0x17a   :  { %v2415_v21 = vmax.f32 %v2407_v16, %v699_v20 }
 0x17c   :  { %1641 = vst.msk [vmem:[#allocation2 + $0x18] sm:$0xff] %vm20_vm2, %v2415_v21  ;;  %789 = vperm.xlu1 %2011, %v2415_v21  }
 0x17d   :  { %v702_v25 = vpop.xlane.xlu0 %701  ;;  %v705_v26 = vpop.xlane.xlu1 %704 }
 0x17e   :  { %v2430_v28 = vmax.f32 %v2417_v22, %v702_v25  ;;  %v2433_v29 = vmax.f32 %v2419_v23, %v705_v26  ;;  %v1055_v26 = vld [vmem:[%s2772_s2 + $0x18] sm:$0xf] }
 0x17f   :  { %v2530_v35 = vsel %vm1064_vm6, %v1055_v26, 0 }
 0x180   :  { %1642 = vst.msk [vmem:[#allocation2 + $0x20] sm:$0xff] %vm20_vm2, %v2430_v28  ;;  %1643 = vst.msk [vmem:[#allocation2 + $0x28] sm:$0xff] %vm20_vm2, %v2433_v29  ;;  %794 = vperm.xlu1 %2011, %v2430_v28   ;;  %v2777_v7 = vsub.f32 %v2417_v22, %v2430_v28  ;;  %v2778_v4 = vsub.f32 %v2419_v23, %v2433_v29 }
 0x182   :  { %v756_v10 = vmul.f32 1.442695, %v2777_v7  ;;  %v758_v53 = vmul.f32 1.442695, %v2778_v4  ;;  %v876_v4 = vld [vmem:[#allocation3 + $0x40] sm:$0xff] }
 0x184   :  { %799 = vperm.xlu1 %2011, %v2433_v29  }
 0x185   :  { %v708_v39 = vpop.xlane.xlu0 %707  ;;  %v711_v40 = vpop.xlane.xlu1 %710 }
 0x186   :  { %v2460_v44 = vmax.f32 %v2450_v37, %v708_v39  ;;  %v2463_v45 = vmax.f32 %v2452_v38, %v711_v40  ;;  %v1056_v40 = vld [vmem:[%s2772_s2 + $0x1c] sm:$0xf] }
 0x187   :  { %v2546_v41 = vsel %vm1064_vm6, %v1056_v40, 0 }
 0x188   :  { %1644 = vst.msk [vmem:[#allocation2 + $0x30] sm:$0xff] %vm20_vm2, %v2460_v44  ;;  %1645 = vst.msk [vmem:[#allocation2 + $0x38] sm:$0xff] %vm20_vm2, %v2463_v45  ;;  %804 = vperm.xlu1 %2011, %v2460_v44   ;;  %v2780_v15 = vsub.f32 %v2452_v38, %v2463_v45 }
 0x18c   :  { %809 = vperm.xlu1 %2011, %v2463_v45  }
 0x18d   :  { %v717_v54 = vpop.xlane.xlu1 %716  ;;  %v714_v58 = vpop.xlane.xlu0 %713 }
 0x18e   :  { %v2492_v60 = vmax.f32 %v2483_v51, %v717_v54  ;;  %v2495_v61 = vmax.f32 %v2485_v52, %v714_v58  ;;  %v2552_v54 = vsel %vm1064_vm6, %v1057_v49, 0  ;;  %v1058_v58 = vld [vmem:[%s2772_s2 + $0x24] sm:$0xf] }
 0x18f   :  { %v2558_v59 = vsel %vm1064_vm6, %v1058_v58, 0 }
 0x190   :  { %1647 = vst.msk [vmem:[#allocation2 + $0x48] sm:$0xff] %vm20_vm2, %v2492_v60  ;;  %1646 = vst.msk [vmem:[#allocation2 + $0x40] sm:$0xff] %vm20_vm2, %v2495_v61  ;;  %814 = vperm.xlu1 %2011, %v2495_v61   ;;  %819 = vperm.xlu0 %2010, %v2492_v60   ;;  %v2782_v28 = vsub.f32 %v2483_v51, %v2492_v60 }
 0x192   :  { %v766_v29 = vmul.f32 1.442695, %v2782_v28 }
 0x195   :  { %v723_v20 = vpop.xlane.xlu1 %722  ;;  %v720_v25 = vpop.xlane.xlu0 %719 }
 0x196   :  { %v2524_v27 = vmax.f32 %v2516_v9, %v723_v20  ;;  %v2527_v32 = vmax.f32 %v2518_v14, %v720_v25  ;;  %v2564_v20 = vsel %vm1064_vm6, %v1059_v3, 0  ;;  %v1060_v25 = vld [vmem:[%s2772_s2 + $0x2c] sm:$0xf] }
 0x197   :  { %v2570_v26 = vsel %vm1064_vm6, %v1060_v25, 0 }
 0x198   :  { %1649 = vst.msk [vmem:[#allocation2 + $0x58] sm:$0xff] %vm20_vm2, %v2524_v27  ;;  %1648 = vst.msk [vmem:[#allocation2 + $0x50] sm:$0xff] %vm20_vm2, %v2527_v32  ;;  %829 = vperm.xlu0 %2010, %v2524_v27   ;;  %824 = vperm.xlu1 %2011, %v2527_v32  }
 0x1ef   :  { %v775_v40 = vpop.permute.xlu0 %774 }
 0x1f0   :  { %v832_v49 = vsub.f32 %v2312_v56, %v775_v40 }
 0x1f2   :  { %v844_v36 = vmul.f32 1.442695, %v832_v49 }
 0x1f3   :  { %v780_v58 = vpop.permute.xlu1 %779 }
 0x1f4   :  { %2012 = vpow2.f32 %v844_v36  ;;  %v833_v39 = vsub.f32 %v2318_v62, %v780_v58 }
 0x1f6   :  { %v846_v1 = vmul.f32 1.442695, %v833_v39 }
 0x1f7   :  { %v785_v2 = vpop.permute.xlu1 %784 }
 0x1f8   :  { %2014 = vpow2.f32 %v846_v1  ;;  %v834_v3 = vsub.f32 %v2324_v5, %v785_v2 }
 0x1fa   :  { %v848_v48 = vmul.f32 1.442695, %v834_v3 }
 0x1fb   :  { %v790_v47 = vpop.permute.xlu1 %789 }
 0x1fc   :  { %2016 = vpow2.f32 %v848_v48  ;;  %v835_v34 = vsub.f32 %v2330_v11, %v790_v47 }
 0x1fe   :  { %v2013_v25 = vpop.eup %2012  ;;  %v850_v33 = vmul.f32 1.442695, %v835_v34 }
 0x1ff   :  { %v795_v24 = vpop.permute.xlu1 %794  ;;  %v892_v56 = vsel %vm45_vm0, %v2013_v25, 0.0  ;;  %v1037_v40 = vpack.c.bf16 %v2013_v25, %v2013_v25 }
 0x200   :  { %2018 = vpow2.f32 %v850_v33  ;;  %v836_v36 = vsub.f32 %v2336_v17, %v795_v24  ;;  %893 = vadd.xlane.f32.xlu1 %v892_v56 }
 0x201   :  { %1937 = vmatmul.mubr.msk.bf16.vlgmr.msra.gmra.mrb[24].mxu0 %vm45_vm0, %v1037_v40 }
 0x202   :  { %v2015_v62 = vpop.eup %2014  ;;  %v852_v1 = vmul.f32 1.442695, %v836_v36  ;;  %1947 = vmatpush3.bf16.msra.mxu0 %v2466_v46  ;;  %1948 = vmatprep.mubr.msk.bf16.mxu0 %vm2085_vm1, %v2084_v0 }
 0x203   :  { %v800_v5 = vpop.permute.xlu1 %799  ;;  %v895_v11 = vsel %vm45_vm0, %v2015_v62, 0.0  ;;  %v1038_v34 = vpack.c.bf16 %v2015_v62, %v2015_v62  ;;  %1958 = vmatprep.subr.bf16.mxu0 %v2084_v0 }
 0x204   :  { %2020 = vpow2.f32 %v852_v1  ;;  %v837_v33 = vsub.f32 %v2340_v18, %v800_v5  ;;  %896 = vadd.xlane.f32.xlu0 %v895_v11 }
 0x205   :  { %1943 = vmatmul.mubr.msk.bf16.vlgmr.msra.gmra.mrb[24].mxu1 %vm45_vm0, %v1038_v34 }
 0x206   :  { %v2017_v17 = vpop.eup %2016  ;;  %v854_v24 = vmul.f32 1.442695, %v837_v33  ;;  %1953 = vmatpush3.bf16.msra.mxu1 %v2481_v50  ;;  %1954 = vmatprep.mubr.msk.bf16.mxu1 %vm2085_vm1, %v2084_v0 }
 0x207   :  { %v805_v46 = vpop.permute.xlu1 %804  ;;  %v898_v47 = vsel %vm45_vm0, %v2017_v17, 0.0  ;;  %v1039_v48 = vpack.c.bf16 %v2017_v17, %v2017_v17  ;;  %1964 = vmatprep.subr.bf16.mxu1 %v2084_v0 }
 0x208   :  { %2022 = vpow2.f32 %v854_v24  ;;  %v838_v2 = vsub.f32 %v2348_v30, %v805_v46  ;;  %899 = vadd.xlane.f32.xlu0 %v898_v47 }
 0x209   :  { %1949 = vmatmul.mubr.msk.bf16.vlgmr.msra.gmra.mrb[28].mxu0 %vm45_vm0, %v1039_v48 }
 0x20a   :  { %v2019_v18 = vpop.eup %2018  ;;  %v856_v39 = vmul.f32 1.442695, %v838_v2  ;;  %1959 = vmatpush3.bf16.msra.mxu0 %v2498_v63  ;;  %1960 = vmatprep.mubr.msk.bf16.mxu0 %vm2085_vm1, %v2084_v0 }
 0x20b   :  { %v810_v50 = vpop.permute.xlu1 %809  ;;  %v901_v49 = vsel %vm45_vm0, %v2019_v18, 0.0  ;;  %v1040_v58 = vpack.c.bf16 %v2019_v18, %v2019_v18  ;;  %1970 = vmatprep.subr.bf16.mxu0 %v2084_v0 }
 0x20c   :  { %2024 = vpow2.f32 %v856_v39  ;;  %v839_v3 = vsub.f32 %v2352_v31, %v810_v50  ;;  %902 = vadd.xlane.f32.xlu1 %v901_v49 }
 0x20d   :  { %1955 = vmatmul.mubr.msk.bf16.vlgmr.msra.gmra.mrb[28].mxu1 %vm45_vm0, %v1040_v58 }
 0x20e   :  { %v2021_v30 = vpop.eup %2020  ;;  %v858_v25 = vmul.f32 1.442695, %v839_v3  ;;  %1965 = vmatpush3.bf16.msra.mxu1 %v2514_v6  ;;  %1966 = vmatprep.mubr.msk.bf16.mxu1 %vm2085_vm1, %v2084_v0 }
 0x20f   :  { %v815_v63 = vpop.permute.xlu1 %814  ;;  %v820_v56 = vpop.permute.xlu0 %819  ;;  %v904_v40 = vsel %vm45_vm0, %v2021_v30, 0.0  ;;  %v1041_v36 = vpack.c.bf16 %v2021_v30, %v2021_v30  ;;  %1976 = vmatprep.subr.bf16.mxu1 %v2084_v0 }
 0x210   :  { %2026 = vpow2.f32 %v858_v25  ;;  %v840_v31 = vsub.f32 %v2360_v42, %v815_v63  ;;  %v841_v62 = vsub.f32 %v2364_v43, %v820_v56  ;;  %905 = vadd.xlane.f32.xlu0 %v904_v40  ;;  %v2776_v56 = vsub.f32 %v2407_v16, %v2415_v21 }
 0x211   :  { %1961 = vmatmul.mubr.msk.bf16.vlgmr.msra.gmra.mrb[32].mxu0 %vm45_vm0, %v1041_v36  ;;  %v762_v16 = vmul.f32 1.442695, %v2780_v15 }
 0x212   :  { %v2023_v1 = vpop.eup %2022  ;;  %v860_v6 = vmul.f32 1.442695, %v840_v31  ;;  %v862_v5 = vmul.f32 1.442695, %v841_v62  ;;  %1971 = vmatpush3.bf16.msra.mxu0 %v2530_v35  ;;  %1972 = vmatprep.mubr.msk.bf16.mxu0 %vm2085_vm1, %v2084_v0  ;;  %v754_v40 = vmul.f32 1.442695, %v2776_v56 }
 0x213   :  { %v907_v11 = vsel %vm45_vm0, %v2023_v1, 0.0  ;;  %v1042_v34 = vpack.c.bf16 %v2023_v1, %v2023_v1  ;;  %1982 = vmatprep.subr.bf16.mxu0 %v2084_v0 }
 0x214   :  { %2028 = vpow2.f32 %v860_v6  ;;  %908 = vadd.xlane.f32.xlu1 %v907_v11  ;;  %v869_v6 = vld [vmem:[#allocation3 + $0x8] sm:$0xff] }
 0x215   :  { %2030 = vpow2.f32 %v862_v5  ;;  %1967 = vmatmul.mubr.msk.bf16.vlgmr.msra.gmra.mrb[32].mxu1 %vm45_vm0, %v1042_v34 }
 0x216   :  { %v2025_v42 = vpop.eup %2024  ;;  %1977 = vmatpush3.bf16.msra.mxu1 %v2546_v41  ;;  %1978 = vmatprep.mubr.msk.bf16.mxu1 %vm2085_vm1, %v2084_v0 }
 0x217   :  { %v825_v43 = vpop.permute.xlu1 %824  ;;  %v830_v35 = vpop.permute.xlu0 %829  ;;  %v910_v33 = vsel %vm45_vm0, %v2025_v42, 0.0  ;;  %v1043_v17 = vpack.c.bf16 %v2025_v42, %v2025_v42  ;;  %1988 = vmatprep.subr.bf16.mxu1 %v2084_v0  ;;  %v870_v42 = vld [vmem:[#allocation3 + $0x10] sm:$0xff] }
 0x218   :  { %v842_v24 = vsub.f32 %v2372_v55, %v825_v43  ;;  %v843_v46 = vsub.f32 %v2376_v57, %v830_v35  ;;  %911 = vadd.xlane.f32.xlu0 %v910_v33 }
 0x219   :  { %1973 = vmatmul.mubr.msk.bf16.vlgmr.msra.gmra.mrb[36].mxu0 %vm45_vm0, %v1043_v17  ;;  %v871_v17 = vld [vmem:[#allocation3 + $0x18] sm:$0xff] }
 0x21a   :  { %v2027_v47 = vpop.eup %2026  ;;  %v864_v48 = vmul.f32 1.442695, %v842_v24  ;;  %v866_v41 = vmul.f32 1.442695, %v843_v46  ;;  %1983 = vmatpush3.bf16.msra.mxu0 %v2552_v54  ;;  %1984 = vmatprep.mubr.msk.bf16.mxu0 %vm2085_vm1, %v2084_v0 }
 0x21b   :  { %v913_v2 = vsel %vm45_vm0, %v2027_v47, 0.0  ;;  %v1044_v18 = vpack.c.bf16 %v2027_v47, %v2027_v47  ;;  %1994 = vmatprep.subr.bf16.mxu0 %v2084_v0 }
 0x21c   :  { %2032 = vpow2.f32 %v864_v48  ;;  %914 = vadd.xlane.f32.xlu1 %v913_v2 }
 0x21d   :  { %2034 = vpow2.f32 %v866_v41  ;;  %1979 = vmatmul.mubr.msk.bf16.vlgmr.msra.gmra.mrb[36].mxu1 %vm45_vm0, %v1044_v18  ;;  %v872_v41 = vld [vmem:[#allocation3 + $0x20] sm:$0xff] }
 0x21e   :  { %v2029_v55 = vpop.eup %2028  ;;  %1989 = vmatpush3.bf16.msra.mxu1 %v2558_v59  ;;  %1990 = vmatprep.mubr.msk.bf16.mxu1 %vm2085_vm1, %v2084_v0 }
 0x21f   :  { %v2031_v57 = vpop.eup %2030  ;;  %v916_v54 = vsel %vm45_vm0, %v2029_v55, 0.0  ;;  %v1045_v39 = vpack.c.bf16 %v2029_v55, %v2029_v55  ;;  %2000 = vmatprep.subr.bf16.mxu1 %v2084_v0 }
 0x220   :  { %917 = vadd.xlane.f32.xlu0 %v916_v54  ;;  %v919_v50 = vsel %vm45_vm0, %v2031_v57, 0.0  ;;  %v1046_v59 = vpack.c.bf16 %v2031_v57, %v2031_v57  ;;  %v873_v54 = vld [vmem:[#allocation3 + $0x28] sm:$0xff] }
 0x221   :  { %920 = vadd.xlane.f32.xlu1 %v919_v50  ;;  %1985 = vmatmul.mubr.msk.bf16.vlgmr.msra.gmra.mrb[40].mxu0 %vm45_vm0, %v1045_v39 }
 0x222   :  { %1995 = vmatpush3.bf16.msra.mxu0 %v2564_v20  ;;  %1996 = vmatprep.mubr.msk.bf16.mxu0 %vm2085_vm1, %v2084_v0  ;;  %v750_v20 = vmul.f32 1.442695, %v737_v13 }
 0x224   :  { %2036 = vpow2.f32 %v750_v20 }
 0x225   :  { %1991 = vmatmul.mubr.msk.bf16.vlgmr.msra.gmra.mrb[40].mxu1 %vm45_vm0, %v1046_v59 }
 0x226   :  { %v2033_v49 = vpop.eup %2032  ;;  %2001 = vmatpush3.bf16.msra.mxu1 %v2570_v26  ;;  %2002 = vmatprep.mubr.msk.bf16.mxu1 %vm2085_vm1, %v2084_v0  ;;  %v748_v0 = vmul.f32 1.442695, %v736_v8  ;;  %v752_v26 = vmul.f32 1.442695, %v738_v19  ;;  %v2779_v8 = vsub.f32 %v2450_v37, %v2460_v44  ;;  %v2781_v19 = vsub.f32 %v2485_v52, %v2495_v61 }
 0x227   :  { %v2035_v58 = vpop.eup %2034  ;;  %v922_v3 = vsel %vm45_vm0, %v2033_v49, 0.0  ;;  %v1047_v30 = vpack.c.bf16 %v2033_v49, %v2033_v49  ;;  %v2783_v37 = vsub.f32 %v2518_v14, %v2527_v32  ;;  %v2784_v52 = vsub.f32 %v2516_v9, %v2524_v27  ;;  %v868_v27 = vld [vmem:[#allocation3] sm:$0xff] }
 0x228   :  { %923 = vadd.xlane.f32.xlu0 %v922_v3  ;;  %v925_v25 = vsel %vm45_vm0, %v2035_v58, 0.0  ;;  %v1048_v63 = vpack.c.bf16 %v2035_v58, %v2035_v58  ;;  %2038 = vpow2.f32 %v748_v0  ;;  %v760_v12 = vmul.f32 1.442695, %v2779_v8  ;;  %v874_v58 = vld [vmem:[#allocation3 + $0x30] sm:$0xff]  ;;  %v875_v0 = vld [vmem:[#allocation3 + $0x38] sm:$0xff] }
 0x229   :  { %926 = vadd.xlane.f32.xlu1 %v925_v25  ;;  %1997 = vmatmul.mubr.msk.bf16.vlgmr.msra.gmra.mrb[44].mxu0 %vm45_vm0, %v1047_v30  ;;  %2040 = vpow2.f32 %v752_v26  ;;  %v764_v21 = vmul.f32 1.442695, %v2781_v19  ;;  %v768_v38 = vmul.f32 1.442695, %v2783_v37  ;;  %v770_v61 = vmul.f32 1.442695, %v2784_v52 }
 0x22a   :  { %2042 = vpow2.f32 %v754_v40  ;;  %v878_v37 = vld [vmem:[#allocation3 + $0x50] sm:$0xff] }
 0x22b   :  { %2044 = vpow2.f32 %v756_v10 }
 0x22c   :  { %2046 = vpow2.f32 %v758_v53 }
 0x22d   :  { %2003 = vmatmul.mubr.msk.bf16.vlgmr.msra.gmra.mrb[44].mxu1 %vm45_vm0, %v1048_v63  ;;  %2048 = vpow2.f32 %v760_v12  ;;  %v877_v12 = vld [vmem:[#allocation3 + $0x48] sm:$0xff] }
 0x22e   :  { %v2037_v13 = vpop.eup %2036  ;;  %2050 = vpow2.f32 %v762_v16 }
 0x22f   :  { %2052 = vpow2.f32 %v764_v21  ;;  %v881_v11 = vmul.f32 %v2037_v13, %v869_v6 }
 0x230   :  { %2054 = vpow2.f32 %v766_v29 }
 0x231   :  { %2056 = vpow2.f32 %v768_v38 }
 0x232   :  { %v2039_v22 = vpop.eup %2038  ;;  %2058 = vpow2.f32 %v770_v61 }
 0x233   :  { %v2041_v23 = vpop.eup %2040  ;;  %v880_v62 = vmul.f32 %v2039_v22, %v868_v27 }
 0x234   :  { %v2043_v44 = vpop.eup %2042  ;;  %v882_v35 = vmul.f32 %v2041_v23, %v870_v42 }
 0x235   :  { %v2045_v45 = vpop.eup %2044  ;;  %v883_v47 = vmul.f32 %v2043_v44, %v871_v17 }
 0x236   :  { %v2047_v36 = vpop.eup %2046  ;;  %v884_v55 = vmul.f32 %v2045_v45, %v872_v41 }
 0x237   :  { %v2049_v51 = vpop.eup %2048  ;;  %v885_v59 = vmul.f32 %v2047_v36, %v873_v54 }
 0x238   :  { %v2051_v60 = vpop.eup %2050  ;;  %v886_v20 = vmul.f32 %v2049_v51, %v874_v58 }
 0x239   :  { %v2682_v31 = vpop.eup %2052  ;;  %v887_v7 = vmul.f32 %v2051_v60, %v875_v0 }
 0x23a   :  { %972 = vperm.xlu1 %2011, %v2037_v13   ;;  %v2685_v14 = vpop.eup %2054  ;;  %v888_v15 = vmul.f32 %v2682_v31, %v876_v4 }
 0x23b   :  { %v2687_v32 = vpop.eup %2056  ;;  %v889_v16 = vmul.f32 %v2685_v14, %v877_v12 }
 0x23c   :  { %v2691_v9 = vpop.eup %2058  ;;  %v890_v52 = vmul.f32 %v2687_v32, %v878_v37  ;;  %v959_v37 = vld [vmem:[#allocation4 + $0x30] sm:$0xff] }
 0x23e   :  { %977 = vperm.xlu1 %2011, %v2041_v23   ;;  %967 = vperm.xlu0 %2010, %v2039_v22  }
 0x242   :  { %987 = vperm.xlu1 %2011, %v2045_v45   ;;  %982 = vperm.xlu0 %2010, %v2043_v44   ;;  %v879_v44 = vld [vmem:[#allocation3 + $0x58] sm:$0xff] }
 0x243   :  { %v891_v61 = vmul.f32 %v2691_v9, %v879_v44 }
 0x246   :  { %997 = vperm.xlu1 %2011, %v2049_v51   ;;  %992 = vperm.xlu0 %2010, %v2047_v36  }
 0x24a   :  { %1007 = vperm.xlu1 %2011, %v2682_v31   ;;  %1002 = vperm.xlu0 %2010, %v2051_v60  }
 0x24e   :  { %1017 = vperm.xlu1 %2011, %v2687_v32   ;;  %1012 = vperm.xlu0 %2010, %v2685_v14  }
 0x252   :  { %1022 = vperm.xlu0 %2010, %v2691_v9  }
 0x28d   :  { %v894_v1 = vpop.xlane.xlu1 %893 }
 0x28e   :  { %v928_v5 = vadd.f32 %v894_v1, %v880_v62 }
 0x290   :  { %941 = vst.msk [vmem:[#allocation3] sm:$0xff] %vm20_vm2, %v928_v5 }
 0x291   :  { %v897_v34 = vpop.xlane.xlu0 %896 }
 0x292   :  { %v929_v43 = vadd.f32 %v897_v34, %v881_v11 }
 0x294   :  { %942 = vst.msk [vmem:[#allocation3 + $0x8] sm:$0xff] %vm20_vm2, %v929_v43  ;;  %v953_v43 = vld [vmem:[#allocation4] sm:$0xff] }
 0x295   :  { %v900_v33 = vpop.xlane.xlu0 %899 }
 0x296   :  { %v930_v24 = vadd.f32 %v900_v33, %v882_v35 }
 0x297   :  { %v1665_v46 = vld [vmem:[#allocation3] sm:$0xff] }
 0x298   :  { %943 = vst.msk [vmem:[#allocation3 + $0x10] sm:$0xff] %vm20_vm2, %v930_v24  ;;  %2060 = vrcp.f32 %v1665_v46  ;;  %v954_v24 = vld [vmem:[#allocation4 + $0x8] sm:$0xff] }
 0x299   :  { %v903_v48 = vpop.xlane.xlu1 %902 }
 0x29a   :  { %v931_v2 = vadd.f32 %v903_v48, %v883_v47 }
 0x29b   :  { %v1666_v18 = vld [vmem:[#allocation3 + $0x8] sm:$0xff] }
 0x29c   :  { %944 = vst.msk [vmem:[#allocation3 + $0x18] sm:$0xff] %vm20_vm2, %v931_v2  ;;  %2062 = vrcp.f32 %v1666_v18 }
 0x29d   :  { %v906_v57 = vpop.xlane.xlu0 %905 }
 0x29e   :  { %v932_v39 = vadd.f32 %v906_v57, %v884_v55  ;;  %v955_v55 = vld [vmem:[#allocation4 + $0x10] sm:$0xff] }
 0x29f   :  { %v1667_v50 = vld [vmem:[#allocation3 + $0x10] sm:$0xff] }
 0x2a0   :  { %945 = vst.msk [vmem:[#allocation3 + $0x20] sm:$0xff] %vm20_vm2, %v932_v39  ;;  %2064 = vrcp.f32 %v1667_v50 }
 0x2a1   :  { %v909_v49 = vpop.xlane.xlu1 %908 }
 0x2a2   :  { %v2061_v3 = vpop.eup %2060  ;;  %v933_v30 = vadd.f32 %v909_v49, %v885_v59 }
 0x2a3   :  { %1691 = vperm.xlu1 %2011, %v2061_v3   ;;  %v1668_v25 = vld [vmem:[#allocation3 + $0x18] sm:$0xff] }
 0x2a4   :  { %946 = vst.msk [vmem:[#allocation3 + $0x28] sm:$0xff] %vm20_vm2, %v933_v30  ;;  %2066 = vrcp.f32 %v1668_v25  ;;  %v956_v3 = vld [vmem:[#allocation4 + $0x18] sm:$0xff] }
 0x2a5   :  { %v912_v63 = vpop.xlane.xlu0 %911 }
 0x2a6   :  { %v2063_v26 = vpop.eup %2062  ;;  %v934_v56 = vadd.f32 %v912_v63, %v886_v20 }
 0x2a7   :  { %1696 = vperm.xlu0 %2010, %v2063_v26   ;;  %v1669_v40 = vld [vmem:[#allocation3 + $0x20] sm:$0xff] }
 0x2a8   :  { %947 = vst.msk [vmem:[#allocation3 + $0x30] sm:$0xff] %vm20_vm2, %v934_v56  ;;  %2068 = vrcp.f32 %v1669_v40  ;;  %v957_v40 = vld [vmem:[#allocation4 + $0x20] sm:$0xff] }
 0x2a9   :  { %v915_v10 = vpop.xlane.xlu1 %914 }
 0x2aa   :  { %v2065_v53 = vpop.eup %2064  ;;  %v935_v8 = vadd.f32 %v915_v10, %v887_v7 }
 0x2ab   :  { %1701 = vperm.xlu1 %2011, %v2065_v53   ;;  %v1670_v13 = vld [vmem:[#allocation3 + $0x28] sm:$0xff] }
 0x2ac   :  { %948 = vst.msk [vmem:[#allocation3 + $0x38] sm:$0xff] %vm20_vm2, %v935_v8  ;;  %2070 = vrcp.f32 %v1670_v13 }
 0x2ad   :  { %v918_v19 = vpop.xlane.xlu0 %917 }
 0x2ae   :  { %v2067_v21 = vpop.eup %2066  ;;  %v921_v22 = vpop.xlane.xlu1 %920  ;;  %v936_v23 = vadd.f32 %v918_v19, %v888_v15  ;;  %v958_v15 = vld [vmem:[#allocation4 + $0x28] sm:$0xff] }
 0x2af   :  { %v937_v28 = vadd.f32 %v921_v22, %v889_v16  ;;  %1706 = vperm.xlu0 %2010, %v2067_v21   ;;  %v1671_v29 = vld [vmem:[#allocation3 + $0x30] sm:$0xff] }
 0x2b0   :  { %949 = vst.msk [vmem:[#allocation3 + $0x40] sm:$0xff] %vm20_vm2, %v936_v23  ;;  %2072 = vrcp.f32 %v1671_v29 }
 0x2b1   :  { %950 = vst.msk [vmem:[#allocation3 + $0x48] sm:$0xff] %vm20_vm2, %v937_v28 }
 0x2b2   :  { %v2069_v38 = vpop.eup %2068 }
 0x2b3   :  { %1711 = vperm.xlu1 %2011, %v2069_v38   ;;  %v1672_v45 = vld [vmem:[#allocation3 + $0x38] sm:$0xff] }
 0x2b4   :  { %2074 = vrcp.f32 %v1672_v45 }
 0x2b5   :  { %v924_v36 = vpop.xlane.xlu0 %923 }
 0x2b6   :  { %v2071_v51 = vpop.eup %2070  ;;  %v927_v60 = vpop.xlane.xlu1 %926  ;;  %v938_v31 = vadd.f32 %v924_v36, %v890_v52 }
 0x2b7   :  { %v939_v14 = vadd.f32 %v927_v60, %v891_v61  ;;  %1716 = vperm.xlu0 %2010, %v2071_v51   ;;  %v1673_v27 = vld [vmem:[#allocation3 + $0x40] sm:$0xff]  ;;  %v960_v60 = vld [vmem:[#allocation4 + $0x38] sm:$0xff] }
 0x2b8   :  { %951 = vst.msk [vmem:[#allocation3 + $0x50] sm:$0xff] %vm20_vm2, %v938_v31  ;;  %v1674_v62 = vld [vmem:[#allocation3 + $0x48] sm:$0xff]  ;;  %2076 = vrcp.f32 %v1673_v27 }
 0x2b9   :  { %952 = vst.msk [vmem:[#allocation3 + $0x58] sm:$0xff] %vm20_vm2, %v939_v14  ;;  %2078 = vrcp.f32 %v1674_v62 }
 0x2ba   :  { %v2073_v1 = vpop.eup %2072  ;;  %v973_v33 = vpop.permute.xlu1 %972 }
 0x2bb   :  { %1721 = vperm.xlu1 %2011, %v2073_v1   ;;  %v1026_v2 = vmul.f32 %v973_v33, %v954_v24 }
 0x2bd   :  { %v968_v35 = vpop.permute.xlu0 %967 }
 0x2be   :  { %v2075_v32 = vpop.eup %2074  ;;  %v1025_v17 = vmul.f32 %v968_v35, %v953_v43  ;;  %v978_v57 = vpop.permute.xlu1 %977 }
 0x2bf   :  { %1726 = vperm.xlu0 %2010, %v2075_v32   ;;  %v1675_v6 = vld [vmem:[#allocation3 + $0x50] sm:$0xff]  ;;  %v1027_v49 = vmul.f32 %v978_v57, %v955_v55 }
 0x2c0   :  { %v1676_v9 = vld [vmem:[#allocation3 + $0x58] sm:$0xff]  ;;  %2080 = vrcp.f32 %v1675_v6  ;;  %v963_v55 = vld [vmem:[#allocation4 + $0x50] sm:$0xff] }
 0x2c1   :  { %2082 = vrcp.f32 %v1676_v9  ;;  %v983_v30 = vpop.permute.xlu0 %982  ;;  %v961_v9 = vld [vmem:[#allocation4 + $0x40] sm:$0xff] }
 0x2c2   :  { %v2077_v5 = vpop.eup %2076  ;;  %v1028_v26 = vmul.f32 %v983_v30, %v956_v3  ;;  %v988_v7 = vpop.permute.xlu1 %987  ;;  %v964_v3 = vld [vmem:[#allocation4 + $0x58] sm:$0xff] }
 0x2c3   :  { %v2079_v11 = vpop.eup %2078  ;;  %1731 = vperm.xlu1 %2011, %v2077_v5   ;;  %v1029_v12 = vmul.f32 %v988_v7, %v957_v40 }
 0x2c4   :  { %1736 = vperm.xlu0 %2010, %v2079_v11  }
 0x2c5   :  { %v993_v16 = vpop.permute.xlu0 %992 }
 0x2c6   :  { %v1030_v28 = vmul.f32 %v993_v16, %v958_v15  ;;  %v998_v38 = vpop.permute.xlu1 %997 }
 0x2c7   :  { %v1031_v36 = vmul.f32 %v998_v38, %v959_v37 }
 0x2c9   :  { %v1003_v31 = vpop.permute.xlu0 %1002 }
 0x2ca   :  { %v2081_v34 = vpop.eup %2080  ;;  %v1032_v32 = vmul.f32 %v1003_v31, %v960_v60  ;;  %v1008_v5 = vpop.permute.xlu1 %1007 }
 0x2cb   :  { %v2083_v42 = vpop.eup %2082  ;;  %1741 = vperm.xlu1 %2011, %v2081_v34   ;;  %v1033_v35 = vmul.f32 %v1008_v5, %v961_v9 }
 0x2cc   :  { %1746 = vperm.xlu0 %2010, %v2083_v42  }
 0x2cd   :  { %v1013_v24 = vpop.permute.xlu0 %1012 }
 0x2ce   :  { %v1018_v57 = vpop.permute.xlu1 %1017 }
 0x2d1   :  { %v1023_v30 = vpop.permute.xlu0 %1022 }
 0x2d4   :  { %v1102_v46 = vpop.f32.mrb[24].mxu0 }
 0x2d5   :  { %v1614_v47 = vadd.f32 %v1102_v46, %v1025_v17  ;;  %v1938_v48 = vpop.f32.mrb[25].mxu0  ;;  %v962_v17 = vld [vmem:[#allocation4 + $0x48] sm:$0xff] }
 0x2d6   :  { %v1105_v41 = vpop.f32.mrb[26].mxu0 }
 0x2d7   :  { %1626 = vst.msk [vmem:[#allocation4] sm:$0xff] %vm45_vm0, %v1614_v47  ;;  %v1939_v18 = vpop.f32.mrb[27].mxu0 }
 0x2d8   :  { %v1148_v54 = vpop.f32.mrb[24].mxu1 }
 0x2d9   :  { %v1615_v39 = vadd.f32 %v1148_v54, %v1026_v2  ;;  %v1944_v50 = vpop.f32.mrb[25].mxu1  ;;  %v1034_v2 = vmul.f32 %v1013_v24, %v962_v17 }
 0x2da   :  { %v1151_v59 = vpop.f32.mrb[26].mxu1 }
 0x2db   :  { %1627 = vst.msk [vmem:[#allocation4 + $0x8] sm:$0xff] %vm45_vm0, %v1615_v39  ;;  %v1945_v58 = vpop.f32.mrb[27].mxu1 }
 0x2dc   :  { %v1194_v25 = vpop.f32.mrb[28].mxu0 }
 0x2dd   :  { %v1616_v20 = vadd.f32 %v1194_v25, %v1027_v49  ;;  %v1950_v63 = vpop.f32.mrb[29].mxu0  ;;  %v1035_v49 = vmul.f32 %v1018_v57, %v963_v55 }
 0x2de   :  { %v1197_v0 = vpop.f32.mrb[30].mxu0 }
 0x2df   :  { %1628 = vst.msk [vmem:[#allocation4 + $0x10] sm:$0xff] %vm45_vm0, %v1616_v20  ;;  %v1951_v56 = vpop.f32.mrb[31].mxu0 }
 0x2e0   :  { %v1240_v10 = vpop.f32.mrb[28].mxu1 }
 0x2e1   :  { %v1617_v4 = vadd.f32 %v1240_v10, %v1028_v26  ;;  %v1956_v53 = vpop.f32.mrb[29].mxu1  ;;  %v1036_v26 = vmul.f32 %v1023_v30, %v964_v3 }
 0x2e2   :  { %v1243_v8 = vpop.f32.mrb[30].mxu1  ;;  %v1654_v16 = vld [vmem:[#allocation4 + $0x8] sm:$0xff] }
 0x2e3   :  { %1629 = vst.msk [vmem:[#allocation4 + $0x18] sm:$0xff] %vm45_vm0, %v1617_v4  ;;  %v1957_v13 = vpop.f32.mrb[31].mxu1 }
 0x2e4   :  { %v1286_v19 = vpop.f32.mrb[32].mxu0 }
 0x2e5   :  { %v1618_v21 = vadd.f32 %v1286_v19, %v1029_v12  ;;  %v1962_v22 = vpop.f32.mrb[33].mxu0  ;;  %v1653_v12 = vld [vmem:[#allocation4] sm:$0xff] }
 0x2e6   :  { %v1289_v23 = vpop.f32.mrb[34].mxu0 }
 0x2e7   :  { %1630 = vst.msk [vmem:[#allocation4 + $0x20] sm:$0xff] %vm45_vm0, %v1618_v21  ;;  %v1963_v29 = vpop.f32.mrb[35].mxu0 }
 0x2e8   :  { %v1332_v44 = vpop.f32.mrb[32].mxu1 }
 0x2e9   :  { %v1619_v45 = vadd.f32 %v1332_v44, %v1030_v28  ;;  %v1968_v52 = vpop.f32.mrb[33].mxu1  ;;  %v1655_v28 = vld [vmem:[#allocation4 + $0x10] sm:$0xff] }
 0x2ea   :  { %v1335_v61 = vpop.f32.mrb[34].mxu1  ;;  %v1656_v38 = vld [vmem:[#allocation4 + $0x18] sm:$0xff] }
 0x2eb   :  { %1631 = vst.msk [vmem:[#allocation4 + $0x28] sm:$0xff] %vm45_vm0, %v1619_v45  ;;  %v1969_v51 = vpop.f32.mrb[35].mxu1 }
 0x2ec   :  { %v1378_v14 = vpop.f32.mrb[36].mxu0 }
 0x2ed   :  { %v1620_v27 = vadd.f32 %v1378_v14, %v1031_v36  ;;  %v1974_v62 = vpop.f32.mrb[37].mxu0 }
 0x2ee   :  { %v1381_v1 = vpop.f32.mrb[38].mxu0  ;;  %v1657_v36 = vld [vmem:[#allocation4 + $0x20] sm:$0xff] }
 0x2ef   :  { %1632 = vst.msk [vmem:[#allocation4 + $0x30] sm:$0xff] %vm45_vm0, %v1620_v27  ;;  %v1975_v6 = vpop.f32.mrb[39].mxu0 }
 0x2f0   :  { %v1424_v11 = vpop.f32.mrb[36].mxu1 }
 0x2f1   :  { %v1621_v34 = vadd.f32 %v1424_v11, %v1032_v32  ;;  %v1980_v42 = vpop.f32.mrb[37].mxu1 }
 0x2f2   :  { %v1427_v43 = vpop.f32.mrb[38].mxu1  ;;  %v1658_v31 = vld [vmem:[#allocation4 + $0x28] sm:$0xff] }
 0x2f3   :  { %1633 = vst.msk [vmem:[#allocation4 + $0x38] sm:$0xff] %vm45_vm0, %v1621_v34  ;;  %v1981_v33 = vpop.f32.mrb[39].mxu1 }
 0x2f4   :  { %v1470_v46 = vpop.f32.mrb[40].mxu0 }
 0x2f5   :  { %v1622_v47 = vadd.f32 %v1470_v46, %v1033_v35  ;;  %v1986_v48 = vpop.f32.mrb[41].mxu0 }
 0x2f6   :  { %v1473_v41 = vpop.f32.mrb[42].mxu0  ;;  %v1659_v32 = vld [vmem:[#allocation4 + $0x30] sm:$0xff] }
 0x2f7   :  { %1634 = vst.msk [vmem:[#allocation4 + $0x40] sm:$0xff] %vm45_vm0, %v1622_v47  ;;  %v1987_v18 = vpop.f32.mrb[43].mxu0 }
 0x2f8   :  { %v1516_v54 = vpop.f32.mrb[40].mxu1 }
 0x2f9   :  { %v1623_v39 = vadd.f32 %v1516_v54, %v1034_v2  ;;  %v1992_v50 = vpop.f32.mrb[41].mxu1 }
 0x2fa   :  { %v1519_v59 = vpop.f32.mrb[42].mxu1  ;;  %v1660_v5 = vld [vmem:[#allocation4 + $0x38] sm:$0xff] }
 0x2fb   :  { %1635 = vst.msk [vmem:[#allocation4 + $0x48] sm:$0xff] %vm45_vm0, %v1623_v39  ;;  %v1993_v58 = vpop.f32.mrb[43].mxu1 }
 0x2fc   :  { %v1562_v25 = vpop.f32.mrb[44].mxu0 }
 0x2fd   :  { %v1624_v20 = vadd.f32 %v1562_v25, %v1035_v49  ;;  %v1998_v63 = vpop.f32.mrb[45].mxu0 }
 0x2fe   :  { %v1565_v0 = vpop.f32.mrb[46].mxu0  ;;  %v1661_v35 = vld [vmem:[#allocation4 + $0x40] sm:$0xff] }
 0x2ff   :  { %1636 = vst.msk [vmem:[#allocation4 + $0x50] sm:$0xff] %vm45_vm0, %v1624_v20  ;;  %v1999_v56 = vpop.f32.mrb[47].mxu0 }
 0x300   :  { %v1608_v40 = vpop.f32.mrb[44].mxu1 }
 0x301   :  { %v1625_v7 = vadd.f32 %v1608_v40, %v1036_v26  ;;  %v2004_v10 = vpop.f32.mrb[45].mxu1 }
 0x302   :  { %v1611_v4 = vpop.f32.mrb[46].mxu1  ;;  %v1662_v17 = vld [vmem:[#allocation4 + $0x48] sm:$0xff] }
 0x303   :  { %1637 = vst.msk [vmem:[#allocation4 + $0x58] sm:$0xff] %vm45_vm0, %v1625_v7  ;;  %v2005_v53 = vpop.f32.mrb[47].mxu1 }
 0x306   :  { %v1663_v2 = vld [vmem:[#allocation4 + $0x50] sm:$0xff] }
 0x30a   :  { %v1664_v55 = vld [vmem:[#allocation4 + $0x58] sm:$0xff] }
 0x322   :  { %v1692_v8 = vpop.permute.xlu1 %1691 }
 0x323   :  { %v1749_v13 = vmul.f32 %v1692_v8, %v1653_v12 }
 0x325   :  { %v1761_v15 = vpack.c.bf16 %v1749_v13, %v1749_v13 }
 0x326   :  { %v1697_v19 = vpop.permute.xlu0 %1696 }
 0x327   :  { %1774 = vst.msk [vmem:[%s2773_s3] sm:$0xf] %vm1773_vm7, %v1761_v15  ;;  %v1750_v21 = vmul.f32 %v1697_v19, %v1654_v16 }
 0x329   :  { %v1762_v22 = vpack.c.bf16 %v1750_v21, %v1750_v21 }
 0x32a   :  { %v1702_v23 = vpop.permute.xlu1 %1701 }
 0x32b   :  { %1775 = vst.msk [vmem:[%s2773_s3 + $0x4] sm:$0xf] %vm1773_vm7, %v1762_v22  ;;  %v1751_v29 = vmul.f32 %v1702_v23, %v1655_v28 }
 0x32d   :  { %v1763_v37 = vpack.c.bf16 %v1751_v29, %v1751_v29 }
 0x32e   :  { %v1707_v44 = vpop.permute.xlu0 %1706 }
 0x32f   :  { %1776 = vst.msk [vmem:[%s2773_s3 + $0x8] sm:$0xf] %vm1773_vm7, %v1763_v37  ;;  %v1752_v45 = vmul.f32 %v1707_v44, %v1656_v38 }
 0x331   :  { %v1764_v52 = vpack.c.bf16 %v1752_v45, %v1752_v45 }
 0x332   :  { %v1712_v61 = vpop.permute.xlu1 %1711 }
 0x333   :  { %1777 = vst.msk [vmem:[%s2773_s3 + $0xc] sm:$0xf] %vm1773_vm7, %v1764_v52  ;;  %v1753_v51 = vmul.f32 %v1712_v61, %v1657_v36 }
 0x335   :  { %v1765_v60 = vpack.c.bf16 %v1753_v51, %v1753_v51 }
 0x336   :  { %v1717_v14 = vpop.permute.xlu0 %1716 }
 0x337   :  { %1778 = vst.msk [vmem:[%s2773_s3 + $0x10] sm:$0xf] %vm1773_vm7, %v1765_v60  ;;  %v1754_v27 = vmul.f32 %v1717_v14, %v1658_v31 }
 0x339   :  { %v1766_v62 = vpack.c.bf16 %v1754_v27, %v1754_v27 }
 0x33a   :  { %v1722_v1 = vpop.permute.xlu1 %1721 }
 0x33b   :  { %1779 = vst.msk [vmem:[%s2773_s3 + $0x14] sm:$0xf] %vm1773_vm7, %v1766_v62  ;;  %v1755_v6 = vmul.f32 %v1722_v1, %v1659_v32 }
 0x33d   :  { %v1767_v9 = vpack.c.bf16 %v1755_v6, %v1755_v6 }
 0x33e   :  { %v1727_v11 = vpop.permute.xlu0 %1726 }
 0x33f   :  { %1780 = vst.msk [vmem:[%s2773_s3 + $0x18] sm:$0xf] %vm1773_vm7, %v1767_v9  ;;  %v1756_v34 = vmul.f32 %v1727_v11, %v1660_v5 }
 0x341   :  { %v1768_v42 = vpack.c.bf16 %v1756_v34, %v1756_v34 }
 0x342   :  { %v1732_v43 = vpop.permute.xlu1 %1731 }
 0x343   :  { %1781 = vst.msk [vmem:[%s2773_s3 + $0x1c] sm:$0xf] %vm1773_vm7, %v1768_v42  ;;  %v1757_v33 = vmul.f32 %v1732_v43, %v1661_v35  ;;  %v1737_v24 = vpop.permute.xlu0 %1736 }
 0x344   :  { %v1758_v46 = vmul.f32 %v1737_v24, %v1662_v17 }
 0x345   :  { %v1769_v47 = vpack.c.bf16 %v1757_v33, %v1757_v33 }
 0x346   :  { %v1770_v48 = vpack.c.bf16 %v1758_v46, %v1758_v46 }
 0x347   :  { %1782 = vst.msk [vmem:[%s2773_s3 + $0x20] sm:$0xf] %vm1773_vm7, %v1769_v47 }
 0x348   :  { %1783 = vst.msk [vmem:[%s2773_s3 + $0x24] sm:$0xf] %vm1773_vm7, %v1770_v48 }
 0x34a   :  { %v1742_v41 = vpop.permute.xlu1 %1741 }
 0x34b   :  { %v1759_v18 = vmul.f32 %v1742_v41, %v1663_v2  ;;  %v1747_v57 = vpop.permute.xlu0 %1746 }
 0x34c   :  { %v1760_v54 = vmul.f32 %v1747_v57, %v1664_v55 }
 0x34d   :  { %v1771_v39 = vpack.c.bf16 %v1759_v18, %v1759_v18 }
 0x34e   :  { %v1772_v50 = vpack.c.bf16 %v1760_v54, %v1760_v54 }
 0x34f   :  { %1784 = vst.msk [vmem:[%s2773_s3 + $0x28] sm:$0xf] %vm1773_vm7, %v1771_v39 }
 0x350   :  { %1785 = vst.msk [vmem:[%s2773_s3 + $0x2c] sm:$0xf] %vm1773_vm7, %v1772_v50 }

// kernel: clip_forward.73
= control target key start
LH: loop header
LB: loop body
LE: loop exit
PB: predicated region body
PF: predicated region fallthrough
CT: control target
= control target key end

     0   :  { %vm10_vm0 = vcmask 256000   ;;  %s40_s0 = inlined_call_operand.vmem [shape: f32[3,32], index: 0, kind: input, shape index: {}]   ;;  %s41_s1 = inlined_call_operand.vmem [shape: f32[3,32], index: 1, kind: output, shape index: {}]  }
   0x1   :  { %v8_v0 = vld [vmem:[%s40_s0] sm:$0x7] }
   0x2   :  { %v9_v1 = vmul.f32 %v8_v0, %v8_v0 }
   0x4   :  { %v11_v2 = vsel %vm10_vm0, %v9_v1, 0.0 }
   0x5   :  { %12 = vadd.xlane.f32.xlu0 %v11_v2 }
  0x92   :  { %v13_v3 = vpop.xlane.xlu0 %12 }
  0x93   :  { %v14_v4 = vadd.f32 1e-12, %v13_v3 }
  0x95   :  { %22 = vrsqrt.f32 %v14_v4 }
  0x9f   :  { %v23_v5 = vpop.eup %22 }
  0xa0   :  { %v16_v6 = vmul.f32 %v23_v5, %v8_v0 }
  0xa2   :  { %17 = vst.msk [vmem:[%s41_s1] sm:$0x7] %vm10_vm0, %v16_v6 }

// kernel: clip_forward.75
= control target key start
LH: loop header
LB: loop body
LE: loop exit
PB: predicated region body
PF: predicated region fallthrough
CT: control target
= control target key end

     0   :  { %v165_v3 = vmov 0.0|0.0   ;;  %vm166_vm0 = vmmov 0   ;;  %v167_v6 = vmov 0.0   ;;  %s219_s0 = inlined_call_operand.<no memory space> [shape: f32[1], index: 0, kind: input, shape index: {}]   ;;  %s220_s1 = inlined_call_operand.vmem [shape: f32[2,32], index: 1, kind: input, shape index: {}]   ;;  %s221_s2 = inlined_call_operand.vmem [shape: f32[32,3], index: 2, kind: input, shape index: {}]   ;;  %s222_s3 = inlined_call_operand.hbm [shape: f32[2,3], index: 3, kind: output, shape index: {}]  }
   0x1   :  { %v18_v0 = vld [vmem:[%s221_s2] sm:$0xff]  ;;  %v19_v1 = vld [vmem:[%s221_s2 + $0x8] sm:$0xff]  ;;  %v20_v2 = vld [vmem:[%s221_s2 + $0x10] sm:$0xff]  ;;  %131 = vmatprep.subr.bf16.mxu0 %v165_v3  ;;  %128 = vmatprep.mubr.msk.f32.mxu0 %vm166_vm0, %v167_v6 }
   0x2   :  { %v132_v4 = vpack.c.bf16 %v19_v1, %v18_v0  ;;  %v21_v5 = vld [vmem:[%s221_s2 + $0x18] sm:$0xff] }
   0x3   :  { %9 = vsyncpa [#allocation4], 0  ;;  %v135_v7 = vpack.c.bf16 %v21_v5, %v20_v2  ;;  %v17_v8 = vld [vmem:[%s220_s1] sm:$0x3]  ;;  %vm22_vm1 = vcmask 261120   ;;  %v96_v9 = vstv %s219_s0  ;;  %s168_s24 = smov [#allocation3]  }
   0x4   :  { %133 = vmatpush3.bf16.msra.mxu0 %v132_v4  ;;  %s106_s2 = sshll.u32 %s168_s24, 4  ;;  %vm98_vm2 = vcmask 17408   ;;  %s107_s2 = int_to_ptr.vmem [resolvable:$true] %s106_s2 }
   0x5   :  { %134 = vmatprep.subr.bf16.mxu0 %v165_v3  ;;  %s141_s25 = scalar_lea.vmem %s107_s2, 32  ;;  %p146_p1 = scmp.lt.s32.totalorder %s107_s2, %s107_s2 }
   0x6   :  { %p142_p0 = scmp.ne.s32.totalorder %s107_s2, %s141_s25  ;;  %p147_p2 = scmp.lt.s32.totalorder %s141_s25, %s141_s25 }
   0x8   :  { %136 = vmatpush3.bf16.msra.mxu0 %v135_v7  ;;  %p148_p3 = por %p147_p2, %p146_p1 }
   0xa   :  { %p149_p4 = pnand %p148_p3, %p142_p0 }
   0xb   :  { %129 = vmatmul.mubr.msk.f32.vlgmr.msra.gmra.mrb[0].mxu0 %vm22_vm1, %v17_v8 }
  0xde   :  { %v92_v10 = vpop.f32.mrb[0].mxu0 }
  0xdf   :  { %v97_v11 = vmul.f32 %v96_v9, %v92_v10  ;;  %v130_v12 = vpop.f32.mrb[1].mxu0 }
  0xe1   :  { %99 = vst.msk [vmem:[#allocation3] sm:$0x3] %vm98_vm2, %v97_v11 }
  0xe2   :  { %152 = shalt.err (!%p149_p4)
}
  0xe3   :  { %s153_s27 = scalar_lea.hbm %s222_s3, 32 }
  0xe4   :  { %p154_p5 = scmp.ne.s32.totalorder %s222_s3, %s153_s27  ;;  %p157_p6 = scmp.lt.u32.totalorder %s153_s27, %s222_s3 }
  0xe6   :  { %p159_p7 = pnand %p157_p6, %p154_p5 }
  0xe8   :  { %162 = shalt.err (!%p159_p7)
}
  0xe9   :  { %109 = dma.vmem_to_hbm [thread:$0]  %s107_s2, 32, %s222_s3, [#allocation4]  }
  0xea   :  { %163 = dma.done.wait [#allocation4], 32  }
  0xeb   :  { %164 = vsyncadd [#allocation4], 4294967264 }
  0xec   :  { %113 = vsyncpa [#allocation4], 1 }

</bundles_post_ra>
